<compile_context>
chip_gen: v5e
topology: v5e:2x2
jax: 0.10.0
libtpu: 0.0.40
codegen_flags: <defaults>
</compile_context>

<pallas_src>
import functools
import math

import jax
import jax.numpy as jnp
import numpy as np
from jax.experimental import pallas as pl
from jax.experimental.pallas import tpu as pltpu


def _layer_norm(x, w, b, eps=1e-5):
    mu = jnp.mean(x, axis=-1, keepdims=True)
    var = jnp.mean((x - mu) ** 2, axis=-1, keepdims=True)
    return (x - mu) * jax.lax.rsqrt(var + eps) * w + b


def mm_transformer_kernel(
    x_ref,                                   # (S, d_img + d_txt) f32
    w_proj_ref, b_proj_ref,                  # (d_img+d_txt, D) bf16, (1, D) f32
    w_in_ref, b_in_ref,                      # (D, 3D) bf16, (1, 3D) f32
    w_out_ref, b_out_ref,                    # (D, D) bf16, (1, D) f32
    ln1_w_ref, ln1_b_ref,                    # (1, D) f32
    w1_hbm_ref, b1_ref,                      # (D, FF) bf16 in HBM, (1, FF) f32
    w2_hbm_ref, b2_ref,                      # (FF, D) bf16 in HBM, (1, D) f32
    ln2_w_ref, ln2_b_ref,                    # (1, D) f32
    w_fc_hbm_ref, b_fc_ref,                  # (D, OUT_PAD) bf16 in HBM, (1, OUT_PAD) f32
    out_ref,                                 # (S, OUT_PAD) f32
    w1_vmem, w2_vmem, w_fc_vmem, sem,        # scratch
    *, nhead,
):
    f32 = jnp.float32
    bf16 = jnp.bfloat16

    # --- kick off DMA of the big FF / fc weights: overlaps with attention ----
    cp_w1 = pltpu.make_async_copy(w1_hbm_ref, w1_vmem, sem.at[0])
    cp_w2 = pltpu.make_async_copy(w2_hbm_ref, w2_vmem, sem.at[1])
    cp_fc = pltpu.make_async_copy(w_fc_hbm_ref, w_fc_vmem, sem.at[2])
    cp_w1.start()
    cp_w2.start()
    cp_fc.start()

    # --- fused (block-diagonal) input projection + implicit concat -----------
    x = (jnp.dot(x_ref[...].astype(bf16), w_proj_ref[...],
                 preferred_element_type=f32) + b_proj_ref[...])        # (S, D)
    S, D = x.shape
    dh = D // nhead
    scale = float(1.0 / math.sqrt(dh))

    # --- multi-head self-attention (post-norm encoder layer, eval mode) ------
    qkv = (jnp.dot(x.astype(bf16), w_in_ref[...],
                   preferred_element_type=f32) + b_in_ref[...])        # (S, 3D)
    q = qkv[:, 0 * D:1 * D]
    k = qkv[:, 1 * D:2 * D]
    v = qkv[:, 2 * D:3 * D]

    attn = jnp.zeros((S, D), f32)
    for h in range(nhead):                                  # static unroll
        qh = q[:, h * dh:(h + 1) * dh]
        kh = k[:, h * dh:(h + 1) * dh]
        vh = v[:, h * dh:(h + 1) * dh]
        s = jnp.dot(qh, kh.T, preferred_element_type=f32) * scale      # (S, S)
        s = s - jnp.max(s, axis=-1, keepdims=True)
        e = jnp.exp(s)
        p = e * pl.reciprocal(jnp.sum(e, axis=-1, keepdims=True), approx=True)
        ho = jnp.dot(p, vh, preferred_element_type=f32)                # (S, dh)
        # Accumulate straight through the matching row-slab of w_out:
        # 16-row slices are sublane-aligned (free), no lane-axis concat needed.
        attn = attn + jnp.dot(ho.astype(bf16),
                              w_out_ref[h * dh:(h + 1) * dh, :],
                              preferred_element_type=f32)
    attn = attn + b_out_ref[...]

    x = _layer_norm(x + attn, ln1_w_ref[...], ln1_b_ref[...])

    # --- feed-forward block ---------------------------------------------------
    cp_w1.wait()
    h1 = (jnp.dot(x.astype(bf16), w1_vmem[...],
                  preferred_element_type=f32) + b1_ref[...])
    h1 = jnp.maximum(h1, 0.0)                 # ReLU (encoder-layer default)
    cp_w2.wait()
    ff = (jnp.dot(h1.astype(bf16), w2_vmem[...],
                  preferred_element_type=f32) + b2_ref[...])
    x = _layer_norm(x + ff, ln2_w_ref[...], ln2_b_ref[...])

    # TODO(synk): dropout (p=0.3 outer, p=0.1 inside the encoder layer) is the
    # identity in eval mode; stochastic training-mode dropout is not reproduced.

    # --- final classifier (output padded to 128 lanes -> lane-dense store) ---
    cp_fc.wait()
    out_ref[...] = (jnp.dot(x.astype(bf16), w_fc_vmem[...],
                            preferred_element_type=f32) + b_fc_ref[...])


def prepare_params(p, out_dim):
    """Repack f32 (in,out)-layout params for the kernel: bf16 matmul weights,
    fused block-diagonal input projection, 128-lane padded classifier."""
    bf16 = jnp.bfloat16
    f32 = jnp.float32
    d_img, hidden = p["w_img"].shape
    d_txt = p["w_txt"].shape[0]
    D = 2 * hidden

    w_proj = jnp.zeros((d_img + d_txt, D), f32)
    w_proj = w_proj.at[:d_img, :hidden].set(p["w_img"])
    w_proj = w_proj.at[d_img:, hidden:].set(p["w_txt"])
    b_proj = jnp.concatenate([p["b_img"], p["b_txt"]], axis=1)

    out_pad = max(128, ((out_dim + 127) // 128) * 128)
    w_fc = jnp.zeros((D, out_pad), f32).at[:, :out_dim].set(p["w_fc"])
    b_fc = jnp.zeros((1, out_pad), f32).at[:, :out_dim].set(p["b_fc"])

    return dict(
        w_proj=w_proj.astype(bf16), b_proj=b_proj,
        w_in=p["w_in"].astype(bf16), b_in=p["b_in"],
        w_out=p["w_out"].astype(bf16), b_out=p["b_out"],
        ln1_w=p["ln1_w"], ln1_b=p["ln1_b"],
        w1=p["w1"].astype(bf16), b1=p["b1"],
        w2=p["w2"].astype(bf16), b2=p["b2"],
        ln2_w=p["ln2_w"], ln2_b=p["ln2_b"],
        w_fc=w_fc.astype(bf16), b_fc=b_fc,
    )


def multimodal_transformer(img, txt, params, *, nhead, out_dim):
    kp = prepare_params(params, out_dim)
    x = jnp.concatenate([img, txt], axis=1)          # (B, d_img + d_txt)
    B = x.shape[0]
    D = kp["w_out"].shape[0]
    FF = kp["w1"].shape[1]
    out_pad = kp["w_fc"].shape[1]

    args = (
        x,
        kp["w_proj"], kp["b_proj"],
        kp["w_in"], kp["b_in"],
        kp["w_out"], kp["b_out"],
        kp["ln1_w"], kp["ln1_b"],
        kp["w1"], kp["b1"],
        kp["w2"], kp["b2"],
        kp["ln2_w"], kp["ln2_b"],
        kp["w_fc"], kp["b_fc"],
    )

    vmem = pl.BlockSpec(memory_space=pltpu.MemorySpace.VMEM)
    hbm = pl.BlockSpec(memory_space=pl.ANY)
    in_specs = [
        vmem,            # x
        vmem, vmem,      # w_proj, b_proj
        vmem, vmem,      # w_in, b_in
        vmem, vmem,      # w_out, b_out
        vmem, vmem,      # ln1_w, ln1_b
        hbm, vmem,       # w1 (HBM, manual DMA), b1
        hbm, vmem,       # w2 (HBM, manual DMA), b2
        vmem, vmem,      # ln2_w, ln2_b
        hbm, vmem,       # w_fc (HBM, manual DMA), b_fc
    ]

    flops = int(2 * B * (kp["w_proj"].shape[0] * D + D * 3 * D + D * D
                         + 2 * D * FF + D * out_pad) + 4 * B * B * D)
    bytes_accessed = int(sum(int(np.prod(a.shape)) * a.dtype.itemsize
                             for a in args) + B * out_pad * 4)
    cost = pl.CostEstimate(flops=flops,
                           transcendentals=int(nhead * B * B + 4 * B),
                           bytes_accessed=bytes_accessed)

    kernel = functools.partial(mm_transformer_kernel, nhead=nhead)
    out_padded = pl.pallas_call(
        kernel,
        out_shape=jax.ShapeDtypeStruct((B, out_pad), jnp.float32),
        in_specs=in_specs,
        out_specs=pl.BlockSpec(memory_space=pltpu.MemorySpace.VMEM),
        scratch_shapes=[
            pltpu.VMEM((D, FF), jnp.bfloat16),
            pltpu.VMEM((FF, D), jnp.bfloat16),
            pltpu.VMEM((D, out_pad), jnp.bfloat16),
            pltpu.SemaphoreType.DMA((3,)),
        ],
        cost_estimate=cost,
    )(*args)
    return out_padded[:, :out_dim]


def _bf16_round(w):
    return w.astype(jnp.bfloat16).astype(jnp.float32)


def reference_forward(img, txt, p, *, nhead):
    """Pure-jnp reference: f32 activations, bf16-rounded weights (as kernel)."""
    r = _bf16_round
    x = jnp.concatenate(
        [img @ r(p["w_img"]) + p["b_img"], txt @ r(p["w_txt"]) + p["b_txt"]],
        axis=1)
    S, D = x.shape
    dh = D // nhead
    qkv = x @ r(p["w_in"]) + p["b_in"]
    q = qkv[:, :D].reshape(S, nhead, dh)
    k = qkv[:, D:2 * D].reshape(S, nhead, dh)
    v = qkv[:, 2 * D:].reshape(S, nhead, dh)
    s = jnp.einsum("qhd,khd->hqk", q, k) / math.sqrt(dh)
    a = jax.nn.softmax(s, axis=-1)
    attn = jnp.einsum("hqk,khd->qhd", a, v).reshape(S, D)
    attn = attn @ r(p["w_out"]) + p["b_out"]
    x = _layer_norm(x + attn, p["ln1_w"], p["ln1_b"])
    ff = jnp.maximum(x @ r(p["w1"]) + p["b1"], 0.0) @ r(p["w2"]) + p["b2"]
    x = _layer_norm(x + ff, p["ln2_w"], p["ln2_b"])
    return x @ r(p["w_fc"]) + p["b_fc"]


def init_params(key, d_img, d_txt, hidden, out_dim, ff_dim):
    D = 2 * hidden
    ks = jax.random.split(key, 16)
    f32 = jnp.float32

    def w(k, fi, fo, scale=0.02):
        return (jax.random.normal(k, (fi, fo), f32) * scale).astype(f32)

    def b(k, n, scale=0.01):
        return (jax.random.normal(k, (1, n), f32) * scale).astype(f32)

    return dict(
        w_img=w(ks[0], d_img, hidden), b_img=b(ks[1], hidden),
        w_txt=w(ks[2], d_txt, hidden), b_txt=b(ks[3], hidden),
        w_in=w(ks[4], D, 3 * D),       b_in=b(ks[5], 3 * D),
        w_out=w(ks[6], D, D),          b_out=b(ks[7], D),
        ln1_w=jnp.ones((1, D), f32),   ln1_b=jnp.zeros((1, D), f32),
        w1=w(ks[8], D, ff_dim),        b1=b(ks[9], ff_dim),
        w2=w(ks[10], ff_dim, D),       b2=b(ks[11], D),
        ln2_w=jnp.ones((1, D), f32),   ln2_b=jnp.zeros((1, D), f32),
        w_fc=w(ks[12], D, out_dim),    b_fc=b(ks[13], out_dim),
    )


if __name__ == "__main__":
    # Small, module-consistent sizes: MultiModalTransformer(input_size_img=256,
    # input_size_text=128, output_size=3, hidden_size=64, nhead=8); batch=8.
    # dim_feedforward=2048 is the hard-coded nn.TransformerEncoderLayer default.
    B, D_IMG, D_TXT, HIDDEN, NHEAD, OUT, FF = 8, 256, 128, 64, 8, 3, 2048

    key = jax.random.PRNGKey(0)
    k_img, k_txt, k_par = jax.random.split(key, 3)
    img = jax.random.normal(k_img, (B, D_IMG), jnp.float32)
    txt = jax.random.normal(k_txt, (B, D_TXT), jnp.float32)
    params = init_params(k_par, D_IMG, D_TXT, HIDDEN, OUT, FF)

    out = multimodal_transformer(img, txt, params, nhead=NHEAD, out_dim=OUT)
    out = jax.block_until_ready(out)

    ref = jax.block_until_ready(reference_forward(img, txt, params, nhead=NHEAD))
    np.testing.assert_allclose(np.asarray(out), np.asarray(ref), rtol=5e-2, atol=5e-2)

    assert out.shape == (B, OUT)
    print("KERNEL_OK")
</pallas_src>

<mosaic_0001>
module attributes {stable_mosaic.version = 11 : i64} {
  func.func @mm_transformer_kernel(%arg0: memref<8x384xf32, #tpu.memory_space<vmem>>, %arg1: memref<384x128xbf16, #tpu.memory_space<vmem>>, %arg2: memref<1x128xf32, #tpu.memory_space<vmem>>, %arg3: memref<128x384xbf16, #tpu.memory_space<vmem>>, %arg4: memref<1x384xf32, #tpu.memory_space<vmem>>, %arg5: memref<128x128xbf16, #tpu.memory_space<vmem>>, %arg6: memref<1x128xf32, #tpu.memory_space<vmem>>, %arg7: memref<1x128xf32, #tpu.memory_space<vmem>>, %arg8: memref<1x128xf32, #tpu.memory_space<vmem>>, %arg9: memref<128x2048xbf16, #tpu.memory_space<any>>, %arg10: memref<1x2048xf32, #tpu.memory_space<vmem>>, %arg11: memref<2048x128xbf16, #tpu.memory_space<any>>, %arg12: memref<1x128xf32, #tpu.memory_space<vmem>>, %arg13: memref<1x128xf32, #tpu.memory_space<vmem>>, %arg14: memref<1x128xf32, #tpu.memory_space<vmem>>, %arg15: memref<128x128xbf16, #tpu.memory_space<any>>, %arg16: memref<1x128xf32, #tpu.memory_space<vmem>>, %arg17: memref<8x128xf32, #tpu.memory_space<vmem>>, %arg18: memref<128x2048xbf16, #tpu.memory_space<vmem>>, %arg19: memref<2048x128xbf16, #tpu.memory_space<vmem>>, %arg20: memref<128x128xbf16, #tpu.memory_space<vmem>>, %arg21: memref<3x!tpu.dma_semaphore, #tpu.memory_space<semaphore_mem>>) attributes {dimension_semantics = [], scalar_prefetch = 0 : i64, scratch_operands = 4 : i64, tpu.core_type = #tpu.core_type<tc>} {
    %c0_i32 = arith.constant 0 : i32
    %0 = tpu.memref_slice %arg21[%c0_i32] : memref<3x!tpu.dma_semaphore, #tpu.memory_space<semaphore_mem>> -> memref<1x!tpu.dma_semaphore, #tpu.memory_space<semaphore_mem>>
    %1 = tpu.memref_squeeze %0 : memref<1x!tpu.dma_semaphore, #tpu.memory_space<semaphore_mem>> -> memref<!tpu.dma_semaphore, #tpu.memory_space<semaphore_mem>>
    tpu.enqueue_dma source(%arg9 : memref<128x2048xbf16, #tpu.memory_space<any>>) target(%arg18 : memref<128x2048xbf16, #tpu.memory_space<vmem>>) target_semaphore(%1 : memref<!tpu.dma_semaphore, #tpu.memory_space<semaphore_mem>>)
    %c1_i32 = arith.constant 1 : i32
    %2 = tpu.memref_slice %arg21[%c1_i32] : memref<3x!tpu.dma_semaphore, #tpu.memory_space<semaphore_mem>> -> memref<1x!tpu.dma_semaphore, #tpu.memory_space<semaphore_mem>>
    %3 = tpu.memref_squeeze %2 : memref<1x!tpu.dma_semaphore, #tpu.memory_space<semaphore_mem>> -> memref<!tpu.dma_semaphore, #tpu.memory_space<semaphore_mem>>
    tpu.enqueue_dma source(%arg11 : memref<2048x128xbf16, #tpu.memory_space<any>>) target(%arg19 : memref<2048x128xbf16, #tpu.memory_space<vmem>>) target_semaphore(%3 : memref<!tpu.dma_semaphore, #tpu.memory_space<semaphore_mem>>)
    %c2_i32 = arith.constant 2 : i32
    %4 = tpu.memref_slice %arg21[%c2_i32] : memref<3x!tpu.dma_semaphore, #tpu.memory_space<semaphore_mem>> -> memref<1x!tpu.dma_semaphore, #tpu.memory_space<semaphore_mem>>
    %5 = tpu.memref_squeeze %4 : memref<1x!tpu.dma_semaphore, #tpu.memory_space<semaphore_mem>> -> memref<!tpu.dma_semaphore, #tpu.memory_space<semaphore_mem>>
    tpu.enqueue_dma source(%arg15 : memref<128x128xbf16, #tpu.memory_space<any>>) target(%arg20 : memref<128x128xbf16, #tpu.memory_space<vmem>>) target_semaphore(%5 : memref<!tpu.dma_semaphore, #tpu.memory_space<semaphore_mem>>)
    %c0 = arith.constant 0 : index
    %c0_0 = arith.constant 0 : index
    %6 = vector.load %arg0[%c0, %c0_0] : memref<8x384xf32, #tpu.memory_space<vmem>>, vector<8x384xf32>
    %7 = arith.truncf %6 : vector<8x384xf32> to vector<8x384xbf16>
    %c0_1 = arith.constant 0 : index
    %c0_2 = arith.constant 0 : index
    %8 = vector.load %arg1[%c0_1, %c0_2] : memref<384x128xbf16, #tpu.memory_space<vmem>>, vector<384x128xbf16>
    %cst = arith.constant dense<0.000000e+00> : vector<8x128xf32>
    %9 = tpu.matmul %7, %8, %cst {dimension_numbers = #tpu.dot_dimension_numbers<[1], [0], [0], [1], [0, 0, 1, 1], [], []>} : vector<8x384xbf16>, vector<384x128xbf16>, vector<8x128xf32> -> vector<8x128xf32>
    %c0_3 = arith.constant 0 : index
    %c0_4 = arith.constant 0 : index
    %10 = vector.load %arg2[%c0_3, %c0_4] : memref<1x128xf32, #tpu.memory_space<vmem>>, vector<1x128xf32>
    %11 = vector.broadcast %10 : vector<1x128xf32> to vector<8x128xf32>
    %12 = arith.addf %9, %11 : vector<8x128xf32>
    %13 = arith.truncf %12 : vector<8x128xf32> to vector<8x128xbf16>
    %c0_5 = arith.constant 0 : index
    %c0_6 = arith.constant 0 : index
    %14 = vector.load %arg3[%c0_5, %c0_6] : memref<128x384xbf16, #tpu.memory_space<vmem>>, vector<128x384xbf16>
    %cst_7 = arith.constant dense<0.000000e+00> : vector<8x384xf32>
    %15 = tpu.matmul %13, %14, %cst_7 {dimension_numbers = #tpu.dot_dimension_numbers<[1], [0], [0], [1], [0, 0, 1, 1], [], []>} : vector<8x128xbf16>, vector<128x384xbf16>, vector<8x384xf32> -> vector<8x384xf32>
    %c0_8 = arith.constant 0 : index
    %c0_9 = arith.constant 0 : index
    %16 = vector.load %arg4[%c0_8, %c0_9] : memref<1x384xf32, #tpu.memory_space<vmem>>, vector<1x384xf32>
    %17 = vector.broadcast %16 : vector<1x384xf32> to vector<8x384xf32>
    %18 = arith.addf %15, %17 : vector<8x384xf32>
    %19 = vector.extract_strided_slice %18 {offsets = [0, 0], sizes = [8, 128], strides = [1, 1]} : vector<8x384xf32> to vector<8x128xf32>
    %20 = vector.extract_strided_slice %18 {offsets = [0, 128], sizes = [8, 128], strides = [1, 1]} : vector<8x384xf32> to vector<8x128xf32>
    %21 = vector.extract_strided_slice %18 {offsets = [0, 256], sizes = [8, 128], strides = [1, 1]} : vector<8x384xf32> to vector<8x128xf32>
    %cst_10 = arith.constant 0.000000e+00 : f32
    %22 = vector.broadcast %cst_10 : f32 to vector<8x128xf32>
    %23 = vector.extract_strided_slice %19 {offsets = [0, 0], sizes = [8, 16], strides = [1, 1]} : vector<8x128xf32> to vector<8x16xf32>
    %24 = vector.extract_strided_slice %20 {offsets = [0, 0], sizes = [8, 16], strides = [1, 1]} : vector<8x128xf32> to vector<8x16xf32>
    %25 = vector.extract_strided_slice %21 {offsets = [0, 0], sizes = [8, 16], strides = [1, 1]} : vector<8x128xf32> to vector<8x16xf32>
    %26 = tpu.transpose %24, [1, 0] : vector<8x16xf32> -> vector<16x8xf32>
    %cst_11 = arith.constant dense<0.000000e+00> : vector<8x8xf32>
    %27 = tpu.matmul %23, %26, %cst_11 {dimension_numbers = #tpu.dot_dimension_numbers<[1], [0], [0], [1], [0, 0, 1, 1], [], []>} : vector<8x16xf32>, vector<16x8xf32>, vector<8x8xf32> -> vector<8x8xf32>
    %cst_12 = arith.constant 2.500000e-01 : f32
    %28 = vector.broadcast %cst_12 : f32 to vector<8x8xf32>
    %29 = arith.mulf %27, %28 : vector<8x8xf32>
    %cst_13 = arith.constant dense<0xFF800000> : vector<8xf32>
    %30 = vector.multi_reduction <maximumf>, %29, %cst_13 [1] : vector<8x8xf32> to vector<8xf32>
    %31 = vector.shape_cast %30 : vector<8xf32> to vector<8x1xf32>
    %32 = vector.broadcast %31 : vector<8x1xf32> to vector<8x8xf32>
    %33 = arith.subf %29, %32 : vector<8x8xf32>
    %34 = math.exp %33 : vector<8x8xf32>
    %cst_14 = arith.constant dense<0.000000e+00> : vector<8xf32>
    %35 = vector.multi_reduction <add>, %34, %cst_14 [1] : vector<8x8xf32> to vector<8xf32>
    %36 = vector.shape_cast %35 : vector<8xf32> to vector<8x1xf32>
    %37 = tpu.reciprocal %36 {approx = true} : vector<8x1xf32> -> vector<8x1xf32>
    %38 = vector.broadcast %37 : vector<8x1xf32> to vector<8x8xf32>
    %39 = arith.mulf %34, %38 : vector<8x8xf32>
    %cst_15 = arith.constant dense<0.000000e+00> : vector<8x16xf32>
    %40 = tpu.matmul %39, %25, %cst_15 {dimension_numbers = #tpu.dot_dimension_numbers<[1], [0], [0], [1], [0, 0, 1, 1], [], []>} : vector<8x8xf32>, vector<8x16xf32>, vector<8x16xf32> -> vector<8x16xf32>
    %41 = arith.truncf %40 : vector<8x16xf32> to vector<8x16xbf16>
    %c0_16 = arith.constant 0 : index
    %c0_17 = arith.constant 0 : index
    %42 = vector.load %arg5[%c0_16, %c0_17] : memref<128x128xbf16, #tpu.memory_space<vmem>>, vector<16x128xbf16>
    %cst_18 = arith.constant dense<0.000000e+00> : vector<8x128xf32>
    %43 = tpu.matmul %41, %42, %cst_18 {dimension_numbers = #tpu.dot_dimension_numbers<[1], [0], [0], [1], [0, 0, 1, 1], [], []>} : vector<8x16xbf16>, vector<16x128xbf16>, vector<8x128xf32> -> vector<8x128xf32>
    %44 = arith.addf %22, %43 : vector<8x128xf32>
    %45 = vector.extract_strided_slice %19 {offsets = [0, 16], sizes = [8, 16], strides = [1, 1]} : vector<8x128xf32> to vector<8x16xf32>
    %46 = vector.extract_strided_slice %20 {offsets = [0, 16], sizes = [8, 16], strides = [1, 1]} : vector<8x128xf32> to vector<8x16xf32>
    %47 = vector.extract_strided_slice %21 {offsets = [0, 16], sizes = [8, 16], strides = [1, 1]} : vector<8x128xf32> to vector<8x16xf32>
    %48 = tpu.transpose %46, [1, 0] : vector<8x16xf32> -> vector<16x8xf32>
    %cst_19 = arith.constant dense<0.000000e+00> : vector<8x8xf32>
    %49 = tpu.matmul %45, %48, %cst_19 {dimension_numbers = #tpu.dot_dimension_numbers<[1], [0], [0], [1], [0, 0, 1, 1], [], []>} : vector<8x16xf32>, vector<16x8xf32>, vector<8x8xf32> -> vector<8x8xf32>
    %cst_20 = arith.constant 2.500000e-01 : f32
    %50 = vector.broadcast %cst_20 : f32 to vector<8x8xf32>
    %51 = arith.mulf %49, %50 : vector<8x8xf32>
    %cst_21 = arith.constant dense<0xFF800000> : vector<8xf32>
    %52 = vector.multi_reduction <maximumf>, %51, %cst_21 [1] : vector<8x8xf32> to vector<8xf32>
    %53 = vector.shape_cast %52 : vector<8xf32> to vector<8x1xf32>
    %54 = vector.broadcast %53 : vector<8x1xf32> to vector<8x8xf32>
    %55 = arith.subf %51, %54 : vector<8x8xf32>
    %56 = math.exp %55 : vector<8x8xf32>
    %cst_22 = arith.constant dense<0.000000e+00> : vector<8xf32>
    %57 = vector.multi_reduction <add>, %56, %cst_22 [1] : vector<8x8xf32> to vector<8xf32>
    %58 = vector.shape_cast %57 : vector<8xf32> to vector<8x1xf32>
    %59 = tpu.reciprocal %58 {approx = true} : vector<8x1xf32> -> vector<8x1xf32>
    %60 = vector.broadcast %59 : vector<8x1xf32> to vector<8x8xf32>
    %61 = arith.mulf %56, %60 : vector<8x8xf32>
    %cst_23 = arith.constant dense<0.000000e+00> : vector<8x16xf32>
    %62 = tpu.matmul %61, %47, %cst_23 {dimension_numbers = #tpu.dot_dimension_numbers<[1], [0], [0], [1], [0, 0, 1, 1], [], []>} : vector<8x8xf32>, vector<8x16xf32>, vector<8x16xf32> -> vector<8x16xf32>
    %63 = arith.truncf %62 : vector<8x16xf32> to vector<8x16xbf16>
    %c16 = arith.constant 16 : index
    %c0_24 = arith.constant 0 : index
    %64 = vector.load %arg5[%c16, %c0_24] : memref<128x128xbf16, #tpu.memory_space<vmem>>, vector<16x128xbf16>
    %cst_25 = arith.constant dense<0.000000e+00> : vector<8x128xf32>
    %65 = tpu.matmul %63, %64, %cst_25 {dimension_numbers = #tpu.dot_dimension_numbers<[1], [0], [0], [1], [0, 0, 1, 1], [], []>} : vector<8x16xbf16>, vector<16x128xbf16>, vector<8x128xf32> -> vector<8x128xf32>
    %66 = arith.addf %44, %65 : vector<8x128xf32>
    %67 = vector.extract_strided_slice %19 {offsets = [0, 32], sizes = [8, 16], strides = [1, 1]} : vector<8x128xf32> to vector<8x16xf32>
    %68 = vector.extract_strided_slice %20 {offsets = [0, 32], sizes = [8, 16], strides = [1, 1]} : vector<8x128xf32> to vector<8x16xf32>
    %69 = vector.extract_strided_slice %21 {offsets = [0, 32], sizes = [8, 16], strides = [1, 1]} : vector<8x128xf32> to vector<8x16xf32>
    %70 = tpu.transpose %68, [1, 0] : vector<8x16xf32> -> vector<16x8xf32>
    %cst_26 = arith.constant dense<0.000000e+00> : vector<8x8xf32>
    %71 = tpu.matmul %67, %70, %cst_26 {dimension_numbers = #tpu.dot_dimension_numbers<[1], [0], [0], [1], [0, 0, 1, 1], [], []>} : vector<8x16xf32>, vector<16x8xf32>, vector<8x8xf32> -> vector<8x8xf32>
    %cst_27 = arith.constant 2.500000e-01 : f32
    %72 = vector.broadcast %cst_27 : f32 to vector<8x8xf32>
    %73 = arith.mulf %71, %72 : vector<8x8xf32>
    %cst_28 = arith.constant dense<0xFF800000> : vector<8xf32>
    %74 = vector.multi_reduction <maximumf>, %73, %cst_28 [1] : vector<8x8xf32> to vector<8xf32>
    %75 = vector.shape_cast %74 : vector<8xf32> to vector<8x1xf32>
    %76 = vector.broadcast %75 : vector<8x1xf32> to vector<8x8xf32>
    %77 = arith.subf %73, %76 : vector<8x8xf32>
    %78 = math.exp %77 : vector<8x8xf32>
    %cst_29 = arith.constant dense<0.000000e+00> : vector<8xf32>
    %79 = vector.multi_reduction <add>, %78, %cst_29 [1] : vector<8x8xf32> to vector<8xf32>
    %80 = vector.shape_cast %79 : vector<8xf32> to vector<8x1xf32>
    %81 = tpu.reciprocal %80 {approx = true} : vector<8x1xf32> -> vector<8x1xf32>
    %82 = vector.broadcast %81 : vector<8x1xf32> to vector<8x8xf32>
    %83 = arith.mulf %78, %82 : vector<8x8xf32>
    %cst_30 = arith.constant dense<0.000000e+00> : vector<8x16xf32>
    %84 = tpu.matmul %83, %69, %cst_30 {dimension_numbers = #tpu.dot_dimension_numbers<[1], [0], [0], [1], [0, 0, 1, 1], [], []>} : vector<8x8xf32>, vector<8x16xf32>, vector<8x16xf32> -> vector<8x16xf32>
    %85 = arith.truncf %84 : vector<8x16xf32> to vector<8x16xbf16>
    %c32 = arith.constant 32 : index
    %c0_31 = arith.constant 0 : index
    %86 = vector.load %arg5[%c32, %c0_31] : memref<128x128xbf16, #tpu.memory_space<vmem>>, vector<16x128xbf16>
    %cst_32 = arith.constant dense<0.000000e+00> : vector<8x128xf32>
    %87 = tpu.matmul %85, %86, %cst_32 {dimension_numbers = #tpu.dot_dimension_numbers<[1], [0], [0], [1], [0, 0, 1, 1], [], []>} : vector<8x16xbf16>, vector<16x128xbf16>, vector<8x128xf32> -> vector<8x128xf32>
    %88 = arith.addf %66, %87 : vector<8x128xf32>
    %89 = vector.extract_strided_slice %19 {offsets = [0, 48], sizes = [8, 16], strides = [1, 1]} : vector<8x128xf32> to vector<8x16xf32>
    %90 = vector.extract_strided_slice %20 {offsets = [0, 48], sizes = [8, 16], strides = [1, 1]} : vector<8x128xf32> to vector<8x16xf32>
    %91 = vector.extract_strided_slice %21 {offsets = [0, 48], sizes = [8, 16], strides = [1, 1]} : vector<8x128xf32> to vector<8x16xf32>
    %92 = tpu.transpose %90, [1, 0] : vector<8x16xf32> -> vector<16x8xf32>
    %cst_33 = arith.constant dense<0.000000e+00> : vector<8x8xf32>
    %93 = tpu.matmul %89, %92, %cst_33 {dimension_numbers = #tpu.dot_dimension_numbers<[1], [0], [0], [1], [0, 0, 1, 1], [], []>} : vector<8x16xf32>, vector<16x8xf32>, vector<8x8xf32> -> vector<8x8xf32>
    %cst_34 = arith.constant 2.500000e-01 : f32
    %94 = vector.broadcast %cst_34 : f32 to vector<8x8xf32>
    %95 = arith.mulf %93, %94 : vector<8x8xf32>
    %cst_35 = arith.constant dense<0xFF800000> : vector<8xf32>
    %96 = vector.multi_reduction <maximumf>, %95, %cst_35 [1] : vector<8x8xf32> to vector<8xf32>
    %97 = vector.shape_cast %96 : vector<8xf32> to vector<8x1xf32>
    %98 = vector.broadcast %97 : vector<8x1xf32> to vector<8x8xf32>
    %99 = arith.subf %95, %98 : vector<8x8xf32>
    %100 = math.exp %99 : vector<8x8xf32>
    %cst_36 = arith.constant dense<0.000000e+00> : vector<8xf32>
    %101 = vector.multi_reduction <add>, %100, %cst_36 [1] : vector<8x8xf32> to vector<8xf32>
    %102 = vector.shape_cast %101 : vector<8xf32> to vector<8x1xf32>
    %103 = tpu.reciprocal %102 {approx = true} : vector<8x1xf32> -> vector<8x1xf32>
    %104 = vector.broadcast %103 : vector<8x1xf32> to vector<8x8xf32>
    %105 = arith.mulf %100, %104 : vector<8x8xf32>
    %cst_37 = arith.constant dense<0.000000e+00> : vector<8x16xf32>
    %106 = tpu.matmul %105, %91, %cst_37 {dimension_numbers = #tpu.dot_dimension_numbers<[1], [0], [0], [1], [0, 0, 1, 1], [], []>} : vector<8x8xf32>, vector<8x16xf32>, vector<8x16xf32> -> vector<8x16xf32>
    %107 = arith.truncf %106 : vector<8x16xf32> to vector<8x16xbf16>
    %c48 = arith.constant 48 : index
    %c0_38 = arith.constant 0 : index
    %108 = vector.load %arg5[%c48, %c0_38] : memref<128x128xbf16, #tpu.memory_space<vmem>>, vector<16x128xbf16>
    %cst_39 = arith.constant dense<0.000000e+00> : vector<8x128xf32>
    %109 = tpu.matmul %107, %108, %cst_39 {dimension_numbers = #tpu.dot_dimension_numbers<[1], [0], [0], [1], [0, 0, 1, 1], [], []>} : vector<8x16xbf16>, vector<16x128xbf16>, vector<8x128xf32> -> vector<8x128xf32>
    %110 = arith.addf %88, %109 : vector<8x128xf32>
    %111 = vector.extract_strided_slice %19 {offsets = [0, 64], sizes = [8, 16], strides = [1, 1]} : vector<8x128xf32> to vector<8x16xf32>
    %112 = vector.extract_strided_slice %20 {offsets = [0, 64], sizes = [8, 16], strides = [1, 1]} : vector<8x128xf32> to vector<8x16xf32>
    %113 = vector.extract_strided_slice %21 {offsets = [0, 64], sizes = [8, 16], strides = [1, 1]} : vector<8x128xf32> to vector<8x16xf32>
    %114 = tpu.transpose %112, [1, 0] : vector<8x16xf32> -> vector<16x8xf32>
    %cst_40 = arith.constant dense<0.000000e+00> : vector<8x8xf32>
    %115 = tpu.matmul %111, %114, %cst_40 {dimension_numbers = #tpu.dot_dimension_numbers<[1], [0], [0], [1], [0, 0, 1, 1], [], []>} : vector<8x16xf32>, vector<16x8xf32>, vector<8x8xf32> -> vector<8x8xf32>
    %cst_41 = arith.constant 2.500000e-01 : f32
    %116 = vector.broadcast %cst_41 : f32 to vector<8x8xf32>
    %117 = arith.mulf %115, %116 : vector<8x8xf32>
    %cst_42 = arith.constant dense<0xFF800000> : vector<8xf32>
    %118 = vector.multi_reduction <maximumf>, %117, %cst_42 [1] : vector<8x8xf32> to vector<8xf32>
    %119 = vector.shape_cast %118 : vector<8xf32> to vector<8x1xf32>
    %120 = vector.broadcast %119 : vector<8x1xf32> to vector<8x8xf32>
    %121 = arith.subf %117, %120 : vector<8x8xf32>
    %122 = math.exp %121 : vector<8x8xf32>
    %cst_43 = arith.constant dense<0.000000e+00> : vector<8xf32>
    %123 = vector.multi_reduction <add>, %122, %cst_43 [1] : vector<8x8xf32> to vector<8xf32>
    %124 = vector.shape_cast %123 : vector<8xf32> to vector<8x1xf32>
    %125 = tpu.reciprocal %124 {approx = true} : vector<8x1xf32> -> vector<8x1xf32>
    %126 = vector.broadcast %125 : vector<8x1xf32> to vector<8x8xf32>
    %127 = arith.mulf %122, %126 : vector<8x8xf32>
    %cst_44 = arith.constant dense<0.000000e+00> : vector<8x16xf32>
    %128 = tpu.matmul %127, %113, %cst_44 {dimension_numbers = #tpu.dot_dimension_numbers<[1], [0], [0], [1], [0, 0, 1, 1], [], []>} : vector<8x8xf32>, vector<8x16xf32>, vector<8x16xf32> -> vector<8x16xf32>
    %129 = arith.truncf %128 : vector<8x16xf32> to vector<8x16xbf16>
    %c64 = arith.constant 64 : index
    %c0_45 = arith.constant 0 : index
    %130 = vector.load %arg5[%c64, %c0_45] : memref<128x128xbf16, #tpu.memory_space<vmem>>, vector<16x128xbf16>
    %cst_46 = arith.constant dense<0.000000e+00> : vector<8x128xf32>
    %131 = tpu.matmul %129, %130, %cst_46 {dimension_numbers = #tpu.dot_dimension_numbers<[1], [0], [0], [1], [0, 0, 1, 1], [], []>} : vector<8x16xbf16>, vector<16x128xbf16>, vector<8x128xf32> -> vector<8x128xf32>
    %132 = arith.addf %110, %131 : vector<8x128xf32>
    %133 = vector.extract_strided_slice %19 {offsets = [0, 80], sizes = [8, 16], strides = [1, 1]} : vector<8x128xf32> to vector<8x16xf32>
    %134 = vector.extract_strided_slice %20 {offsets = [0, 80], sizes = [8, 16], strides = [1, 1]} : vector<8x128xf32> to vector<8x16xf32>
    %135 = vector.extract_strided_slice %21 {offsets = [0, 80], sizes = [8, 16], strides = [1, 1]} : vector<8x128xf32> to vector<8x16xf32>
    %136 = tpu.transpose %134, [1, 0] : vector<8x16xf32> -> vector<16x8xf32>
    %cst_47 = arith.constant dense<0.000000e+00> : vector<8x8xf32>
    %137 = tpu.matmul %133, %136, %cst_47 {dimension_numbers = #tpu.dot_dimension_numbers<[1], [0], [0], [1], [0, 0, 1, 1], [], []>} : vector<8x16xf32>, vector<16x8xf32>, vector<8x8xf32> -> vector<8x8xf32>
    %cst_48 = arith.constant 2.500000e-01 : f32
    %138 = vector.broadcast %cst_48 : f32 to vector<8x8xf32>
    %139 = arith.mulf %137, %138 : vector<8x8xf32>
    %cst_49 = arith.constant dense<0xFF800000> : vector<8xf32>
    %140 = vector.multi_reduction <maximumf>, %139, %cst_49 [1] : vector<8x8xf32> to vector<8xf32>
    %141 = vector.shape_cast %140 : vector<8xf32> to vector<8x1xf32>
    %142 = vector.broadcast %141 : vector<8x1xf32> to vector<8x8xf32>
    %143 = arith.subf %139, %142 : vector<8x8xf32>
    %144 = math.exp %143 : vector<8x8xf32>
    %cst_50 = arith.constant dense<0.000000e+00> : vector<8xf32>
    %145 = vector.multi_reduction <add>, %144, %cst_50 [1] : vector<8x8xf32> to vector<8xf32>
    %146 = vector.shape_cast %145 : vector<8xf32> to vector<8x1xf32>
    %147 = tpu.reciprocal %146 {approx = true} : vector<8x1xf32> -> vector<8x1xf32>
    %148 = vector.broadcast %147 : vector<8x1xf32> to vector<8x8xf32>
    %149 = arith.mulf %144, %148 : vector<8x8xf32>
    %cst_51 = arith.constant dense<0.000000e+00> : vector<8x16xf32>
    %150 = tpu.matmul %149, %135, %cst_51 {dimension_numbers = #tpu.dot_dimension_numbers<[1], [0], [0], [1], [0, 0, 1, 1], [], []>} : vector<8x8xf32>, vector<8x16xf32>, vector<8x16xf32> -> vector<8x16xf32>
    %151 = arith.truncf %150 : vector<8x16xf32> to vector<8x16xbf16>
    %c80 = arith.constant 80 : index
    %c0_52 = arith.constant 0 : index
    %152 = vector.load %arg5[%c80, %c0_52] : memref<128x128xbf16, #tpu.memory_space<vmem>>, vector<16x128xbf16>
    %cst_53 = arith.constant dense<0.000000e+00> : vector<8x128xf32>
    %153 = tpu.matmul %151, %152, %cst_53 {dimension_numbers = #tpu.dot_dimension_numbers<[1], [0], [0], [1], [0, 0, 1, 1], [], []>} : vector<8x16xbf16>, vector<16x128xbf16>, vector<8x128xf32> -> vector<8x128xf32>
    %154 = arith.addf %132, %153 : vector<8x128xf32>
    %155 = vector.extract_strided_slice %19 {offsets = [0, 96], sizes = [8, 16], strides = [1, 1]} : vector<8x128xf32> to vector<8x16xf32>
    %156 = vector.extract_strided_slice %20 {offsets = [0, 96], sizes = [8, 16], strides = [1, 1]} : vector<8x128xf32> to vector<8x16xf32>
    %157 = vector.extract_strided_slice %21 {offsets = [0, 96], sizes = [8, 16], strides = [1, 1]} : vector<8x128xf32> to vector<8x16xf32>
    %158 = tpu.transpose %156, [1, 0] : vector<8x16xf32> -> vector<16x8xf32>
    %cst_54 = arith.constant dense<0.000000e+00> : vector<8x8xf32>
    %159 = tpu.matmul %155, %158, %cst_54 {dimension_numbers = #tpu.dot_dimension_numbers<[1], [0], [0], [1], [0, 0, 1, 1], [], []>} : vector<8x16xf32>, vector<16x8xf32>, vector<8x8xf32> -> vector<8x8xf32>
    %cst_55 = arith.constant 2.500000e-01 : f32
    %160 = vector.broadcast %cst_55 : f32 to vector<8x8xf32>
    %161 = arith.mulf %159, %160 : vector<8x8xf32>
    %cst_56 = arith.constant dense<0xFF800000> : vector<8xf32>
    %162 = vector.multi_reduction <maximumf>, %161, %cst_56 [1] : vector<8x8xf32> to vector<8xf32>
    %163 = vector.shape_cast %162 : vector<8xf32> to vector<8x1xf32>
    %164 = vector.broadcast %163 : vector<8x1xf32> to vector<8x8xf32>
    %165 = arith.subf %161, %164 : vector<8x8xf32>
    %166 = math.exp %165 : vector<8x8xf32>
    %cst_57 = arith.constant dense<0.000000e+00> : vector<8xf32>
    %167 = vector.multi_reduction <add>, %166, %cst_57 [1] : vector<8x8xf32> to vector<8xf32>
    %168 = vector.shape_cast %167 : vector<8xf32> to vector<8x1xf32>
    %169 = tpu.reciprocal %168 {approx = true} : vector<8x1xf32> -> vector<8x1xf32>
    %170 = vector.broadcast %169 : vector<8x1xf32> to vector<8x8xf32>
    %171 = arith.mulf %166, %170 : vector<8x8xf32>
    %cst_58 = arith.constant dense<0.000000e+00> : vector<8x16xf32>
    %172 = tpu.matmul %171, %157, %cst_58 {dimension_numbers = #tpu.dot_dimension_numbers<[1], [0], [0], [1], [0, 0, 1, 1], [], []>} : vector<8x8xf32>, vector<8x16xf32>, vector<8x16xf32> -> vector<8x16xf32>
    %173 = arith.truncf %172 : vector<8x16xf32> to vector<8x16xbf16>
    %c96 = arith.constant 96 : index
    %c0_59 = arith.constant 0 : index
    %174 = vector.load %arg5[%c96, %c0_59] : memref<128x128xbf16, #tpu.memory_space<vmem>>, vector<16x128xbf16>
    %cst_60 = arith.constant dense<0.000000e+00> : vector<8x128xf32>
    %175 = tpu.matmul %173, %174, %cst_60 {dimension_numbers = #tpu.dot_dimension_numbers<[1], [0], [0], [1], [0, 0, 1, 1], [], []>} : vector<8x16xbf16>, vector<16x128xbf16>, vector<8x128xf32> -> vector<8x128xf32>
    %176 = arith.addf %154, %175 : vector<8x128xf32>
    %177 = vector.extract_strided_slice %19 {offsets = [0, 112], sizes = [8, 16], strides = [1, 1]} : vector<8x128xf32> to vector<8x16xf32>
    %178 = vector.extract_strided_slice %20 {offsets = [0, 112], sizes = [8, 16], strides = [1, 1]} : vector<8x128xf32> to vector<8x16xf32>
    %179 = vector.extract_strided_slice %21 {offsets = [0, 112], sizes = [8, 16], strides = [1, 1]} : vector<8x128xf32> to vector<8x16xf32>
    %180 = tpu.transpose %178, [1, 0] : vector<8x16xf32> -> vector<16x8xf32>
    %cst_61 = arith.constant dense<0.000000e+00> : vector<8x8xf32>
    %181 = tpu.matmul %177, %180, %cst_61 {dimension_numbers = #tpu.dot_dimension_numbers<[1], [0], [0], [1], [0, 0, 1, 1], [], []>} : vector<8x16xf32>, vector<16x8xf32>, vector<8x8xf32> -> vector<8x8xf32>
    %cst_62 = arith.constant 2.500000e-01 : f32
    %182 = vector.broadcast %cst_62 : f32 to vector<8x8xf32>
    %183 = arith.mulf %181, %182 : vector<8x8xf32>
    %cst_63 = arith.constant dense<0xFF800000> : vector<8xf32>
    %184 = vector.multi_reduction <maximumf>, %183, %cst_63 [1] : vector<8x8xf32> to vector<8xf32>
    %185 = vector.shape_cast %184 : vector<8xf32> to vector<8x1xf32>
    %186 = vector.broadcast %185 : vector<8x1xf32> to vector<8x8xf32>
    %187 = arith.subf %183, %186 : vector<8x8xf32>
    %188 = math.exp %187 : vector<8x8xf32>
    %cst_64 = arith.constant dense<0.000000e+00> : vector<8xf32>
    %189 = vector.multi_reduction <add>, %188, %cst_64 [1] : vector<8x8xf32> to vector<8xf32>
    %190 = vector.shape_cast %189 : vector<8xf32> to vector<8x1xf32>
    %191 = tpu.reciprocal %190 {approx = true} : vector<8x1xf32> -> vector<8x1xf32>
    %192 = vector.broadcast %191 : vector<8x1xf32> to vector<8x8xf32>
    %193 = arith.mulf %188, %192 : vector<8x8xf32>
    %cst_65 = arith.constant dense<0.000000e+00> : vector<8x16xf32>
    %194 = tpu.matmul %193, %179, %cst_65 {dimension_numbers = #tpu.dot_dimension_numbers<[1], [0], [0], [1], [0, 0, 1, 1], [], []>} : vector<8x8xf32>, vector<8x16xf32>, vector<8x16xf32> -> vector<8x16xf32>
    %195 = arith.truncf %194 : vector<8x16xf32> to vector<8x16xbf16>
    %c112 = arith.constant 112 : index
    %c0_66 = arith.constant 0 : index
    %196 = vector.load %arg5[%c112, %c0_66] : memref<128x128xbf16, #tpu.memory_space<vmem>>, vector<16x128xbf16>
    %cst_67 = arith.constant dense<0.000000e+00> : vector<8x128xf32>
    %197 = tpu.matmul %195, %196, %cst_67 {dimension_numbers = #tpu.dot_dimension_numbers<[1], [0], [0], [1], [0, 0, 1, 1], [], []>} : vector<8x16xbf16>, vector<16x128xbf16>, vector<8x128xf32> -> vector<8x128xf32>
    %198 = arith.addf %176, %197 : vector<8x128xf32>
    %c0_68 = arith.constant 0 : index
    %c0_69 = arith.constant 0 : index
    %199 = vector.load %arg6[%c0_68, %c0_69] : memref<1x128xf32, #tpu.memory_space<vmem>>, vector<1x128xf32>
    %200 = vector.broadcast %199 : vector<1x128xf32> to vector<8x128xf32>
    %201 = arith.addf %198, %200 : vector<8x128xf32>
    %202 = arith.addf %12, %201 : vector<8x128xf32>
    %c0_70 = arith.constant 0 : index
    %c0_71 = arith.constant 0 : index
    %203 = vector.load %arg7[%c0_70, %c0_71] : memref<1x128xf32, #tpu.memory_space<vmem>>, vector<1x128xf32>
    %c0_72 = arith.constant 0 : index
    %c0_73 = arith.constant 0 : index
    %204 = vector.load %arg8[%c0_72, %c0_73] : memref<1x128xf32, #tpu.memory_space<vmem>>, vector<1x128xf32>
    %cst_74 = arith.constant dense<0.000000e+00> : vector<8xf32>
    %205 = vector.multi_reduction <add>, %202, %cst_74 [1] : vector<8x128xf32> to vector<8xf32>
    %206 = vector.shape_cast %205 : vector<8xf32> to vector<8x1xf32>
    %cst_75 = arith.constant 1.280000e+02 : f32
    %207 = vector.broadcast %cst_75 : f32 to vector<8x1xf32>
    %208 = arith.divf %206, %207 : vector<8x1xf32>
    %209 = vector.broadcast %208 : vector<8x1xf32> to vector<8x128xf32>
    %210 = arith.subf %202, %209 : vector<8x128xf32>
    %211 = arith.mulf %210, %210 : vector<8x128xf32>
    %cst_76 = arith.constant dense<0.000000e+00> : vector<8xf32>
    %212 = vector.multi_reduction <add>, %211, %cst_76 [1] : vector<8x128xf32> to vector<8xf32>
    %213 = vector.shape_cast %212 : vector<8xf32> to vector<8x1xf32>
    %cst_77 = arith.constant 1.280000e+02 : f32
    %214 = vector.broadcast %cst_77 : f32 to vector<8x1xf32>
    %215 = arith.divf %213, %214 : vector<8x1xf32>
    %216 = vector.broadcast %208 : vector<8x1xf32> to vector<8x128xf32>
    %217 = arith.subf %202, %216 : vector<8x128xf32>
    %cst_78 = arith.constant 9.99999974E-6 : f32
    %218 = vector.broadcast %cst_78 : f32 to vector<8x1xf32>
    %219 = arith.addf %215, %218 : vector<8x1xf32>
    %220 = math.rsqrt %219 : vector<8x1xf32>
    %221 = vector.broadcast %220 : vector<8x1xf32> to vector<8x128xf32>
    %222 = arith.mulf %217, %221 : vector<8x128xf32>
    %223 = vector.broadcast %203 : vector<1x128xf32> to vector<8x128xf32>
    %224 = arith.mulf %222, %223 : vector<8x128xf32>
    %225 = vector.broadcast %204 : vector<1x128xf32> to vector<8x128xf32>
    %226 = arith.addf %224, %225 : vector<8x128xf32>
    %c0_i32_79 = arith.constant 0 : i32
    %227 = tpu.memref_slice %arg21[%c0_i32_79] : memref<3x!tpu.dma_semaphore, #tpu.memory_space<semaphore_mem>> -> memref<1x!tpu.dma_semaphore, #tpu.memory_space<semaphore_mem>>
    %228 = tpu.memref_squeeze %227 : memref<1x!tpu.dma_semaphore, #tpu.memory_space<semaphore_mem>> -> memref<!tpu.dma_semaphore, #tpu.memory_space<semaphore_mem>>
    tpu.wait_dma2 semaphore(%228 : memref<!tpu.dma_semaphore, #tpu.memory_space<semaphore_mem>>) src(%arg9 : memref<128x2048xbf16, #tpu.memory_space<any>>) dst(%arg18 : memref<128x2048xbf16, #tpu.memory_space<vmem>>)
    %229 = arith.truncf %226 : vector<8x128xf32> to vector<8x128xbf16>
    %c0_80 = arith.constant 0 : index
    %c0_81 = arith.constant 0 : index
    %230 = vector.load %arg18[%c0_80, %c0_81] : memref<128x2048xbf16, #tpu.memory_space<vmem>>, vector<128x2048xbf16>
    %cst_82 = arith.constant dense<0.000000e+00> : vector<8x2048xf32>
    %231 = tpu.matmul %229, %230, %cst_82 {dimension_numbers = #tpu.dot_dimension_numbers<[1], [0], [0], [1], [0, 0, 1, 1], [], []>} : vector<8x128xbf16>, vector<128x2048xbf16>, vector<8x2048xf32> -> vector<8x2048xf32>
    %c0_83 = arith.constant 0 : index
    %c0_84 = arith.constant 0 : index
    %232 = vector.load %arg10[%c0_83, %c0_84] : memref<1x2048xf32, #tpu.memory_space<vmem>>, vector<1x2048xf32>
    %233 = vector.broadcast %232 : vector<1x2048xf32> to vector<8x2048xf32>
    %234 = arith.addf %231, %233 : vector<8x2048xf32>
    %cst_85 = arith.constant 0.000000e+00 : f32
    %235 = vector.broadcast %cst_85 : f32 to vector<8x2048xf32>
    %236 = arith.maximumf %234, %235 : vector<8x2048xf32>
    %c1_i32_86 = arith.constant 1 : i32
    %237 = tpu.memref_slice %arg21[%c1_i32_86] : memref<3x!tpu.dma_semaphore, #tpu.memory_space<semaphore_mem>> -> memref<1x!tpu.dma_semaphore, #tpu.memory_space<semaphore_mem>>
    %238 = tpu.memref_squeeze %237 : memref<1x!tpu.dma_semaphore, #tpu.memory_space<semaphore_mem>> -> memref<!tpu.dma_semaphore, #tpu.memory_space<semaphore_mem>>
    tpu.wait_dma2 semaphore(%238 : memref<!tpu.dma_semaphore, #tpu.memory_space<semaphore_mem>>) src(%arg11 : memref<2048x128xbf16, #tpu.memory_space<any>>) dst(%arg19 : memref<2048x128xbf16, #tpu.memory_space<vmem>>)
    %239 = arith.truncf %236 : vector<8x2048xf32> to vector<8x2048xbf16>
    %c0_87 = arith.constant 0 : index
    %c0_88 = arith.constant 0 : index
    %240 = vector.load %arg19[%c0_87, %c0_88] : memref<2048x128xbf16, #tpu.memory_space<vmem>>, vector<2048x128xbf16>
    %cst_89 = arith.constant dense<0.000000e+00> : vector<8x128xf32>
    %241 = tpu.matmul %239, %240, %cst_89 {dimension_numbers = #tpu.dot_dimension_numbers<[1], [0], [0], [1], [0, 0, 1, 1], [], []>} : vector<8x2048xbf16>, vector<2048x128xbf16>, vector<8x128xf32> -> vector<8x128xf32>
    %c0_90 = arith.constant 0 : index
    %c0_91 = arith.constant 0 : index
    %242 = vector.load %arg12[%c0_90, %c0_91] : memref<1x128xf32, #tpu.memory_space<vmem>>, vector<1x128xf32>
    %243 = vector.broadcast %242 : vector<1x128xf32> to vector<8x128xf32>
    %244 = arith.addf %241, %243 : vector<8x128xf32>
    %245 = arith.addf %226, %244 : vector<8x128xf32>
    %c0_92 = arith.constant 0 : index
    %c0_93 = arith.constant 0 : index
    %246 = vector.load %arg13[%c0_92, %c0_93] : memref<1x128xf32, #tpu.memory_space<vmem>>, vector<1x128xf32>
    %c0_94 = arith.constant 0 : index
    %c0_95 = arith.constant 0 : index
    %247 = vector.load %arg14[%c0_94, %c0_95] : memref<1x128xf32, #tpu.memory_space<vmem>>, vector<1x128xf32>
    %cst_96 = arith.constant dense<0.000000e+00> : vector<8xf32>
    %248 = vector.multi_reduction <add>, %245, %cst_96 [1] : vector<8x128xf32> to vector<8xf32>
    %249 = vector.shape_cast %248 : vector<8xf32> to vector<8x1xf32>
    %cst_97 = arith.constant 1.280000e+02 : f32
    %250 = vector.broadcast %cst_97 : f32 to vector<8x1xf32>
    %251 = arith.divf %249, %250 : vector<8x1xf32>
    %252 = vector.broadcast %251 : vector<8x1xf32> to vector<8x128xf32>
    %253 = arith.subf %245, %252 : vector<8x128xf32>
    %254 = arith.mulf %253, %253 : vector<8x128xf32>
    %cst_98 = arith.constant dense<0.000000e+00> : vector<8xf32>
    %255 = vector.multi_reduction <add>, %254, %cst_98 [1] : vector<8x128xf32> to vector<8xf32>
    %256 = vector.shape_cast %255 : vector<8xf32> to vector<8x1xf32>
    %cst_99 = arith.constant 1.280000e+02 : f32
    %257 = vector.broadcast %cst_99 : f32 to vector<8x1xf32>
    %258 = arith.divf %256, %257 : vector<8x1xf32>
    %259 = vector.broadcast %251 : vector<8x1xf32> to vector<8x128xf32>
    %260 = arith.subf %245, %259 : vector<8x128xf32>
    %cst_100 = arith.constant 9.99999974E-6 : f32
    %261 = vector.broadcast %cst_100 : f32 to vector<8x1xf32>
    %262 = arith.addf %258, %261 : vector<8x1xf32>
    %263 = math.rsqrt %262 : vector<8x1xf32>
    %264 = vector.broadcast %263 : vector<8x1xf32> to vector<8x128xf32>
    %265 = arith.mulf %260, %264 : vector<8x128xf32>
    %266 = vector.broadcast %246 : vector<1x128xf32> to vector<8x128xf32>
    %267 = arith.mulf %265, %266 : vector<8x128xf32>
    %268 = vector.broadcast %247 : vector<1x128xf32> to vector<8x128xf32>
    %269 = arith.addf %267, %268 : vector<8x128xf32>
    %c2_i32_101 = arith.constant 2 : i32
    %270 = tpu.memref_slice %arg21[%c2_i32_101] : memref<3x!tpu.dma_semaphore, #tpu.memory_space<semaphore_mem>> -> memref<1x!tpu.dma_semaphore, #tpu.memory_space<semaphore_mem>>
    %271 = tpu.memref_squeeze %270 : memref<1x!tpu.dma_semaphore, #tpu.memory_space<semaphore_mem>> -> memref<!tpu.dma_semaphore, #tpu.memory_space<semaphore_mem>>
    tpu.wait_dma2 semaphore(%271 : memref<!tpu.dma_semaphore, #tpu.memory_space<semaphore_mem>>) src(%arg15 : memref<128x128xbf16, #tpu.memory_space<any>>) dst(%arg20 : memref<128x128xbf16, #tpu.memory_space<vmem>>)
    %272 = arith.truncf %269 : vector<8x128xf32> to vector<8x128xbf16>
    %c0_102 = arith.constant 0 : index
    %c0_103 = arith.constant 0 : index
    %273 = vector.load %arg20[%c0_102, %c0_103] : memref<128x128xbf16, #tpu.memory_space<vmem>>, vector<128x128xbf16>
    %cst_104 = arith.constant dense<0.000000e+00> : vector<8x128xf32>
    %274 = tpu.matmul %272, %273, %cst_104 {dimension_numbers = #tpu.dot_dimension_numbers<[1], [0], [0], [1], [0, 0, 1, 1], [], []>} : vector<8x128xbf16>, vector<128x128xbf16>, vector<8x128xf32> -> vector<8x128xf32>
    %c0_105 = arith.constant 0 : index
    %c0_106 = arith.constant 0 : index
    %275 = vector.load %arg16[%c0_105, %c0_106] : memref<1x128xf32, #tpu.memory_space<vmem>>, vector<1x128xf32>
    %276 = vector.broadcast %275 : vector<1x128xf32> to vector<8x128xf32>
    %277 = arith.addf %274, %276 : vector<8x128xf32>
    %c0_107 = arith.constant 0 : index
    %c0_108 = arith.constant 0 : index
    %278 = vector.load %arg17[%c0_107, %c0_108] : memref<8x128xf32, #tpu.memory_space<vmem>>, vector<8x128xf32>
    tpu.vector_store %arg17[%c0_107, %c0_108], %277 {strides = array<i32>} : memref<8x128xf32, #tpu.memory_space<vmem>>, vector<8x128xf32>,
    return
  }
}

</mosaic_0001>

<bundles_post_ra>
// kernel: tpu_custom_call.1
= control target key start
LH: loop header
LB: loop body
LE: loop exit
PB: predicated region body
PF: predicated region fallthrough
CT: control target
= control target key end

     0   :  { %s6203_s0 = inlined_call_operand.hbm [shape: f32[8,384], index: 0, kind: input, shape index: {}]   ;;  %s6204_s1 = inlined_call_operand.hbm [shape: bf16[384,128], index: 1, kind: input, shape index: {}]   ;;  %s6205_s2 = inlined_call_operand.hbm [shape: f32[1,128], index: 2, kind: input, shape index: {}]   ;;  %s6206_s3 = inlined_call_operand.hbm [shape: bf16[128,384], index: 3, kind: input, shape index: {}]   ;;  %s6207_s4 = inlined_call_operand.vmem [shape: f32[1,384], index: 4, kind: input, shape index: {}]   ;;  %s6208_s5 = inlined_call_operand.hbm [shape: bf16[128,128], index: 5, kind: input, shape index: {}]   ;;  %s6209_s6 = inlined_call_operand.vmem [shape: f32[1,128], index: 6, kind: input, shape index: {}]   ;;  %s6210_s7 = inlined_call_operand.vmem [shape: f32[1,128], index: 7, kind: input, shape index: {}]   ;;  %s6211_s8 = inlined_call_operand.vmem [shape: f32[1,128], index: 8, kind: input, shape index: {}]   ;;  %s6212_s9 = inlined_call_operand.hbm [shape: bf16[128,2048], index: 9, kind: input, shape index: {}]   ;;  %s6213_s10 = inlined_call_operand.hbm [shape: f32[1,2048], index: 10, kind: input, shape index: {}]   ;;  %s6214_s11 = inlined_call_operand.hbm [shape: bf16[2048,128], index: 11, kind: input, shape index: {}]   ;;  %s6215_s12 = inlined_call_operand.vmem [shape: f32[1,128], index: 12, kind: input, shape index: {}]   ;;  %s6216_s13 = inlined_call_operand.vmem [shape: f32[1,128], index: 13, kind: input, shape index: {}]   ;;  %s6217_s14 = inlined_call_operand.vmem [shape: f32[1,128], index: 14, kind: input, shape index: {}]   ;;  %s6218_s15 = inlined_call_operand.hbm [shape: bf16[128,128], index: 15, kind: input, shape index: {}]   ;;  %s6219_s16 = inlined_call_operand.vmem [shape: f32[1,128], index: 16, kind: input, shape index: {}]   ;;  %s6220_s17 = inlined_call_operand.hbm [shape: f32[8,128], index: 17, kind: output, shape index: {}]  }
   0x1   :  { %6223 = sst [smem:[#allocation34_spill]] %s6203_s0 }
   0x2   :  { %6224 = sst [smem:[#allocation35_spill]] %s6204_s1 }
   0x3   :  { %6225 = sst [smem:[#allocation36_spill]] %s6219_s16 }
   0x4   :  { %6226 = sst [smem:[#allocation37_spill]] %s6220_s17 }
   0x5   :  { %22 = vsyncpa [#allocation7], 0 }
   0x6   :  { %23 = vsyncpa [#allocation10], 0 }
   0x7   :  { %24 = vsyncpa [#allocation13], 0 }
   0x8   :  { %25 = vsyncpa [#allocation16], 0  ;;  %s6227_s26 = sld [smem:[#allocation35_spill]] }
   0xe   :  { %s42_s27 = sshll.u32 %s6227_s26, 4  ;;  %s43_s27 = int_to_ptr.hbm [resolvable:$true] %s42_s27 }
   0xf   :  { %26 = vsyncpa [#allocation8], 0  ;;  %s5809_s28 = smov [#allocation9]   ;;  %s66_s18 = sshll.u32 %s6206_s3, 4  ;;  %s67_s18 = int_to_ptr.hbm [resolvable:$true] %s66_s18 }
  0x10   :  { %s44_s29 = sshll.u32 %s5809_s28, 4  ;;  %s6221_s19 = smov 64   ;;  %s45_s29 = int_to_ptr.vmem [resolvable:$true] %s44_s29 }
  0x11   :  { %s5811_s1 = smov 4   ;;  %s5812_s20 = smov [#allocation12]  }
  0x12   :  { %50 = dma.hbm_to_vmem [thread:$0]  %s43_s27, 3072, %s45_s29, [#allocation10], %s6221_s19, %s6221_s19, %s5811_s1  }
  0x13   :  { %s68_s21 = sshll.u32 %s5812_s20, 4  ;;  %s5813_s22 = smov 192   ;;  %s69_s21 = int_to_ptr.vmem [resolvable:$true] %s68_s21 }
  0x14   :  { %s5814_s23 = smov 12   ;;  %s6228_s26 = sld [smem:[#allocation34_spill]] }
  0x15   :  { %74 = dma.hbm_to_vmem [thread:$0]  %s67_s18, 3072, %s69_s21, [#allocation13], %s5813_s22, %s5813_s22, %s5814_s23  }
  0x16   :  { %s5815_s0 = smov [#allocation6]   ;;  %s56_s16 = sshll.u32 %s6205_s2, 4  ;;  %s57_s16 = int_to_ptr.hbm [resolvable:$true] %s56_s16 }
  0x17   :  { %s34_s3 = sshll.u32 %s5815_s0, 4  ;;  %s5816_s27 = smov [#allocation11]   ;;  %s35_s3 = int_to_ptr.vmem [resolvable:$true] %s34_s3 }
  0x18   :  { %s58_s29 = sshll.u32 %s5816_s27, 4  ;;  %s81_s18 = sshll.u32 %s6208_s5, 4  ;;  %s59_s29 = int_to_ptr.vmem [resolvable:$true] %s58_s29  ;;  %s82_s18 = int_to_ptr.hbm [resolvable:$true] %s81_s18 }
  0x19   :  { %61 = dma.hbm_to_vmem [thread:$0]  %s57_s16, 16, %s59_s29, [#allocation10]  }
  0x1a   :  { %s32_s28 = sshll.u32 %s6228_s26, 4  ;;  %s101_s23 = sshll.u32 %s6213_s10, 4  ;;  %s33_s28 = int_to_ptr.hbm [resolvable:$true] %s32_s28  ;;  %s102_s23 = int_to_ptr.hbm [resolvable:$true] %s101_s23 }
  0x1b   :  { %37 = dma.hbm_to_vmem [thread:$0]  %s33_s28, 384, %s35_s3, [#allocation7]  }
  0x1c   :  { %s5817_s24 = smov [#allocation14]   ;;  %s6229_s2 = smov 64  }
  0x1d   :  { %s83_s25 = sshll.u32 %s5817_s24, 4  ;;  %s5818_s17 = smov [#allocation15]   ;;  %s84_s25 = int_to_ptr.vmem [resolvable:$true] %s83_s25 }
  0x1e   :  { %89 = dma.hbm_to_vmem [thread:$0]  %s82_s18, 1024, %s84_s25, [#allocation13], %s6229_s2, %s6229_s2, %s5811_s1  }
  0x1f   :  { %s103_s26 = sshll.u32 %s5818_s17, 4  ;;  %s104_s26 = int_to_ptr.vmem [resolvable:$true] %s103_s26 }
  0x20   :  { %106 = dma.hbm_to_vmem [thread:$0]  %s102_s23, 256, %s104_s26, [#allocation16]  }
  0x21   :  { %5793 = dma.done.wait [#allocation7], 384  }
  0x22   :  { %5794 = vsyncadd [#allocation7], 4294966912 }
  0x23   :  { %5795 = dma.done.wait [#allocation10], 3088  }
  0x24   :  { %5796 = vsyncadd [#allocation10], 4294964208 }
  0x25   :  { %5797 = dma.done.wait [#allocation13], 4096  }
  0x26   :  { %5798 = vsyncadd [#allocation13], 4294963200 }
  0x27   :  { %5799 = dma.done.wait [#allocation16], 256  }
  0x28   :  { %5800 = vsyncadd [#allocation16], 4294967040  ;;  %v5173_v0 = vld [vmem:[#allocation9 + $0x38] sm:$0xff]  ;;  %v5172_v3 = vld [vmem:[#allocation9 + $0x30] sm:$0xff]  ;;  %vm630_vm0 = vcmask 130048   ;;  %s5819_s16 = smov 112  }
  0x29   :  { %v5181_v1 = vld [vmem:[#allocation9 + $0x78] sm:$0xff]  ;;  %383 = vmatpush.bf16.msra.mxu0 %v5173_v0  ;;  %v5180_v4 = vld [vmem:[#allocation9 + $0x70] sm:$0xff]  ;;  %v5171_v6 = vld [vmem:[#allocation9 + $0x28] sm:$0xff]  ;;  %s5821_s19 = smov 80   ;;  %s5822_s1 = smov 48   ;;  %vm658_vm1 = vcmask 64512  }
  0x2a   :  { %v5189_v2 = vld [vmem:[#allocation9 + $0xb8] sm:$0xff]  ;;  %396 = vmatpush.bf16.msra.mxu1 %v5181_v1  ;;  %v5188_v5 = vld [vmem:[#allocation9 + $0xb0] sm:$0xff]  ;;  %v5179_v7 = vld [vmem:[#allocation9 + $0x68] sm:$0xff]  ;;  %s5823_s28 = smov 16   ;;  %s5824_s0 = smov 32  }
  0x2b   :  { %409 = vmatpush.bf16.msra.mxu2 %v5189_v2  ;;  %v5187_v8 = vld [vmem:[#allocation9 + $0xa8] sm:$0xff]  ;;  %v5212_v10 = vld [vmem:[#allocation12 + $0xb0] sm:$0xf0]  ;;  %v5170_v11 = vld [vmem:[#allocation9 + $0x20] sm:$0xff]  ;;  %s147_s29 = sshll.u32 %s6212_s9, 4  ;;  %s5826_s20 = smov [#allocation2]   ;;  %s148_s29 = int_to_ptr.hbm [resolvable:$true] %s147_s29 }
  0x2c   :  { %v4033_v9 = vld [vmem:[#allocation12 + $0xa8] sm:$0xf]  ;;  %v5178_v12 = vld [vmem:[#allocation9 + $0x60] sm:$0xff]  ;;  %v4021_v15 = vld [vmem:[#allocation12 + $0x90] sm:$0xf]  ;;  %s149_s18 = sshll.u32 %s5826_s20, 4  ;;  %s150_s18 = int_to_ptr.vmem [resolvable:$true] %s149_s18 }
  0x2d   :  { %384 = vmatpush.bf16.msra.mxu0 %v5172_v3  ;;  %v4034_v13 = vor.u32 %v5212_v10, %v4033_v9  ;;  %v5186_v14 = vld [vmem:[#allocation9 + $0xa0] sm:$0xff]  ;;  %v4009_v18 = vld [vmem:[#allocation12 + $0x78] sm:$0xf]  ;;  %v5203_v25 = vld [vmem:[#allocation12 + $0x68] sm:$0xf0]  ;;  %s161_s23 = sshll.u32 %s6214_s11, 4  ;;  %s162_s23 = int_to_ptr.hbm [resolvable:$true] %s161_s23 }
  0x2e   :  { %397 = vmatpush.bf16.msra.mxu1 %v5180_v4  ;;  %v5209_v16 = vld [vmem:[#allocation12 + $0x98] sm:$0xf0]  ;;  %v5206_v19 = vld [vmem:[#allocation12 + $0x80] sm:$0xf0]  ;;  %v3997_v24 = vld [vmem:[#allocation12 + $0x60] sm:$0xf] }
  0x2f   :  { %410 = vmatpush.bf16.msra.mxu2 %v5188_v5  ;;  %591 = vmatpush.bf16.msra.mxu3 %v4034_v13  ;;  %v4022_v17 = vor.u32 %v5209_v16, %v4021_v15  ;;  %v5169_v20 = vld [vmem:[#allocation9 + $0x18] sm:$0xff]  ;;  %v4010_v23 = vor.u32 %v5206_v19, %v4009_v18  ;;  %v5168_v26 = vld [vmem:[#allocation9 + $0x10] sm:$0xff]  ;;  %v3998_v29 = vor.u32 %v5203_v25, %v3997_v24  ;;  %v3985_v30 = vld [vmem:[#allocation12 + $0x48] sm:$0xf]  ;;  %152 = dma.hbm_to_vmem [thread:$0]  %s148_s29, 16384, %s150_s18, [#allocation5] }
  0x30   :  { %v5177_v21 = vld [vmem:[#allocation9 + $0x58] sm:$0xff]  ;;  %v5176_v27 = vld [vmem:[#allocation9 + $0x50] sm:$0xff]  ;;  %v5167_v32 = vld [vmem:[#allocation9 + $0x8] sm:$0xff]  ;;  %s5827_s24 = smov [#allocation3]   ;;  %s175_s26 = sshll.u32 %s6218_s15, 4  ;;  %s176_s26 = int_to_ptr.hbm [resolvable:$true] %s175_s26 }
  0x31   :  { %385 = vmatpush.bf16.msra.mxu0 %v5171_v6  ;;  %v5185_v22 = vld [vmem:[#allocation9 + $0x98] sm:$0xff]  ;;  %v5184_v28 = vld [vmem:[#allocation9 + $0x90] sm:$0xff]  ;;  %v5175_v33 = vld [vmem:[#allocation9 + $0x48] sm:$0xff]  ;;  %s163_s25 = sshll.u32 %s5827_s24, 4  ;;  %s5828_s9 = smov [#allocation4]   ;;  %s164_s25 = int_to_ptr.vmem [resolvable:$true] %s163_s25 }
  0x32   :  { %398 = vmatpush.bf16.msra.mxu1 %v5179_v7  ;;  %v5200_v31 = vld [vmem:[#allocation12 + $0x50] sm:$0xf0]  ;;  %v5183_v34 = vld [vmem:[#allocation9 + $0x88] sm:$0xff]  ;;  %v4035_v36 = vld [vmem:[#allocation12 + $0xb4] sm:$0xf0]  ;;  %s177_s5 = sshll.u32 %s5828_s9, 4  ;;  %s178_s5 = int_to_ptr.vmem [resolvable:$true] %s177_s5 }
  0x33   :  { %411 = vmatpush.bf16.msra.mxu2 %v5187_v8  ;;  %592 = vmatpush.bf16.msra.mxu3 %v4022_v17  ;;  %v5211_v35 = vld [vmem:[#allocation12 + $0xac] sm:$0xf]  ;;  %v3986_v37 = vor.u32 %v5200_v31, %v3985_v30  ;;  %v5166_v38 = vld [vmem:[#allocation9] sm:$0xff]  ;;  %v4041_v39 = vld [vmem:[#allocation12 + $0xb0] sm:$0xf] }
  0x34   :  { %v5213_v40 = vld [vmem:[#allocation12 + $0xb8] sm:$0xf0]  ;;  %v181_v42 = vld [vmem:[#allocation6] sm:$0xff]  ;;  %v182_v43 = vld [vmem:[#allocation6 + $0x8] sm:$0xff]  ;;  %v4038_v46 = vor.u32 %v5211_v35, %v4035_v36  ;;  %166 = dma.hbm_to_vmem [thread:$0]  %s162_s23, 16384, %s164_s25, [#allocation5 + $0x1] }
  0x35   :  { %386 = vmatpush.bf16.msra.mxu0 %v5170_v11  ;;  %v5174_v41 = vld [vmem:[#allocation9 + $0x40] sm:$0xff]  ;;  %v183_v45 = vld [vmem:[#allocation6 + $0x10] sm:$0xff]  ;;  %v4042_v47 = vor.u32 %v5213_v40, %v4041_v39  ;;  %v184_v50 = vpack.c.bf16 %v181_v42, %v181_v42  ;;  %v185_v51 = vpack.c.bf16 %v182_v43, %v182_v43  ;;  %v4011_v58 = vld [vmem:[#allocation12 + $0x84] sm:$0xf0]  ;;  %180 = dma.hbm_to_vmem [thread:$0]  %s176_s26, 1024, %s178_s5, [#allocation5 + $0x2] }
  0x36   :  { %399 = vmatpush.bf16.msra.mxu1 %v5178_v12  ;;  %v5182_v44 = vld [vmem:[#allocation9 + $0x80] sm:$0xff]  ;;  %v5208_v48 = vld [vmem:[#allocation12 + $0x94] sm:$0xf]  ;;  %v4029_v52 = vld [vmem:[#allocation12 + $0x98] sm:$0xf]  ;;  %v186_v54 = vpack.c.bf16 %v183_v45, %v183_v45 }
  0x37   :  { %412 = vmatpush.bf16.msra.mxu2 %v5186_v14  ;;  %593 = vmatpush.bf16.msra.mxu3 %v4010_v23  ;;  %v4023_v49 = vld [vmem:[#allocation12 + $0x9c] sm:$0xf0]  ;;  %v5210_v53 = vld [vmem:[#allocation12 + $0xa0] sm:$0xf0]  ;;  %v5205_v57 = vld [vmem:[#allocation12 + $0x7c] sm:$0xf] }
  0x38   :  { %v4026_v55 = vor.u32 %v5208_v48, %v4023_v49  ;;  %v4030_v56 = vor.u32 %v5210_v53, %v4029_v52  ;;  %v4017_v59 = vld [vmem:[#allocation12 + $0x80] sm:$0xf]  ;;  %v5207_v60 = vld [vmem:[#allocation12 + $0x88] sm:$0xf0]  ;;  %v4014_v61 = vor.u32 %v5205_v57, %v4011_v58  ;;  %v5202_v63 = vld [vmem:[#allocation12 + $0x64] sm:$0xf] }
  0x39   :  { %387 = vmatpush.bf16.msra.mxu0 %v5169_v20  ;;  %v4018_v62 = vor.u32 %v5207_v60, %v4017_v59  ;;  %v3999_v0 = vld [vmem:[#allocation12 + $0x6c] sm:$0xf0]  ;;  %v4005_v1 = vld [vmem:[#allocation12 + $0x68] sm:$0xf]  ;;  %v5204_v2 = vld [vmem:[#allocation12 + $0x70] sm:$0xf0] }
  0x3a   :  { %400 = vmatpush.bf16.msra.mxu1 %v5177_v21  ;;  %v4002_v3 = vor.u32 %v5202_v63, %v3999_v0  ;;  %v4006_v4 = vor.u32 %v5204_v2, %v4005_v1  ;;  %v5199_v5 = vld [vmem:[#allocation12 + $0x4c] sm:$0xf]  ;;  %v3987_v6 = vld [vmem:[#allocation12 + $0x54] sm:$0xf0]  ;;  %v3993_v7 = vld [vmem:[#allocation12 + $0x50] sm:$0xf] }
  0x3b   :  { %413 = vmatpush.bf16.msra.mxu2 %v5185_v22  ;;  %594 = vmatpush.bf16.msra.mxu3 %v3998_v29  ;;  %v5201_v8 = vld [vmem:[#allocation12 + $0x58] sm:$0xf0]  ;;  %v3990_v9 = vor.u32 %v5199_v5, %v3987_v6  ;;  %v3973_v11 = vld [vmem:[#allocation12 + $0x30] sm:$0xf]  ;;  %v5196_v13 = vld [vmem:[#allocation12 + $0x34] sm:$0xf] }
  0x3c   :  { %v3994_v10 = vor.u32 %v5201_v8, %v3993_v7  ;;  %v5197_v12 = vld [vmem:[#allocation12 + $0x38] sm:$0xf0]  ;;  %v3975_v15 = vld [vmem:[#allocation12 + $0x3c] sm:$0xf0]  ;;  %v3981_v16 = vld [vmem:[#allocation12 + $0x38] sm:$0xf] }
  0x3d   :  { %388 = vmatpush.bf16.msra.mxu0 %v5168_v26  ;;  %v3974_v14 = vor.u32 %v5197_v12, %v3973_v11  ;;  %v5198_v17 = vld [vmem:[#allocation12 + $0x40] sm:$0xf0]  ;;  %v3978_v18 = vor.u32 %v5196_v13, %v3975_v15  ;;  %v3961_v20 = vld [vmem:[#allocation12 + $0x18] sm:$0xf]  ;;  %v5193_v22 = vld [vmem:[#allocation12 + $0x1c] sm:$0xf] }
  0x3e   :  { %401 = vmatpush.bf16.msra.mxu1 %v5176_v27  ;;  %v3982_v19 = vor.u32 %v5198_v17, %v3981_v16  ;;  %v5194_v21 = vld [vmem:[#allocation12 + $0x20] sm:$0xf0]  ;;  %v3963_v24 = vld [vmem:[#allocation12 + $0x24] sm:$0xf0]  ;;  %v3969_v25 = vld [vmem:[#allocation12 + $0x20] sm:$0xf] }
  0x3f   :  { %414 = vmatpush.bf16.msra.mxu2 %v5184_v28  ;;  %595 = vmatpush.bf16.msra.mxu3 %v3986_v37  ;;  %v3962_v23 = vor.u32 %v5194_v21, %v3961_v20  ;;  %v5195_v26 = vld [vmem:[#allocation12 + $0x28] sm:$0xf0]  ;;  %v3966_v27 = vor.u32 %v5193_v22, %v3963_v24  ;;  %v3949_v29 = vld [vmem:[#allocation12] sm:$0xf]  ;;  %v5190_v31 = vld [vmem:[#allocation12 + $0x4] sm:$0xf] }
  0x40   :  { %v3970_v28 = vor.u32 %v5195_v26, %v3969_v25  ;;  %v5191_v30 = vld [vmem:[#allocation12 + $0x8] sm:$0xf0]  ;;  %v5192_v35 = vld [vmem:[#allocation12 + $0x10] sm:$0xf0]  ;;  %v455_v49 = vld [vmem:[%s6207_s4] sm:$0x7] }
  0x41   :  { %389 = vmatpush.bf16.msra.mxu0 %v5167_v32  ;;  %v3950_v32 = vor.u32 %v5191_v30, %v3949_v29  ;;  %s5820_s4 = smov 96   ;;  %v5214_v29 = vld [vmem:[#allocation14] sm:$0xff] }
  0x42   :  { %402 = vmatpush.bf16.msra.mxu1 %v5175_v33  ;;  %v3951_v33 = vld [vmem:[#allocation12 + $0xc] sm:$0xf0] }
  0x43   :  { %415 = vmatpush.bf16.msra.mxu2 %v5183_v34  ;;  %596 = vmatpush.bf16.msra.mxu3 %v3974_v14  ;;  %v3957_v34 = vld [vmem:[#allocation12 + $0x8] sm:$0xf]  ;;  %v3954_v36 = vor.u32 %v5190_v31, %v3951_v33 }
  0x44   :  { %v3958_v37 = vor.u32 %v5192_v35, %v3957_v34 }
  0x45   :  { %390 = vmatpush.bf16.msra.mxu0 %v5166_v38  ;;  %v5507_v38 = vld [vmem:[#allocation11] ss:$0 sm:$0xff] }
  0x46   :  { %403 = vmatpush.bf16.msra.mxu1 %v5174_v41 }
  0x47   :  { %416 = vmatpush.bf16.msra.mxu2 %v5182_v44  ;;  %597 = vmatpush.bf16.msra.mxu3 %v3962_v23  ;;  %v5215_v23 = vld [vmem:[#allocation14 + $0x8] sm:$0xff] }
  0x48   :  { %391 = vmatmul.bf16.vlgmr.msra.gmra.mxu0 %v184_v50  ;;  %v458_v50 = vperm.slane %v455_v49, 1 }
  0x49   :  { %604 = vmatpush.bf16.msrb.mxu0 %v4038_v46  ;;  %404 = vmatmul.bf16.vlgmr.msra.gmra.mxu1 %v185_v51  ;;  %v459_v51 = vperm.slane %v455_v49, 2 }
  0x4a   :  { %617 = vmatpush.bf16.msrb.mxu1 %v4042_v47  ;;  %417 = vmatmul.bf16.vlgmr.msra.gmra.mxu2 %v186_v54 }
  0x4b   :  { %598 = vmatpush.bf16.msra.mxu3 %v3950_v32 }
  0x4d   :  { %605 = vmatpush.bf16.msrb.mxu0 %v4026_v55 }
  0x4e   :  { %618 = vmatpush.bf16.msrb.mxu1 %v4030_v56  ;;  %v457_v56 = vperm.slane %v455_v49, 0 }
  0x51   :  { %606 = vmatpush.bf16.msrb.mxu0 %v4014_v61 }
  0x52   :  { %619 = vmatpush.bf16.msrb.mxu1 %v4018_v62 }
  0x55   :  { %607 = vmatpush.bf16.msrb.mxu0 %v4002_v3 }
  0x56   :  { %620 = vmatpush.bf16.msrb.mxu1 %v4006_v4 }
  0x59   :  { %608 = vmatpush.bf16.msrb.mxu0 %v3990_v9 }
  0x5a   :  { %621 = vmatpush.bf16.msrb.mxu1 %v3994_v10 }
  0x5d   :  { %609 = vmatpush.bf16.msrb.mxu0 %v3978_v18 }
  0x5e   :  { %622 = vmatpush.bf16.msrb.mxu1 %v3982_v19 }
  0x61   :  { %610 = vmatpush.bf16.msrb.mxu0 %v3966_v27 }
  0x62   :  { %623 = vmatpush.bf16.msrb.mxu1 %v3970_v28 }
  0x65   :  { %611 = vmatpush.bf16.msrb.mxu0 %v3954_v36 }
  0x66   :  { %624 = vmatpush.bf16.msrb.mxu1 %v3958_v37 }
  0xc5   :  { %v392_v39 = vpop.f32.mrf.mxu0 }
  0xc6   :  { %v405_v40 = vpop.f32.mrf.mxu1  ;;  %v393_v41 = vadd.f32 %v5507_v38, %v392_v39 }
  0xc8   :  { %v406_v42 = vadd.f32 %v405_v40, %v393_v41 }
  0xcd   :  { %v418_v43 = vpop.f32.mrf.mxu2  ;;  %v394_v45 = vpop.f32.mrf.mxu0 }
  0xce   :  { %v5944_v44 = vadd.f32 %v418_v43, %v406_v42  ;;  %v407_v46 = vpop.f32.mrf.mxu1 }
  0xd0   :  { %v422_v47 = vpack.c.bf16 %v5944_v44, %v5944_v44 }
  0xd2   :  { %599 = vmatmul.bf16.vlgmr.msra.gmra.mxu3 %v422_v47  ;;  %612 = vmatmul.bf16.vlgmr.msrb.gmra.mxu0 %v422_v47 }
  0xd3   :  { %625 = vmatmul.bf16.vlgmr.msrb.gmra.mxu1 %v422_v47 }
  0xd5   :  { %v420_v48 = vpop.f32.mrf.mxu2 }
 0x14f   :  { %v613_v52 = vpop.f32.mrf.mxu0 }
 0x150   :  { %v5951_v53 = vadd.f32 %v613_v52, %v458_v50  ;;  %v626_v54 = vpop.f32.mrf.mxu1 }
 0x151   :  { %v5953_v55 = vadd.f32 %v626_v54, %v459_v51 }
 0x152   :  { %698 = vrot.lane.b32.xlu0 %v5951_v53, %s5819_s16  ;;  %4043 = vmatpush.xpose.msk.msrb.mxu2 %vm630_vm0, %v5951_v53 }
 0x153   :  { %688 = vmatpush.msrb.mxu3 %v5953_v55 }
 0x155   :  { %v600_v57 = vpop.f32.mrf.mxu3 }
 0x156   :  { %v601_v58 = vadd.f32 %v600_v57, %v457_v56 }
 0x157   :  { %v615_v59 = vpop.f32.mrf.mxu0 }
 0x158   :  { %v628_v60 = vpop.f32.mrf.mxu1  ;;  %4044 = vmatmul.msk.f32.vlgmr.msrb.gmra.mxu2 %vm630_vm0, %v601_v58 }
 0x15a   :  { %696 = vrot.lane.b32.xlu0 %v601_v58, %s5819_s16 }
 0x15d   :  { %v602_v61 = vpop.f32.mrf.mxu3 }
 0x162   :  { %737 = vrot.lane.b32.xlu0 %v5953_v55, %s5819_s16 }
 0x16a   :  { %810 = vrot.lane.b32.xlu0 %v601_v58, %s5820_s4 }
 0x172   :  { %902 = vrot.lane.b32.xlu0 %v601_v58, %s5821_s19 }
 0x17a   :  { %996 = vrot.lane.b32.xlu0 %v5951_v53, %s6229_s2 }
 0x182   :  { %1086 = vrot.lane.b32.xlu0 %v601_v58, %s5822_s1 }
 0x18a   :  { %1272 = vrot.lane.b32.xlu0 %v5951_v53, %s5823_s28 }
 0x1c4   :  { %v699_v62 = vpop.permute.xlu0 %698 }
 0x1c5   :  { %4046 = vmatpush.xpose.msk.msra.mxu2 %vm630_vm0, %v699_v62 }
 0x1cc   :  { %v697_v63 = vpop.permute.xlu0 %696 }
 0x1cd   :  { %4047 = vmatmul.msk.f32.vlgmr.msra.gmra.mxu2 %vm630_vm0, %v697_v63 }
 0x1d4   :  { %v738_v0 = vpop.permute.xlu0 %737 }
 0x1d5   :  { %758 = vmatpush.msra.mxu3 %v738_v0 }
 0x1db   :  { %v654_v1 = vpop.f32.mrf.mxu2 }
 0x1dc   :  { %v657_v2 = vmul.f32 0.25, %v654_v1  ;;  %v811_v21 = vpop.permute.xlu0 %810 }
 0x1de   :  { %v659_v3 = vsel %vm658_vm1, %v657_v2, -inf }
 0x1df   :  { %660 = vmax.xlane.f32.xlu1 %v659_v3 }
 0x1e4   :  { %v903_v39 = vpop.permute.xlu0 %902 }
 0x1ec   :  { %v997_v43 = vpop.permute.xlu0 %996 }
 0x1f4   :  { %v1087_v46 = vpop.permute.xlu0 %1086 }
 0x1fc   :  { %v1273_v48 = vpop.permute.xlu0 %1272 }
 0x250   :  { %v721_v4 = vpop.f32.mrf.mxu2 }
 0x251   :  { %v724_v5 = vmul.f32 0.25, %v721_v4 }
 0x252   :  { %v661_v6 = vpop.xlane.xlu1 %660 }
 0x253   :  { %v662_v7 = vsub.f32 %v657_v2, %v661_v6  ;;  %v725_v8 = vsel %vm658_vm1, %v724_v5, -inf }
 0x254   :  { %726 = vmax.xlane.f32.xlu1 %v725_v8 }
 0x255   :  { %v663_v9 = vmul.f32 1.442695, %v662_v7 }
 0x257   :  { %5511 = vpow2.f32 %v663_v9 }
 0x25d   :  { %v5512_v10 = vpop.eup %5511 }
 0x25e   :  { %v665_v11 = vsel %vm658_vm1, %v5512_v10, 0.0 }
 0x25f   :  { %666 = vadd.xlane.f32.xlu2 %v665_v11 }
 0x26d   :  { %812 = vrot.lane.b32.xlu1 %v5951_v53, %s5820_s4 }
 0x275   :  { %1088 = vrot.lane.b32.xlu1 %v5951_v53, %s5822_s1 }
 0x27d   :  { %1178 = vrot.lane.b32.xlu1 %v601_v58, %s5824_s0 }
 0x2c7   :  { %v727_v12 = vpop.xlane.xlu1 %726 }
 0x2c8   :  { %v728_v13 = vsub.f32 %v724_v5, %v727_v12 }
 0x2ca   :  { %v729_v14 = vmul.f32 1.442695, %v728_v13 }
 0x2cc   :  { %5513 = vpow2.f32 %v729_v14 }
 0x2d2   :  { %v5514_v15 = vpop.eup %5513  ;;  %v667_v16 = vpop.xlane.xlu2 %666 }
 0x2d3   :  { %5515 = vrcp.f32 %v667_v16  ;;  %v731_v17 = vsel %vm658_vm1, %v5514_v15, 0.0 }
 0x2d4   :  { %732 = vadd.xlane.f32.xlu2 %v731_v17 }
 0x2d9   :  { %v5516_v18 = vpop.eup %5515 }
 0x2da   :  { %v669_v19 = vmul.f32 %v5516_v18, %v5512_v10 }
 0x2dc   :  { %4045 = vmatmul.msk.f32.vlgmr.msrb.gmra.mxu3 %vm658_vm1, %v669_v19 }
 0x2dd   :  { %782 = vmatpush.bf16.msrb.mxu3 %v5215_v23 }
 0x2df   :  { %v813_v20 = vpop.permute.xlu1 %812 }
 0x2e0   :  { %4059 = vmatpush.xpose.msk.msra.mxu0 %vm630_vm0, %v813_v20 }
 0x2e3   :  { %4060 = vmatmul.msk.f32.vlgmr.msra.gmra.mxu0 %vm630_vm0, %v811_v21 }
 0x2e7   :  { %v1089_v30 = vpop.permute.xlu1 %1088 }
 0x2ec   :  { %904 = vrot.lane.b32.xlu2 %v5951_v53, %s5821_s19 }
 0x2ef   :  { %v1179_v32 = vpop.permute.xlu1 %1178 }
 0x2f4   :  { %994 = vrot.lane.b32.xlu2 %v601_v58, %s6229_s2 }
 0x2fc   :  { %1180 = vrot.lane.b32.xlu2 %v5951_v53, %s5824_s0 }
 0x304   :  { %1270 = vrot.lane.b32.xlu2 %v601_v58, %s5823_s28 }
 0x347   :  { %v733_v22 = vpop.xlane.xlu2 %732 }
 0x348   :  { %5517 = vrcp.f32 %v733_v22 }
 0x34e   :  { %v5518_v24 = vpop.eup %5517 }
 0x34f   :  { %v735_v25 = vmul.f32 %v5518_v24, %v5514_v15  ;;  %v905_v35 = vpop.permute.xlu2 %904 }
 0x351   :  { %4048 = vmatmul.msk.f32.vlgmr.msra.gmra.mxu3 %vm658_vm1, %v735_v25 }
 0x352   :  { %804 = vmatpush.bf16.msra.mxu3 %v5214_v29 }
 0x357   :  { %v995_v45 = vpop.permute.xlu2 %994 }
 0x35f   :  { %v690_v31 = vpop.f32.mrf.mxu3  ;;  %v1181_v47 = vpop.permute.xlu2 %1180 }
 0x360   :  { %v835_v26 = vpop.f32.mrf.mxu0  ;;  %v693_v42 = vpack.c.bf16 %v690_v31, %v690_v31 }
 0x361   :  { %v838_v27 = vmul.f32 0.25, %v835_v26 }
 0x363   :  { %v839_v28 = vsel %vm658_vm1, %v838_v27, -inf }
 0x364   :  { %840 = vmax.xlane.f32.xlu1 %v839_v28 }
 0x367   :  { %v1271_v49 = vpop.permute.xlu2 %1270 }
 0x3d4   :  { %v760_v33 = vpop.f32.mrf.mxu3 }
 0x3d5   :  { %v763_v34 = vpack.c.bf16 %v760_v33, %v760_v33 }
 0x3d7   :  { %4053 = vmatmul.msk.bf16.vlgmr.msrb.gmra.mxu3 %vm630_vm0, %v763_v34  ;;  %v841_v36 = vpop.xlane.xlu1 %840 }
 0x3d8   :  { %4067 = vmatpush.xpose.msk.msrb.mxu3 %vm630_vm0, %v905_v35  ;;  %v842_v37 = vsub.f32 %v838_v27, %v841_v36 }
 0x3da   :  { %v843_v38 = vmul.f32 1.442695, %v842_v37 }
 0x3dc   :  { %5519 = vpow2.f32 %v843_v38 }
 0x3e2   :  { %v5992_v40 = vpop.eup %5519 }
 0x3e3   :  { %v845_v41 = vsel %vm658_vm1, %v5992_v40, 0.0 }
 0x3e4   :  { %846 = vadd.xlane.f32.xlu1 %v845_v41 }
 0x3e7   :  { %4058 = vmatmul.msk.bf16.vlgmr.msra.gmra.mxu3 %vm630_vm0, %v693_v42 }
 0x3e8   :  { %4075 = vmatpush.xpose.msk.msra.mxu3 %vm630_vm0, %v997_v43 }
 0x3f7   :  { %4068 = vmatmul.msk.f32.vlgmr.msrb.gmra.mxu3 %vm630_vm0, %v903_v39 }
 0x3f8   :  { %4083 = vmatpush.xpose.msk.msrb.mxu3 %vm630_vm0, %v1089_v30 }
 0x3ff   :  { %4076 = vmatmul.msk.f32.vlgmr.msra.gmra.mxu3 %vm630_vm0, %v995_v45 }
 0x400   :  { %4091 = vmatpush.xpose.msk.msra.mxu3 %vm630_vm0, %v1181_v47 }
 0x407   :  { %4084 = vmatmul.msk.f32.vlgmr.msrb.gmra.mxu3 %vm630_vm0, %v1087_v46 }
 0x408   :  { %4099 = vmatpush.xpose.msk.msrb.mxu3 %vm630_vm0, %v1273_v48 }
 0x40f   :  { %4092 = vmatmul.msk.f32.vlgmr.msra.gmra.mxu3 %vm630_vm0, %v1179_v32 }
 0x417   :  { %4100 = vmatmul.msk.f32.vlgmr.msrb.gmra.mxu3 %vm630_vm0, %v1271_v49 }
 0x457   :  { %v847_v10 = vpop.xlane.xlu1 %846 }
 0x45a   :  { %v784_v50 = vpop.f32.mrf.mxu3 }
 0x462   :  { %v786_v51 = vpop.f32.mrf.mxu3 }
 0x46a   :  { %v806_v52 = vpop.f32.mrf.mxu3 }
 0x46b   :  { %v6006_v53 = vadd.f32 %v806_v52, %v784_v50 }
 0x472   :  { %v808_v54 = vpop.f32.mrf.mxu3 }
 0x47a   :  { %v927_v56 = vpop.f32.mrf.mxu3 }
 0x47b   :  { %v930_v57 = vmul.f32 0.25, %v927_v56 }
 0x47d   :  { %v931_v58 = vsel %vm658_vm1, %v930_v57, -inf }
 0x47e   :  { %932 = vmax.xlane.f32.xlu0 %v931_v58 }
 0x482   :  { %v1019_v59 = vpop.f32.mrf.mxu3 }
 0x483   :  { %v1022_v60 = vmul.f32 0.25, %v1019_v59 }
 0x485   :  { %v1023_v61 = vsel %vm658_vm1, %v1022_v60, -inf }
 0x486   :  { %1024 = vmax.xlane.f32.xlu2 %v1023_v61  ;;  %v5217_v61 = vld [vmem:[#allocation14 + $0x18] sm:$0xff] }
 0x48a   :  { %v1111_v62 = vpop.f32.mrf.mxu3 }
 0x48b   :  { %v1114_v63 = vmul.f32 0.25, %v1111_v62  ;;  %v5218_v62 = vld [vmem:[#allocation14 + $0x20] sm:$0xff] }
 0x48d   :  { %v1115_v0 = vsel %vm658_vm1, %v1114_v63, -inf }
 0x48e   :  { %1116 = vmax.xlane.f32.xlu1 %v1115_v0  ;;  %v5220_v0 = vld [vmem:[#allocation14 + $0x30] sm:$0xff] }
 0x492   :  { %v1203_v1 = vpop.f32.mrf.mxu3 }
 0x493   :  { %v1206_v2 = vmul.f32 0.25, %v1203_v1 }
 0x495   :  { %v1207_v3 = vsel %vm658_vm1, %v1206_v2, -inf }
 0x496   :  { %1208 = vmax.xlane.f32.xlu2 %v1207_v3 }
 0x49a   :  { %v1295_v4 = vpop.f32.mrf.mxu3 }
 0x49b   :  { %v1298_v5 = vmul.f32 0.25, %v1295_v4 }
 0x49d   :  { %v1299_v6 = vsel %vm658_vm1, %v1298_v5, -inf }
 0x49e   :  { %1300 = vmax.xlane.f32.xlu0 %v1299_v6 }
 0x4a7   :  { %1034 = vrot.lane.b32.xlu1 %v5953_v55, %s6229_s2 }
 0x4ae   :  { %942 = vrot.lane.b32.xlu2 %v5953_v55, %s5821_s19 }
 0x4b2   :  { %850 = vrot.lane.b32.xlu0 %v5953_v55, %s5820_s4 }
 0x4f1   :  { %v933_v7 = vpop.xlane.xlu0 %932 }
 0x4f2   :  { %v934_v8 = vsub.f32 %v930_v57, %v933_v7  ;;  %v5221_v7 = vld [vmem:[#allocation14 + $0x38] sm:$0xff] }
 0x4f4   :  { %v935_v9 = vmul.f32 1.442695, %v934_v8 }
 0x4f6   :  { %5521 = vpow2.f32 %v935_v9 }
 0x4f9   :  { %v1025_v11 = vpop.xlane.xlu2 %1024 }
 0x4fa   :  { %v1026_v12 = vsub.f32 %v1022_v60, %v1025_v11 }
 0x4fc   :  { %v5522_v13 = vpop.eup %5521  ;;  %v1027_v14 = vmul.f32 1.442695, %v1026_v12 }
 0x4fd   :  { %v937_v15 = vsel %vm658_vm1, %v5522_v13, 0.0 }
 0x4fe   :  { %5523 = vpow2.f32 %v1027_v14  ;;  %938 = vadd.xlane.f32.xlu2 %v937_v15 }
 0x501   :  { %v1117_v16 = vpop.xlane.xlu1 %1116 }
 0x502   :  { %v1118_v17 = vsub.f32 %v1114_v63, %v1117_v16  ;;  %v5219_v63 = vld [vmem:[#allocation14 + $0x28] sm:$0xff] }
 0x504   :  { %v5524_v18 = vpop.eup %5523  ;;  %v1119_v19 = vmul.f32 1.442695, %v1118_v17 }
 0x505   :  { %v1029_v20 = vsel %vm658_vm1, %v5524_v18, 0.0 }
 0x506   :  { %5525 = vpow2.f32 %v1119_v19  ;;  %1030 = vadd.xlane.f32.xlu1 %v1029_v20 }
 0x509   :  { %v1209_v21 = vpop.xlane.xlu2 %1208 }
 0x50a   :  { %v1210_v22 = vsub.f32 %v1206_v2, %v1209_v21 }
 0x50c   :  { %v5526_v23 = vpop.eup %5525  ;;  %v1211_v24 = vmul.f32 1.442695, %v1210_v22 }
 0x50d   :  { %v1121_v25 = vsel %vm658_vm1, %v5526_v23, 0.0 }
 0x50e   :  { %5527 = vpow2.f32 %v1211_v24  ;;  %1122 = vadd.xlane.f32.xlu1 %v1121_v25 }
 0x50f   :  { %5529 = vrcp.f32 %v847_v10 }
 0x511   :  { %v943_v26 = vpop.permute.xlu2 %942  ;;  %v1301_v30 = vpop.xlane.xlu0 %1300 }
 0x512   :  { %963 = vmatpush.msrb.mxu0 %v943_v26  ;;  %v1302_v34 = vsub.f32 %v1298_v5, %v1301_v30 }
 0x514   :  { %v5528_v27 = vpop.eup %5527  ;;  %v1303_v35 = vmul.f32 1.442695, %v1302_v34 }
 0x515   :  { %v1213_v28 = vsel %vm658_vm1, %v5528_v27, 0.0  ;;  %v5530_v31 = vpop.eup %5529 }
 0x516   :  { %1126 = vrot.lane.b32.xlu2 %v5953_v55, %s5822_s1  ;;  %1214 = vadd.xlane.f32.xlu0 %v1213_v28  ;;  %v849_v32 = vmul.f32 %v5530_v31, %v5992_v40  ;;  %5531 = vpow2.f32 %v1303_v35 }
 0x519   :  { %v1035_v29 = vpop.permute.xlu1 %1034 }
 0x51a   :  { %1055 = vmatpush.msra.mxu0 %v1035_v29 }
 0x51c   :  { %v5532_v36 = vpop.eup %5531 }
 0x51d   :  { %v1305_v37 = vsel %vm658_vm1, %v5532_v36, 0.0 }
 0x524   :  { %v851_v33 = vpop.permute.xlu0 %850 }
 0x525   :  { %871 = vmatpush.msra.mxu1 %v851_v33 }
 0x526   :  { %4061 = vmatmul.msk.f32.vlgmr.msra.gmra.mxu1 %vm658_vm1, %v849_v32  ;;  %v5825_v32 = vmov 128.0  }
 0x527   :  { %1218 = vrot.lane.b32.xlu1 %v5953_v55, %s5824_s0  ;;  %987 = vmatpush.bf16.msrb.mxu1 %v5217_v61 }
 0x52b   :  { %1171 = vmatpush.bf16.msra.mxu1 %v5219_v63 }
 0x52f   :  { %1310 = vrot.lane.b32.xlu1 %v5953_v55, %s5823_s28  ;;  %v5216_v55 = vld [vmem:[#allocation14 + $0x10] sm:$0xff] }
 0x530   :  { %895 = vmatpush.bf16.msrb.mxu2 %v5216_v55 }
 0x534   :  { %1079 = vmatpush.bf16.msra.mxu2 %v5218_v62 }
 0x53f   :  { %1306 = vadd.xlane.f32.xlu2 %v1305_v37 }
 0x571   :  { %v939_v38 = vpop.xlane.xlu2 %938 }
 0x572   :  { %5533 = vrcp.f32 %v939_v38 }
 0x578   :  { %v5534_v39 = vpop.eup %5533 }
 0x579   :  { %v941_v40 = vmul.f32 %v5534_v39, %v5522_v13  ;;  %v1127_v41 = vpop.permute.xlu2 %1126  ;;  %v1031_v42 = vpop.xlane.xlu1 %1030 }
 0x57a   :  { %5535 = vrcp.f32 %v1031_v42 }
 0x57b   :  { %4069 = vmatmul.msk.f32.vlgmr.msrb.gmra.mxu0 %vm658_vm1, %v941_v40 }
 0x57c   :  { %1147 = vmatpush.msrb.mxu0 %v1127_v41 }
 0x580   :  { %v5536_v43 = vpop.eup %5535 }
 0x581   :  { %v1033_v45 = vmul.f32 %v5536_v43, %v5524_v18  ;;  %v1123_v46 = vpop.xlane.xlu1 %1122 }
 0x582   :  { %5537 = vrcp.f32 %v1123_v46 }
 0x583   :  { %4077 = vmatmul.msk.f32.vlgmr.msra.gmra.mxu0 %vm658_vm1, %v1033_v45 }
 0x588   :  { %v5538_v47 = vpop.eup %5537 }
 0x589   :  { %v1125_v48 = vmul.f32 %v5538_v47, %v5526_v23  ;;  %v1215_v49 = vpop.xlane.xlu0 %1214 }
 0x58a   :  { %5539 = vrcp.f32 %v1215_v49 }
 0x58b   :  { %4085 = vmatmul.msk.f32.vlgmr.msrb.gmra.mxu0 %vm658_vm1, %v1125_v48 }
 0x590   :  { %v5540_v50 = vpop.eup %5539 }
 0x591   :  { %v1217_v51 = vmul.f32 %v5540_v50, %v5528_v27 }
 0x599   :  { %v1219_v52 = vpop.permute.xlu1 %1218 }
 0x59a   :  { %1239 = vmatpush.msra.mxu0 %v1219_v52 }
 0x59b   :  { %4093 = vmatmul.msk.f32.vlgmr.msra.gmra.mxu0 %vm658_vm1, %v1217_v51  ;;  %v5509_v51 = vld [vmem:[%s6210_s7] ss:$0 sm:$0xff] }
 0x5a1   :  { %v1311_v54 = vpop.permute.xlu1 %1310 }
 0x5a2   :  { %1331 = vmatpush.msrb.mxu0 %v1311_v54  ;;  %v5510_v54 = vld [vmem:[%s6211_s8] ss:$0 sm:$0xff] }
 0x5a3   :  { %v873_v56 = vpop.f32.mrf.mxu1 }
 0x5a4   :  { %v876_v57 = vpack.c.bf16 %v873_v56, %v873_v56 }
 0x5a6   :  { %4066 = vmatmul.msk.bf16.vlgmr.msrb.gmra.mxu2 %vm630_vm0, %v876_v57 }
 0x5a7   :  { %1263 = vmatpush.bf16.msrb.mxu2 %v5220_v0 }
 0x5b2   :  { %v1307_v58 = vpop.xlane.xlu2 %1306 }
 0x5b3   :  { %5541 = vrcp.f32 %v1307_v58 }
 0x5b4   :  { %5543 = vrcp.f32 %v5825_v32 }
 0x5b9   :  { %v5542_v59 = vpop.eup %5541 }
 0x5ba   :  { %v1309_v60 = vmul.f32 %v5542_v59, %v5532_v36  ;;  %v5544_v33 = vpop.eup %5543 }
 0x5bb   :  { %v1373_v34 = vmul.f32 128.0, %v5544_v33  ;;  %vm1377_vm2 = vweird.f32 %v5544_v33 }
 0x5bc   :  { %4101 = vmatmul.msk.f32.vlgmr.msrb.gmra.mxu0 %vm658_vm1, %v1309_v60 }
 0x5bd   :  { %v1374_v35 = vsub.f32 1.0, %v1373_v34 }
 0x5bf   :  { %v1375_v36 = vmul.f32 %v5544_v33, %v1374_v35 }
 0x5c1   :  { %v1376_v37 = vadd.f32 %v5544_v33, %v1375_v36 }
 0x5c3   :  { %v6048_v38 = vsel %vm1377_vm2, %v5544_v33, %v1376_v37 }
 0x5f8   :  { %v965_v1 = vpop.f32.mrf.mxu0 }
 0x5f9   :  { %v968_v2 = vpack.c.bf16 %v965_v1, %v965_v1 }
 0x5fb   :  { %4074 = vmatmul.msk.bf16.vlgmr.msrb.gmra.mxu1 %vm630_vm0, %v968_v2 }
 0x5fc   :  { %1355 = vmatpush.bf16.msrb.mxu1 %v5221_v7 }
 0x600   :  { %v1057_v3 = vpop.f32.mrf.mxu0 }
 0x601   :  { %v1060_v4 = vpack.c.bf16 %v1057_v3, %v1057_v3 }
 0x603   :  { %4082 = vmatmul.msk.bf16.vlgmr.msra.gmra.mxu2 %vm630_vm0, %v1060_v4 }
 0x608   :  { %v1149_v5 = vpop.f32.mrf.mxu0 }
 0x609   :  { %v1152_v6 = vpack.c.bf16 %v1149_v5, %v1149_v5 }
 0x60b   :  { %4090 = vmatmul.msk.bf16.vlgmr.msra.gmra.mxu1 %vm630_vm0, %v1152_v6 }
 0x618   :  { %v1241_v8 = vpop.f32.mrf.mxu0 }
 0x619   :  { %v1244_v9 = vpack.c.bf16 %v1241_v8, %v1241_v8 }
 0x61b   :  { %4098 = vmatmul.msk.bf16.vlgmr.msrb.gmra.mxu2 %vm630_vm0, %v1244_v9 }
 0x629   :  { %v897_v10 = vpop.f32.mrf.mxu2 }
 0x62a   :  { %v901_v11 = vadd.f32 %v897_v10, %v6006_v53  ;;  %v5508_v53 = vld [vmem:[%s6209_s6] ss:$0 sm:$0xff] }
 0x631   :  { %v899_v12 = vpop.f32.mrf.mxu2 }
 0x639   :  { %v1333_v13 = vpop.f32.mrf.mxu0 }
 0x63a   :  { %v1336_v14 = vpack.c.bf16 %v1333_v13, %v1333_v13 }
 0x63c   :  { %4106 = vmatmul.msk.bf16.vlgmr.msrb.gmra.mxu1 %vm630_vm0, %v1336_v14 }
 0x678   :  { %v989_v15 = vpop.f32.mrf.mxu1 }
 0x679   :  { %v993_v23 = vadd.f32 %v989_v15, %v901_v11 }
 0x680   :  { %v991_v16 = vpop.f32.mrf.mxu1 }
 0x686   :  { %v1081_v17 = vpop.f32.mrf.mxu2 }
 0x687   :  { %v1085_v24 = vadd.f32 %v1081_v17, %v993_v23 }
 0x688   :  { %v1173_v18 = vpop.f32.mrf.mxu1 }
 0x689   :  { %v1177_v25 = vadd.f32 %v1173_v18, %v1085_v24 }
 0x68e   :  { %v1083_v19 = vpop.f32.mrf.mxu2 }
 0x690   :  { %v1175_v20 = vpop.f32.mrf.mxu1 }
 0x69e   :  { %v1265_v21 = vpop.f32.mrf.mxu2 }
 0x69f   :  { %v1269_v26 = vadd.f32 %v1265_v21, %v1177_v25 }
 0x6a6   :  { %v1267_v22 = vpop.f32.mrf.mxu2 }
 0x6b9   :  { %v1357_v27 = vpop.f32.mrf.mxu1 }
 0x6ba   :  { %v1361_v28 = vadd.f32 %v1357_v27, %v1269_v26 }
 0x6bc   :  { %v1366_v29 = vadd.f32 %v5508_v53, %v1361_v28 }
 0x6be   :  { %v1367_v30 = vadd.f32 %v1366_v29, %v5944_v44 }
 0x6c0   :  { %1370 = vadd.xlane.f32.xlu1 %v1367_v30 }
 0x6c1   :  { %v1359_v31 = vpop.f32.mrf.mxu1 }
 0x733   :  { %v1371_v39 = vpop.xlane.xlu1 %1370 }
 0x734   :  { %v1379_v40 = vmul.f32 %v6048_v38, %v1371_v39 }
 0x736   :  { %v1380_v41 = vsub.f32 %v1367_v30, %v1379_v40 }
 0x738   :  { %v1381_v42 = vmul.f32 %v1380_v41, %v1380_v41 }
 0x73a   :  { %1382 = vadd.xlane.f32.xlu0 %v1381_v42 }
 0x7ad   :  { %v1383_v44 = vpop.xlane.xlu0 %1382 }
 0x7ae   :  { %v1384_v43 = vmul.f32 %v1383_v44, %v6048_v38 }
 0x7b0   :  { %v1385_v45 = vadd.f32 1e-05, %v1384_v43 }
 0x7b2   :  { %5545 = vrsqrt.f32 %v1385_v45  ;;  %vm1392_vm4 = vweird.f32 %v1385_v45 }
 0x7b8   :  { %v5546_v46 = vpop.eup %5545 }
 0x7b9   :  { %v1387_v55 = vmul.f32 %v5546_v46, %v1385_v45  ;;  %vm1393_vm3 = vweird.f32 %v5546_v46 }
 0x7ba   :  { %vm1394_vm5 = vmor %vm1392_vm4, %vm1393_vm3 }
 0x7bb   :  { %v1388_v47 = vmul.f32 %v5546_v46, %v1387_v55 }
 0x7bd   :  { %v1389_v48 = vmul.f32 0.5, %v1388_v47 }
 0x7bf   :  { %v1390_v49 = vsub.f32 1.5, %v1389_v48 }
 0x7c1   :  { %v1391_v50 = vmul.f32 %v5546_v46, %v1390_v49 }
 0x7c3   :  { %v1395_v52 = vsel %vm1394_vm5, %v5546_v46, %v1391_v50 }
 0x7c4   :  { %v1396_v56 = vmul.f32 %v1395_v52, %v1380_v41 }
 0x7c6   :  { %v1400_v57 = vmul.f32 %v5509_v51, %v1396_v56 }
 0x7c8   :  { %v6067_v58 = vadd.f32 %v5510_v54, %v1400_v57 }
 0x7c9   :  { %5801 = dma.done.wait [#allocation5], 16384 }
 0x7ca   :  { %5802 = vsyncadd [#allocation5], 4294950912  ;;  %v4557_v59 = vld [vmem:[#allocation2 + $0x380] sm:$0xf]  ;;  %v5334_v61 = vld [vmem:[#allocation2 + $0x384] sm:$0xf] }
 0x7cb   :  { %v5342_v60 = vld [vmem:[#allocation2 + $0x3bc] sm:$0xf0]  ;;  %v4559_v63 = vld [vmem:[#allocation2 + $0x3c0] sm:$0xf0]  ;;  %v4565_v0 = vld [vmem:[#allocation2 + $0x388] sm:$0xf] }
 0x7cc   :  { %v4558_v62 = vor.u32 %v5342_v60, %v4557_v59  ;;  %v5343_v1 = vld [vmem:[#allocation2 + $0x3c4] sm:$0xf0]  ;;  %v4562_v2 = vor.u32 %v5334_v61, %v4559_v63  ;;  %v5335_v4 = vld [vmem:[#allocation2 + $0x38c] sm:$0xf]  ;;  %v4493_v6 = vld [vmem:[#allocation2 + $0x300] sm:$0xf] }
 0x7cd   :  { %v4566_v3 = vor.u32 %v5343_v1, %v4565_v0  ;;  %v4567_v5 = vld [vmem:[#allocation2 + $0x3c8] sm:$0xf0]  ;;  %v5326_v8 = vld [vmem:[#allocation2 + $0x33c] sm:$0xf0]  ;;  %v5318_v9 = vld [vmem:[#allocation2 + $0x304] sm:$0xf] }
 0x7ce   :  { %2214 = vmatpush.bf16.msra.mxu2 %v4558_v62  ;;  %v4570_v7 = vor.u32 %v5335_v4, %v4567_v5  ;;  %v4495_v10 = vld [vmem:[#allocation2 + $0x340] sm:$0xf0]  ;;  %2227 = vmatpush.bf16.msra.mxu3 %v4562_v2  ;;  %v4494_v11 = vor.u32 %v5326_v8, %v4493_v6  ;;  %v4501_v13 = vld [vmem:[#allocation2 + $0x308] sm:$0xf]  ;;  %v5319_v15 = vld [vmem:[#allocation2 + $0x30c] sm:$0xf] }
 0x7cf   :  { %2240 = vmatpush.bf16.msra.mxu0 %v4566_v3  ;;  %v4498_v12 = vor.u32 %v5318_v9, %v4495_v10  ;;  %v5327_v14 = vld [vmem:[#allocation2 + $0x344] sm:$0xf0]  ;;  %v4503_v17 = vld [vmem:[#allocation2 + $0x348] sm:$0xf0]  ;;  %v4429_v18 = vld [vmem:[#allocation2 + $0x280] sm:$0xf] }
 0x7d0   :  { %2253 = vmatpush.bf16.msra.mxu1 %v4570_v7  ;;  %v4502_v16 = vor.u32 %v5327_v14, %v4501_v13  ;;  %v5310_v19 = vld [vmem:[#allocation2 + $0x2bc] sm:$0xf0]  ;;  %v4506_v20 = vor.u32 %v5319_v15, %v4503_v17  ;;  %v5302_v21 = vld [vmem:[#allocation2 + $0x284] sm:$0xf]  ;;  %v4437_v23 = vld [vmem:[#allocation2 + $0x288] sm:$0xf] }
 0x7d1   :  { %v4431_v22 = vld [vmem:[#allocation2 + $0x2c0] sm:$0xf0]  ;;  %v4430_v24 = vor.u32 %v5310_v19, %v4429_v18  ;;  %v5311_v25 = vld [vmem:[#allocation2 + $0x2c4] sm:$0xf0]  ;;  %v5303_v26 = vld [vmem:[#allocation2 + $0x28c] sm:$0xf] }
 0x7d2   :  { %2215 = vmatpush.bf16.msra.mxu2 %v4494_v11  ;;  %v4439_v53 = vld [vmem:[#allocation2 + $0x2c8] sm:$0xf0]  ;;  %2228 = vmatpush.bf16.msra.mxu3 %v4498_v12  ;;  %v4434_v27 = vor.u32 %v5302_v21, %v4431_v22  ;;  %v4438_v28 = vor.u32 %v5311_v25, %v4437_v23  ;;  %v4365_v29 = vld [vmem:[#allocation2 + $0x200] sm:$0xf]  ;;  %v5286_v31 = vld [vmem:[#allocation2 + $0x204] sm:$0xf] }
 0x7d3   :  { %2241 = vmatpush.bf16.msra.mxu0 %v4502_v16  ;;  %v5294_v30 = vld [vmem:[#allocation2 + $0x23c] sm:$0xf0]  ;;  %v4442_v32 = vor.u32 %v5303_v26, %v4439_v53  ;;  %v4367_v33 = vld [vmem:[#allocation2 + $0x240] sm:$0xf0]  ;;  %v4373_v34 = vld [vmem:[#allocation2 + $0x208] sm:$0xf] }
 0x7d4   :  { %2254 = vmatpush.bf16.msra.mxu1 %v4506_v20  ;;  %v5295_v35 = vld [vmem:[#allocation2 + $0x244] sm:$0xf0]  ;;  %v5287_v36 = vld [vmem:[#allocation2 + $0x20c] sm:$0xf]  ;;  %v4366_v39 = vor.u32 %v5294_v30, %v4365_v29  ;;  %v4370_v40 = vor.u32 %v5286_v31, %v4367_v33  ;;  %v4301_v42 = vld [vmem:[#allocation2 + $0x180] sm:$0xf] }
 0x7d5   :  { %v4375_v37 = vld [vmem:[#allocation2 + $0x248] sm:$0xf0]  ;;  %v4374_v41 = vor.u32 %v5295_v35, %v4373_v34  ;;  %v5278_v44 = vld [vmem:[#allocation2 + $0x1bc] sm:$0xf0]  ;;  %v5270_v43 = vld [vmem:[#allocation2 + $0x184] sm:$0xf] }
 0x7d6   :  { %2216 = vmatpush.bf16.msra.mxu2 %v4430_v24  ;;  %2229 = vmatpush.bf16.msra.mxu3 %v4434_v27  ;;  %v4378_v45 = vor.u32 %v5287_v36, %v4375_v37  ;;  %v4303_v46 = vld [vmem:[#allocation2 + $0x1c0] sm:$0xf0]  ;;  %v4309_v55 = vld [vmem:[#allocation2 + $0x188] sm:$0xf]  ;;  %v5271_v48 = vld [vmem:[#allocation2 + $0x18c] sm:$0xf]  ;;  %v4302_v50 = vor.u32 %v5278_v44, %v4301_v42 }
 0x7d7   :  { %2242 = vmatpush.bf16.msra.mxu0 %v4438_v28  ;;  %v5279_v47 = vld [vmem:[#allocation2 + $0x1c4] sm:$0xf0]  ;;  %v4311_v49 = vld [vmem:[#allocation2 + $0x1c8] sm:$0xf0]  ;;  %v4306_v51 = vor.u32 %v5270_v43, %v4303_v46  ;;  %v4237_v54 = vld [vmem:[#allocation2 + $0x100] sm:$0xf] }
 0x7d8   :  { %2255 = vmatpush.bf16.msra.mxu1 %v4442_v32  ;;  %v4310_v52 = vor.u32 %v5279_v47, %v4309_v55  ;;  %v5262_v56 = vld [vmem:[#allocation2 + $0x13c] sm:$0xf0]  ;;  %v5254_v57 = vld [vmem:[#allocation2 + $0x104] sm:$0xf]  ;;  %v4314_v59 = vor.u32 %v5271_v48, %v4311_v49  ;;  %v4245_v61 = vld [vmem:[#allocation2 + $0x108] sm:$0xf]  ;;  %v6071_v55 = vpack.c.bf16 %v6067_v58, %v6067_v58 }
 0x7d9   :  { %v4239_v60 = vld [vmem:[#allocation2 + $0x140] sm:$0xf0]  ;;  %v5263_v62 = vld [vmem:[#allocation2 + $0x144] sm:$0xf0]  ;;  %v5255_v63 = vld [vmem:[#allocation2 + $0x10c] sm:$0xf]  ;;  %v4238_v1 = vor.u32 %v5262_v56, %v4237_v54 }
 0x7da   :  { %2217 = vmatpush.bf16.msra.mxu2 %v4366_v39  ;;  %2230 = vmatpush.bf16.msra.mxu3 %v4370_v40  ;;  %v4247_v0 = vld [vmem:[#allocation2 + $0x148] sm:$0xf0]  ;;  %v4242_v2 = vor.u32 %v5254_v57, %v4239_v60  ;;  %v4246_v3 = vor.u32 %v5263_v62, %v4245_v61  ;;  %v4173_v4 = vld [vmem:[#allocation2 + $0x80] sm:$0xf]  ;;  %v5238_v6 = vld [vmem:[#allocation2 + $0x84] sm:$0xf] }
 0x7db   :  { %2243 = vmatpush.bf16.msra.mxu0 %v4374_v41  ;;  %v5246_v5 = vld [vmem:[#allocation2 + $0xbc] sm:$0xf0]  ;;  %v4250_v7 = vor.u32 %v5255_v63, %v4247_v0  ;;  %v4175_v8 = vld [vmem:[#allocation2 + $0xc0] sm:$0xf0]  ;;  %v4181_v9 = vld [vmem:[#allocation2 + $0x88] sm:$0xf] }
 0x7dc   :  { %2256 = vmatpush.bf16.msra.mxu1 %v4378_v45  ;;  %v5247_v10 = vld [vmem:[#allocation2 + $0xc4] sm:$0xf0]  ;;  %v5239_v11 = vld [vmem:[#allocation2 + $0x8c] sm:$0xf]  ;;  %v4174_v13 = vor.u32 %v5246_v5, %v4173_v4  ;;  %v4109_v14 = vld [vmem:[#allocation2] sm:$0xf]  ;;  %v4178_v16 = vor.u32 %v5238_v6, %v4175_v8 }
 0x7dd   :  { %v4183_v12 = vld [vmem:[#allocation2 + $0xc8] sm:$0xf0]  ;;  %v5230_v15 = vld [vmem:[#allocation2 + $0x3c] sm:$0xf0]  ;;  %v4182_v17 = vor.u32 %v5247_v10, %v4181_v9  ;;  %v5222_v18 = vld [vmem:[#allocation2 + $0x4] sm:$0xf] }
 0x7de   :  { %2218 = vmatpush.bf16.msra.mxu2 %v4302_v50  ;;  %2231 = vmatpush.bf16.msra.mxu3 %v4306_v51  ;;  %v4111_v19 = vld [vmem:[#allocation2 + $0x40] sm:$0xf0]  ;;  %v4117_v20 = vld [vmem:[#allocation2 + $0x8] sm:$0xf]  ;;  %v4186_v21 = vor.u32 %v5239_v11, %v4183_v12  ;;  %v5223_v23 = vld [vmem:[#allocation2 + $0xc] sm:$0xf]  ;;  %v4110_v27 = vor.u32 %v5230_v15, %v4109_v14 }
 0x7df   :  { %2244 = vmatpush.bf16.msra.mxu0 %v4310_v52  ;;  %v5231_v22 = vld [vmem:[#allocation2 + $0x44] sm:$0xf0]  ;;  %v4119_v24 = vld [vmem:[#allocation2 + $0x48] sm:$0xf0]  ;;  %v4573_v25 = vld [vmem:[#allocation2 + $0x390] sm:$0xf]  ;;  %v4114_v31 = vor.u32 %v5222_v18, %v4111_v19 }
 0x7e0   :  { %2257 = vmatpush.bf16.msra.mxu1 %v4314_v59  ;;  %v5344_v26 = vld [vmem:[#allocation2 + $0x3cc] sm:$0xf0]  ;;  %v5336_v53 = vld [vmem:[#allocation2 + $0x394] sm:$0xf]  ;;  %v4581_v29 = vld [vmem:[#allocation2 + $0x398] sm:$0xf]  ;;  %v4118_v32 = vor.u32 %v5231_v22, %v4117_v20  ;;  %v4122_v35 = vor.u32 %v5223_v23, %v4119_v24 }
 0x7e1   :  { %v4575_v28 = vld [vmem:[#allocation2 + $0x3d0] sm:$0xf0]  ;;  %v5345_v30 = vld [vmem:[#allocation2 + $0x3d4] sm:$0xf0]  ;;  %v5337_v33 = vld [vmem:[#allocation2 + $0x39c] sm:$0xf]  ;;  %v4574_v36 = vor.u32 %v5344_v26, %v4573_v25 }
 0x7e2   :  { %2219 = vmatpush.bf16.msra.mxu2 %v4238_v1  ;;  %2232 = vmatpush.bf16.msra.mxu3 %v4242_v2  ;;  %v4583_v34 = vld [vmem:[#allocation2 + $0x3d8] sm:$0xf0]  ;;  %v4578_v37 = vor.u32 %v5336_v53, %v4575_v28  ;;  %v4582_v39 = vor.u32 %v5345_v30, %v4581_v29  ;;  %v4509_v40 = vld [vmem:[#allocation2 + $0x310] sm:$0xf]  ;;  %v5320_v42 = vld [vmem:[#allocation2 + $0x314] sm:$0xf] }
 0x7e3   :  { %2245 = vmatpush.bf16.msra.mxu0 %v4246_v3  ;;  %v5328_v41 = vld [vmem:[#allocation2 + $0x34c] sm:$0xf0]  ;;  %v4586_v44 = vor.u32 %v5337_v33, %v4583_v34  ;;  %v4511_v43 = vld [vmem:[#allocation2 + $0x350] sm:$0xf0]  ;;  %v4517_v45 = vld [vmem:[#allocation2 + $0x318] sm:$0xf] }
 0x7e4   :  { %2258 = vmatpush.bf16.msra.mxu1 %v4250_v7  ;;  %v5329_v46 = vld [vmem:[#allocation2 + $0x354] sm:$0xf0]  ;;  %v5321_v47 = vld [vmem:[#allocation2 + $0x31c] sm:$0xf]  ;;  %v4510_v49 = vor.u32 %v5328_v41, %v4509_v40  ;;  %v4514_v50 = vor.u32 %v5320_v42, %v4511_v43  ;;  %v4445_v52 = vld [vmem:[#allocation2 + $0x290] sm:$0xf] }
 0x7e5   :  { %v4519_v48 = vld [vmem:[#allocation2 + $0x358] sm:$0xf0]  ;;  %v4518_v51 = vor.u32 %v5329_v46, %v4517_v45  ;;  %v5312_v54 = vld [vmem:[#allocation2 + $0x2cc] sm:$0xf0]  ;;  %v5304_v56 = vld [vmem:[#allocation2 + $0x294] sm:$0xf] }
 0x7e6   :  { %2220 = vmatpush.bf16.msra.mxu2 %v4174_v13  ;;  %2233 = vmatpush.bf16.msra.mxu3 %v4178_v16  ;;  %v4522_v57 = vor.u32 %v5321_v47, %v4519_v48  ;;  %v4447_v59 = vld [vmem:[#allocation2 + $0x2d0] sm:$0xf0]  ;;  %v4453_v60 = vld [vmem:[#allocation2 + $0x298] sm:$0xf]  ;;  %v5305_v62 = vld [vmem:[#allocation2 + $0x29c] sm:$0xf]  ;;  %v4446_v0 = vor.u32 %v5312_v54, %v4445_v52 }
 0x7e7   :  { %2246 = vmatpush.bf16.msra.mxu0 %v4182_v17  ;;  %v5313_v61 = vld [vmem:[#allocation2 + $0x2d4] sm:$0xf0]  ;;  %v4455_v63 = vld [vmem:[#allocation2 + $0x2d8] sm:$0xf0]  ;;  %v4450_v1 = vor.u32 %v5304_v56, %v4447_v59  ;;  %v4381_v3 = vld [vmem:[#allocation2 + $0x210] sm:$0xf] }
 0x7e8   :  { %2259 = vmatpush.bf16.msra.mxu1 %v4186_v21  ;;  %v4454_v2 = vor.u32 %v5313_v61, %v4453_v60  ;;  %v5296_v4 = vld [vmem:[#allocation2 + $0x24c] sm:$0xf0]  ;;  %v5288_v5 = vld [vmem:[#allocation2 + $0x214] sm:$0xf]  ;;  %v4458_v6 = vor.u32 %v5305_v62, %v4455_v63  ;;  %v4389_v8 = vld [vmem:[#allocation2 + $0x218] sm:$0xf] }
 0x7e9   :  { %v4383_v7 = vld [vmem:[#allocation2 + $0x250] sm:$0xf0]  ;;  %v5297_v9 = vld [vmem:[#allocation2 + $0x254] sm:$0xf0]  ;;  %v5289_v10 = vld [vmem:[#allocation2 + $0x21c] sm:$0xf]  ;;  %v4382_v12 = vor.u32 %v5296_v4, %v4381_v3 }
 0x7ea   :  { %2221 = vmatpush.bf16.msra.mxu2 %v4110_v27  ;;  %2234 = vmatpush.bf16.msra.mxu3 %v4114_v31  ;;  %v4391_v11 = vld [vmem:[#allocation2 + $0x258] sm:$0xf0]  ;;  %v4386_v13 = vor.u32 %v5288_v5, %v4383_v7  ;;  %v4390_v14 = vor.u32 %v5297_v9, %v4389_v8  ;;  %v4317_v15 = vld [vmem:[#allocation2 + $0x190] sm:$0xf]  ;;  %v5272_v17 = vld [vmem:[#allocation2 + $0x194] sm:$0xf] }
 0x7eb   :  { %2247 = vmatpush.bf16.msra.mxu0 %v4118_v32  ;;  %v5280_v16 = vld [vmem:[#allocation2 + $0x1cc] sm:$0xf0]  ;;  %v4394_v18 = vor.u32 %v5289_v10, %v4391_v11  ;;  %v4319_v19 = vld [vmem:[#allocation2 + $0x1d0] sm:$0xf0]  ;;  %v4325_v20 = vld [vmem:[#allocation2 + $0x198] sm:$0xf] }
 0x7ec   :  { %2260 = vmatpush.bf16.msra.mxu1 %v4122_v35  ;;  %v5281_v21 = vld [vmem:[#allocation2 + $0x1d4] sm:$0xf0]  ;;  %v5273_v22 = vld [vmem:[#allocation2 + $0x19c] sm:$0xf]  ;;  %v4318_v24 = vor.u32 %v5280_v16, %v4317_v15  ;;  %v4322_v25 = vor.u32 %v5272_v17, %v4319_v19  ;;  %v4253_v53 = vld [vmem:[#allocation2 + $0x110] sm:$0xf] }
 0x7ed   :  { %2222 = vmatmul.bf16.vlgmr.msra.gmra.mxu2 %v6071_v55  ;;  %2235 = vmatmul.bf16.vlgmr.msra.gmra.mxu3 %v6071_v55  ;;  %v4327_v23 = vld [vmem:[#allocation2 + $0x1d8] sm:$0xf0]  ;;  %v4326_v26 = vor.u32 %v5281_v21, %v4325_v20  ;;  %v5264_v27 = vld [vmem:[#allocation2 + $0x14c] sm:$0xf0]  ;;  %v5256_v28 = vld [vmem:[#allocation2 + $0x114] sm:$0xf] }
 0x7ee   :  { %2266 = vmatpush.bf16.msrb.mxu2 %v4574_v36  ;;  %2279 = vmatpush.bf16.msrb.mxu3 %v4578_v37  ;;  %v4330_v29 = vor.u32 %v5273_v22, %v4327_v23  ;;  %v4255_v30 = vld [vmem:[#allocation2 + $0x150] sm:$0xf0]  ;;  %v4261_v31 = vld [vmem:[#allocation2 + $0x118] sm:$0xf]  ;;  %v5257_v33 = vld [vmem:[#allocation2 + $0x11c] sm:$0xf]  ;;  %v4254_v35 = vor.u32 %v5264_v27, %v4253_v53 }
 0x7ef   :  { %2292 = vmatpush.bf16.msrb.mxu0 %v4582_v39  ;;  %2261 = vmatmul.bf16.vlgmr.msra.gmra.mxu1 %v6071_v55  ;;  %v5265_v32 = vld [vmem:[#allocation2 + $0x154] sm:$0xf0]  ;;  %v4263_v34 = vld [vmem:[#allocation2 + $0x158] sm:$0xf0]  ;;  %v4258_v36 = vor.u32 %v5256_v28, %v4255_v30  ;;  %v4189_v39 = vld [vmem:[#allocation2 + $0x90] sm:$0xf] }
 0x7f0   :  { %2305 = vmatpush.bf16.msrb.mxu1 %v4586_v44  ;;  %2248 = vmatmul.bf16.vlgmr.msra.gmra.mxu0 %v6071_v55  ;;  %v4262_v37 = vor.u32 %v5265_v32, %v4261_v31  ;;  %v5248_v40 = vld [vmem:[#allocation2 + $0xcc] sm:$0xf0]  ;;  %v5240_v41 = vld [vmem:[#allocation2 + $0x94] sm:$0xf]  ;;  %v4266_v42 = vor.u32 %v5257_v33, %v4263_v34  ;;  %v4197_v43 = vld [vmem:[#allocation2 + $0x98] sm:$0xf] }
 0x7f1   :  { %v4191_v44 = vld [vmem:[#allocation2 + $0xd0] sm:$0xf0]  ;;  %v5249_v45 = vld [vmem:[#allocation2 + $0xd4] sm:$0xf0]  ;;  %v5241_v46 = vld [vmem:[#allocation2 + $0x9c] sm:$0xf]  ;;  %v4190_v48 = vor.u32 %v5248_v40, %v4189_v39 }
 0x7f2   :  { %2267 = vmatpush.bf16.msrb.mxu2 %v4510_v49  ;;  %2280 = vmatpush.bf16.msrb.mxu3 %v4514_v50  ;;  %v4199_v47 = vld [vmem:[#allocation2 + $0xd8] sm:$0xf0]  ;;  %v4125_v49 = vld [vmem:[#allocation2 + $0x10] sm:$0xf]  ;;  %v4198_v52 = vor.u32 %v5249_v45, %v4197_v43  ;;  %v5224_v54 = vld [vmem:[#allocation2 + $0x14] sm:$0xf] }
 0x7f3   :  { %2293 = vmatpush.bf16.msrb.mxu0 %v4518_v51  ;;  %v5232_v50 = vld [vmem:[#allocation2 + $0x4c] sm:$0xf0]  ;;  %v4194_v51 = vor.u32 %v5240_v41, %v4191_v44  ;;  %v4127_v56 = vld [vmem:[#allocation2 + $0x50] sm:$0xf0]  ;;  %v4202_v59 = vor.u32 %v5241_v46, %v4199_v47  ;;  %v5233_v60 = vld [vmem:[#allocation2 + $0x54] sm:$0xf0] }
 0x7f4   :  { %2306 = vmatpush.bf16.msrb.mxu1 %v4522_v57  ;;  %v4133_v57 = vld [vmem:[#allocation2 + $0x18] sm:$0xf]  ;;  %v5225_v61 = vld [vmem:[#allocation2 + $0x1c] sm:$0xf]  ;;  %v4589_v63 = vld [vmem:[#allocation2 + $0x3a0] sm:$0xf] }
 0x7f5   :  { %v4135_v62 = vld [vmem:[#allocation2 + $0x58] sm:$0xf0]  ;;  %v4591_v3 = vld [vmem:[#allocation2 + $0x3e0] sm:$0xf0]  ;;  %v4597_v4 = vld [vmem:[#allocation2 + $0x3a8] sm:$0xf]  ;;  %v4134_v7 = vor.u32 %v5233_v60, %v4133_v57 }
 0x7f6   :  { %2268 = vmatpush.bf16.msrb.mxu2 %v4446_v0  ;;  %2281 = vmatpush.bf16.msrb.mxu3 %v4450_v1  ;;  %v5346_v0 = vld [vmem:[#allocation2 + $0x3dc] sm:$0xf0]  ;;  %v5338_v1 = vld [vmem:[#allocation2 + $0x3a4] sm:$0xf]  ;;  %v5347_v5 = vld [vmem:[#allocation2 + $0x3e4] sm:$0xf0]  ;;  %v4138_v10 = vor.u32 %v5225_v61, %v4135_v62 }
 0x7f7   :  { %2294 = vmatpush.bf16.msrb.mxu0 %v4454_v2  ;;  %v4126_v2 = vor.u32 %v5232_v50, %v4125_v49  ;;  %v5339_v8 = vld [vmem:[#allocation2 + $0x3ac] sm:$0xf]  ;;  %v4590_v11 = vor.u32 %v5346_v0, %v4589_v63  ;;  %v5330_v15 = vld [vmem:[#allocation2 + $0x35c] sm:$0xf0]  ;;  %v5322_v16 = vld [vmem:[#allocation2 + $0x324] sm:$0xf] }
 0x7f8   :  { %2307 = vmatpush.bf16.msrb.mxu1 %v4458_v6  ;;  %v4130_v6 = vor.u32 %v5224_v54, %v4127_v56  ;;  %v4599_v9 = vld [vmem:[#allocation2 + $0x3e8] sm:$0xf0]  ;;  %v4533_v19 = vld [vmem:[#allocation2 + $0x328] sm:$0xf]  ;;  %v5314_v53 = vld [vmem:[#allocation2 + $0x2dc] sm:$0xf0] }
 0x7f9   :  { %v4602_v17 = vor.u32 %v5339_v8, %v4599_v9  ;;  %v5331_v20 = vld [vmem:[#allocation2 + $0x364] sm:$0xf0]  ;;  %v5323_v21 = vld [vmem:[#allocation2 + $0x32c] sm:$0xf]  ;;  %v5306_v27 = vld [vmem:[#allocation2 + $0x2a4] sm:$0xf] }
 0x7fa   :  { %2269 = vmatpush.bf16.msrb.mxu2 %v4382_v12  ;;  %2282 = vmatpush.bf16.msrb.mxu3 %v4386_v13  ;;  %v4594_v12 = vor.u32 %v5338_v1, %v4591_v3  ;;  %v4598_v13 = vor.u32 %v5347_v5, %v4597_v4  ;;  %v4535_v22 = vld [vmem:[#allocation2 + $0x368] sm:$0xf0]  ;;  %v4469_v30 = vld [vmem:[#allocation2 + $0x2a8] sm:$0xf]  ;;  %v5298_v39 = vld [vmem:[#allocation2 + $0x25c] sm:$0xf0] }
 0x7fb   :  { %2295 = vmatpush.bf16.msrb.mxu0 %v4390_v14  ;;  %v4525_v14 = vld [vmem:[#allocation2 + $0x320] sm:$0xf]  ;;  %v4538_v28 = vor.u32 %v5323_v21, %v4535_v22  ;;  %v5315_v31 = vld [vmem:[#allocation2 + $0x2e4] sm:$0xf0]  ;;  %v5307_v32 = vld [vmem:[#allocation2 + $0x2ac] sm:$0xf] }
 0x7fc   :  { %2308 = vmatpush.bf16.msrb.mxu1 %v4394_v18  ;;  %v4527_v18 = vld [vmem:[#allocation2 + $0x360] sm:$0xf0]  ;;  %v4526_v23 = vor.u32 %v5330_v15, %v4525_v14  ;;  %v4471_v33 = vld [vmem:[#allocation2 + $0x2e8] sm:$0xf0]  ;;  %v4405_v44 = vld [vmem:[#allocation2 + $0x228] sm:$0xf] }
 0x7fd   :  { %v5290_v40 = vld [vmem:[#allocation2 + $0x224] sm:$0xf]  ;;  %v4474_v41 = vor.u32 %v5307_v32, %v4471_v33  ;;  %v5299_v43 = vld [vmem:[#allocation2 + $0x264] sm:$0xf0]  ;;  %v5291_v45 = vld [vmem:[#allocation2 + $0x22c] sm:$0xf] }
 0x7fe   :  { %2270 = vmatpush.bf16.msrb.mxu2 %v4318_v24  ;;  %2283 = vmatpush.bf16.msrb.mxu3 %v4322_v25  ;;  %v4530_v24 = vor.u32 %v5322_v16, %v4527_v18  ;;  %v4534_v25 = vor.u32 %v5331_v20, %v4533_v19  ;;  %v4407_v46 = vld [vmem:[#allocation2 + $0x268] sm:$0xf0]  ;;  %v4406_v49 = vor.u32 %v5299_v43, %v4405_v44  ;;  %v4333_v50 = vld [vmem:[#allocation2 + $0x1a0] sm:$0xf]  ;;  %v4335_v56 = vld [vmem:[#allocation2 + $0x1e0] sm:$0xf0] }
 0x7ff   :  { %2296 = vmatpush.bf16.msrb.mxu0 %v4326_v26  ;;  %v4461_v26 = vld [vmem:[#allocation2 + $0x2a0] sm:$0xf]  ;;  %v4410_v54 = vor.u32 %v5291_v45, %v4407_v46  ;;  %v4341_v57 = vld [vmem:[#allocation2 + $0x1a8] sm:$0xf]  ;;  %v5275_v60 = vld [vmem:[#allocation2 + $0x1ac] sm:$0xf] }
 0x800   :  { %2309 = vmatpush.bf16.msrb.mxu1 %v4330_v29  ;;  %v4463_v29 = vld [vmem:[#allocation2 + $0x2e0] sm:$0xf0]  ;;  %v4462_v34 = vor.u32 %v5314_v53, %v4461_v26  ;;  %v4343_v61 = vld [vmem:[#allocation2 + $0x1e8] sm:$0xf0]  ;;  %v4269_v1 = vld [vmem:[#allocation2 + $0x120] sm:$0xf] }
 0x801   :  { %v5258_v3 = vld [vmem:[#allocation2 + $0x124] sm:$0xf]  ;;  %v4346_v4 = vor.u32 %v5275_v60, %v4343_v61  ;;  %v5259_v8 = vld [vmem:[#allocation2 + $0x12c] sm:$0xf]  ;;  %v5250_v14 = vld [vmem:[#allocation2 + $0xdc] sm:$0xf0] }
 0x802   :  { %2271 = vmatpush.bf16.msrb.mxu2 %v4254_v35  ;;  %2284 = vmatpush.bf16.msrb.mxu3 %v4258_v36  ;;  %v4466_v35 = vor.u32 %v5306_v27, %v4463_v29  ;;  %v4470_v36 = vor.u32 %v5315_v31, %v4469_v30  ;;  %v4271_v5 = vld [vmem:[#allocation2 + $0x160] sm:$0xf0]  ;;  %v4279_v9 = vld [vmem:[#allocation2 + $0x168] sm:$0xf0]  ;;  %v4213_v18 = vld [vmem:[#allocation2 + $0xa8] sm:$0xf] }
 0x803   :  { %2297 = vmatpush.bf16.msrb.mxu0 %v4262_v37  ;;  %v4397_v37 = vld [vmem:[#allocation2 + $0x220] sm:$0xf]  ;;  %v5242_v15 = vld [vmem:[#allocation2 + $0xa4] sm:$0xf]  ;;  %v4282_v16 = vor.u32 %v5259_v8, %v4279_v9  ;;  %v5251_v19 = vld [vmem:[#allocation2 + $0xe4] sm:$0xf0] }
 0x804   :  { %2310 = vmatpush.bf16.msrb.mxu1 %v4266_v42  ;;  %v4399_v42 = vld [vmem:[#allocation2 + $0x260] sm:$0xf0]  ;;  %v4398_v47 = vor.u32 %v5298_v39, %v4397_v37  ;;  %v5243_v20 = vld [vmem:[#allocation2 + $0xac] sm:$0xf]  ;;  %v4214_v26 = vor.u32 %v5251_v19, %v4213_v18  ;;  %v5235_v30 = vld [vmem:[#allocation2 + $0x64] sm:$0xf0] }
 0x805   :  { %v4215_v21 = vld [vmem:[#allocation2 + $0xe8] sm:$0xf0]  ;;  %v5226_v53 = vld [vmem:[#allocation2 + $0x24] sm:$0xf]  ;;  %v4605_v33 = vld [vmem:[#allocation2 + $0x3b0] sm:$0xf] }
 0x806   :  { %2272 = vmatpush.bf16.msrb.mxu2 %v4190_v48  ;;  %2285 = vmatpush.bf16.msrb.mxu3 %v4194_v51  ;;  %v4402_v48 = vor.u32 %v5290_v40, %v4399_v42  ;;  %v5282_v51 = vld [vmem:[#allocation2 + $0x1dc] sm:$0xf0]  ;;  %v4143_v27 = vld [vmem:[#allocation2 + $0x60] sm:$0xf0]  ;;  %v4218_v29 = vor.u32 %v5243_v20, %v4215_v21  ;;  %v5227_v31 = vld [vmem:[#allocation2 + $0x2c] sm:$0xf] }
 0x807   :  { %2298 = vmatpush.bf16.msrb.mxu0 %v4198_v52  ;;  %v5274_v52 = vld [vmem:[#allocation2 + $0x1a4] sm:$0xf]  ;;  %v4334_v62 = vor.u32 %v5282_v51, %v4333_v50  ;;  %v4151_v32 = vld [vmem:[#allocation2 + $0x68] sm:$0xf0]  ;;  %v4607_v37 = vld [vmem:[#allocation2 + $0x3f0] sm:$0xf0] }
 0x808   :  { %2311 = vmatpush.bf16.msrb.mxu1 %v4202_v59  ;;  %v5283_v59 = vld [vmem:[#allocation2 + $0x1e4] sm:$0xf0]  ;;  %v4338_v63 = vor.u32 %v5274_v52, %v4335_v56  ;;  %v4613_v39 = vld [vmem:[#allocation2 + $0x3b8] sm:$0xf]  ;;  %v5341_v44 = vld [vmem:[#allocation2 + $0x3bc] sm:$0xf]  ;;  %v4154_v45 = vor.u32 %v5227_v31, %v4151_v32 }
 0x809   :  { %v4342_v0 = vor.u32 %v5283_v59, %v4341_v57  ;;  %v5349_v40 = vld [vmem:[#allocation2 + $0x3f4] sm:$0xf0]  ;;  %v4615_v43 = vld [vmem:[#allocation2 + $0x3f8] sm:$0xf0]  ;;  %v5332_v50 = vld [vmem:[#allocation2 + $0x36c] sm:$0xf0] }
 0x80a   :  { %2273 = vmatpush.bf16.msrb.mxu2 %v4126_v2  ;;  %2286 = vmatpush.bf16.msrb.mxu3 %v4130_v6  ;;  %v5266_v2 = vld [vmem:[#allocation2 + $0x15c] sm:$0xf0]  ;;  %v4277_v6 = vld [vmem:[#allocation2 + $0x128] sm:$0xf]  ;;  %v5324_v51 = vld [vmem:[#allocation2 + $0x334] sm:$0xf]  ;;  %v4618_v52 = vor.u32 %v5341_v44, %v4615_v43 }
 0x80b   :  { %2299 = vmatpush.bf16.msrb.mxu0 %v4134_v7  ;;  %v5267_v7 = vld [vmem:[#allocation2 + $0x164] sm:$0xf0]  ;;  %v4549_v56 = vld [vmem:[#allocation2 + $0x338] sm:$0xf]  ;;  %v5325_v59 = vld [vmem:[#allocation2 + $0x33c] sm:$0xf] }
 0x80c   :  { %2312 = vmatpush.bf16.msrb.mxu1 %v4138_v10  ;;  %v4270_v10 = vor.u32 %v5266_v2, %v4269_v1  ;;  %v5333_v57 = vld [vmem:[#allocation2 + $0x374] sm:$0xf0]  ;;  %v4551_v60 = vld [vmem:[#allocation2 + $0x378] sm:$0xf0]  ;;  %v5316_v1 = vld [vmem:[#allocation2 + $0x2ec] sm:$0xf0] }
 0x80d   :  { %2274 = vmatmul.bf16.vlgmr.msrb.gmra.mxu2 %v6071_v55  ;;  %2287 = vmatmul.bf16.vlgmr.msrb.gmra.mxu3 %v6071_v55  ;;  %v5308_v2 = vld [vmem:[#allocation2 + $0x2b4] sm:$0xf]  ;;  %v4487_v8 = vld [vmem:[#allocation2 + $0x2f8] sm:$0xf0]  ;;  %v5301_v18 = vld [vmem:[#allocation2 + $0x274] sm:$0xf0] }
 0x80e   :  { %2318 = vmatpush.bf16.msra.mxu2 %v4590_v11  ;;  %2331 = vmatpush.bf16.msra.mxu3 %v4594_v12  ;;  %v4274_v11 = vor.u32 %v5258_v3, %v4271_v5  ;;  %v4278_v12 = vor.u32 %v5267_v7, %v4277_v6  ;;  %v4554_v3 = vor.u32 %v5325_v59, %v4551_v60  ;;  %v4485_v5 = vld [vmem:[#allocation2 + $0x2b8] sm:$0xf]  ;;  %v5309_v7 = vld [vmem:[#allocation2 + $0x2bc] sm:$0xf] }
 0x80f   :  { %2344 = vmatpush.bf16.msra.mxu0 %v4598_v13  ;;  %2313 = vmatmul.bf16.vlgmr.msrb.gmra.mxu1 %v6071_v55  ;;  %v4205_v13 = vld [vmem:[#allocation2 + $0xa0] sm:$0xf]  ;;  %v5317_v6 = vld [vmem:[#allocation2 + $0x2f4] sm:$0xf0]  ;;  %v5293_v19 = vld [vmem:[#allocation2 + $0x23c] sm:$0xf] }
 0x810   :  { %2357 = vmatpush.bf16.msra.mxu1 %v4602_v17  ;;  %2300 = vmatmul.bf16.vlgmr.msrb.gmra.mxu0 %v6071_v55  ;;  %v4207_v17 = vld [vmem:[#allocation2 + $0xe0] sm:$0xf0]  ;;  %v4206_v22 = vor.u32 %v5250_v14, %v4205_v13  ;;  %v5300_v13 = vld [vmem:[#allocation2 + $0x26c] sm:$0xf0]  ;;  %v5292_v14 = vld [vmem:[#allocation2 + $0x234] sm:$0xf] }
 0x811   :  { %v4423_v20 = vld [vmem:[#allocation2 + $0x278] sm:$0xf0] }
 0x812   :  { %2319 = vmatpush.bf16.msra.mxu2 %v4526_v23  ;;  %2332 = vmatpush.bf16.msra.mxu3 %v4530_v24  ;;  %v4141_v23 = vld [vmem:[#allocation2 + $0x20] sm:$0xf]  ;;  %v4359_v31 = vld [vmem:[#allocation2 + $0x1f8] sm:$0xf0] }
 0x813   :  { %2345 = vmatpush.bf16.msra.mxu0 %v4534_v25  ;;  %v5234_v24 = vld [vmem:[#allocation2 + $0x5c] sm:$0xf0]  ;;  %v4210_v25 = vor.u32 %v5242_v15, %v4207_v17  ;;  %v4490_v15 = vor.u32 %v5309_v7, %v4487_v8  ;;  %v4421_v17 = vld [vmem:[#allocation2 + $0x238] sm:$0xf]  ;;  %v5261_v44 = vld [vmem:[#allocation2 + $0x13c] sm:$0xf] }
 0x814   :  { %2358 = vmatpush.bf16.msra.mxu1 %v4538_v28  ;;  %v4149_v28 = vld [vmem:[#allocation2 + $0x28] sm:$0xf]  ;;  %v4295_v43 = vld [vmem:[#allocation2 + $0x178] sm:$0xf0] }
 0x815   :  { %v4150_v42 = vor.u32 %v5235_v30, %v4149_v28  ;;  %v4357_v28 = vld [vmem:[#allocation2 + $0x1b8] sm:$0xf]  ;;  %v5277_v30 = vld [vmem:[#allocation2 + $0x1bc] sm:$0xf] }
 0x816   :  { %2320 = vmatpush.bf16.msra.mxu2 %v4462_v34  ;;  %2333 = vmatpush.bf16.msra.mxu3 %v4466_v35  ;;  %v5348_v34 = vld [vmem:[#allocation2 + $0x3ec] sm:$0xf0]  ;;  %v5340_v35 = vld [vmem:[#allocation2 + $0x3b4] sm:$0xf]  ;;  %v4231_v59 = vld [vmem:[#allocation2 + $0xf8] sm:$0xf0] }
 0x817   :  { %2346 = vmatpush.bf16.msra.mxu0 %v4470_v36  ;;  %v4142_v36 = vor.u32 %v5234_v24, %v4141_v23  ;;  %v4606_v46 = vor.u32 %v5348_v34, %v4605_v33  ;;  %v4422_v23 = vor.u32 %v5301_v18, %v4421_v17  ;;  %v4349_v24 = vld [vmem:[#allocation2 + $0x1b0] sm:$0xf]  ;;  %v4167_v7 = vld [vmem:[#allocation2 + $0x78] sm:$0xf0] }
 0x818   :  { %2359 = vmatpush.bf16.msra.mxu1 %v4474_v41  ;;  %v4146_v41 = vor.u32 %v5226_v53, %v4143_v27  ;;  %v4426_v53 = vor.u32 %v5293_v19, %v4423_v20  ;;  %v4351_v27 = vld [vmem:[#allocation2 + $0x1f0] sm:$0xf0] }
 0x81a   :  { %2321 = vmatpush.bf16.msra.mxu2 %v4398_v47  ;;  %2334 = vmatpush.bf16.msra.mxu3 %v4402_v48  ;;  %v4610_v47 = vor.u32 %v5340_v35, %v4607_v37  ;;  %v4614_v48 = vor.u32 %v5349_v40, %v4613_v39  ;;  %v4285_v35 = vld [vmem:[#allocation2 + $0x130] sm:$0xf]  ;;  %v5260_v37 = vld [vmem:[#allocation2 + $0x134] sm:$0xf]  ;;  %v4362_v39 = vor.u32 %v5277_v30, %v4359_v31 }
 0x81b   :  { %2347 = vmatpush.bf16.msra.mxu0 %v4406_v49  ;;  %v4541_v49 = vld [vmem:[#allocation2 + $0x330] sm:$0xf]  ;;  %v4287_v40 = vld [vmem:[#allocation2 + $0x170] sm:$0xf0] }
 0x81c   :  { %2360 = vmatpush.bf16.msra.mxu1 %v4410_v54  ;;  %v4543_v54 = vld [vmem:[#allocation2 + $0x370] sm:$0xf0]  ;;  %v4542_v61 = vor.u32 %v5332_v50, %v4541_v49  ;;  %v5252_v49 = vld [vmem:[#allocation2 + $0xec] sm:$0xf0] }
 0x81d   :  { %v5244_v50 = vld [vmem:[#allocation2 + $0xb4] sm:$0xf] }
 0x81e   :  { %2322 = vmatpush.bf16.msra.mxu2 %v4334_v62  ;;  %2335 = vmatpush.bf16.msra.mxu3 %v4338_v63  ;;  %v4546_v62 = vor.u32 %v5324_v51, %v4543_v54  ;;  %v4550_v63 = vor.u32 %v5333_v57, %v4549_v56  ;;  %v4298_v51 = vor.u32 %v5261_v44, %v4295_v43  ;;  %v4229_v54 = vld [vmem:[#allocation2 + $0xb8] sm:$0xf]  ;;  %v5245_v57 = vld [vmem:[#allocation2 + $0xbc] sm:$0xf] }
 0x81f   :  { %2348 = vmatpush.bf16.msra.mxu0 %v4342_v0  ;;  %v4477_v0 = vld [vmem:[#allocation2 + $0x2b0] sm:$0xf]  ;;  %v5253_v56 = vld [vmem:[#allocation2 + $0xf4] sm:$0xf0] }
 0x820   :  { %2361 = vmatpush.bf16.msra.mxu1 %v4346_v4  ;;  %v4479_v4 = vld [vmem:[#allocation2 + $0x2f0] sm:$0xf0]  ;;  %v4478_v9 = vor.u32 %v5316_v1, %v4477_v0  ;;  %v5236_v0 = vld [vmem:[#allocation2 + $0x6c] sm:$0xf0] }
 0x821   :  { %v5228_v1 = vld [vmem:[#allocation2 + $0x34] sm:$0xf] }
 0x822   :  { %2323 = vmatpush.bf16.msra.mxu2 %v4270_v10  ;;  %2336 = vmatpush.bf16.msra.mxu3 %v4274_v11  ;;  %v4482_v10 = vor.u32 %v5308_v2, %v4479_v4  ;;  %v4486_v11 = vor.u32 %v5317_v6, %v4485_v5  ;;  %v4234_v2 = vor.u32 %v5245_v57, %v4231_v59  ;;  %v4165_v4 = vld [vmem:[#allocation2 + $0x38] sm:$0xf]  ;;  %v5229_v6 = vld [vmem:[#allocation2 + $0x3c] sm:$0xf] }
 0x823   :  { %2349 = vmatpush.bf16.msra.mxu0 %v4278_v12  ;;  %v4413_v12 = vld [vmem:[#allocation2 + $0x230] sm:$0xf]  ;;  %v5237_v5 = vld [vmem:[#allocation2 + $0x74] sm:$0xf0] }
 0x824   :  { %2362 = vmatpush.bf16.msra.mxu1 %v4282_v16  ;;  %v4415_v16 = vld [vmem:[#allocation2 + $0x270] sm:$0xf0]  ;;  %v4414_v21 = vor.u32 %v5300_v13, %v4413_v12  ;;  %v1538_v12 = vld [vmem:[#allocation15] sm:$0xff] }
 0x825   :  { %v1544_v13 = vperm.slane %v1538_v12, 2  ;;  %v1542_v18 = vperm.slane %v1538_v12, 0  ;;  %v1543_v20 = vperm.slane %v1538_v12, 1  ;;  %v1548_v31 = vperm.slane %v1538_v12, 6 }
 0x826   :  { %2324 = vmatpush.bf16.msra.mxu2 %v4206_v22  ;;  %2337 = vmatpush.bf16.msra.mxu3 %v4210_v25  ;;  %v4418_v22 = vor.u32 %v5292_v14, %v4415_v16  ;;  %v5284_v25 = vld [vmem:[#allocation2 + $0x1ec] sm:$0xf0]  ;;  %v1545_v14 = vperm.slane %v1538_v12, 3 }
 0x827   :  { %2350 = vmatpush.bf16.msra.mxu0 %v4214_v26  ;;  %v5276_v26 = vld [vmem:[#allocation2 + $0x1b4] sm:$0xf]  ;;  %v4350_v32 = vor.u32 %v5284_v25, %v4349_v24 }
 0x828   :  { %2363 = vmatpush.bf16.msra.mxu1 %v4218_v29  ;;  %v5285_v29 = vld [vmem:[#allocation2 + $0x1f4] sm:$0xf0]  ;;  %v4354_v33 = vor.u32 %v5276_v26, %v4351_v27 }
 0x829   :  { %v4358_v34 = vor.u32 %v5285_v29, %v4357_v28 }
 0x82a   :  { %2325 = vmatpush.bf16.msra.mxu2 %v4142_v36  ;;  %2338 = vmatpush.bf16.msra.mxu3 %v4146_v41  ;;  %v5268_v36 = vld [vmem:[#allocation2 + $0x16c] sm:$0xf0]  ;;  %v4293_v41 = vld [vmem:[#allocation2 + $0x138] sm:$0xf] }
 0x82b   :  { %2351 = vmatpush.bf16.msra.mxu0 %v4150_v42  ;;  %v5269_v42 = vld [vmem:[#allocation2 + $0x174] sm:$0xf0] }
 0x82c   :  { %2364 = vmatpush.bf16.msra.mxu1 %v4154_v45  ;;  %v4286_v45 = vor.u32 %v5268_v36, %v4285_v35  ;;  %v1546_v36 = vperm.slane %v1538_v12, 4 }
 0x82d   :  { %2326 = vmatmul.bf16.vlgmr.msra.gmra.mxu2 %v6071_v55  ;;  %2339 = vmatmul.bf16.vlgmr.msra.gmra.mxu3 %v6071_v55 }
 0x82e   :  { %2370 = vmatpush.bf16.msrb.mxu2 %v4606_v46  ;;  %2383 = vmatpush.bf16.msrb.mxu3 %v4610_v47  ;;  %v4290_v46 = vor.u32 %v5260_v37, %v4287_v40  ;;  %v4294_v47 = vor.u32 %v5269_v42, %v4293_v41 }
 0x82f   :  { %2396 = vmatpush.bf16.msrb.mxu0 %v4614_v48  ;;  %2365 = vmatmul.bf16.vlgmr.msra.gmra.mxu1 %v6071_v55  ;;  %v4221_v48 = vld [vmem:[#allocation2 + $0xb0] sm:$0xf] }
 0x830   :  { %2409 = vmatpush.bf16.msrb.mxu1 %v4618_v52  ;;  %2352 = vmatmul.bf16.vlgmr.msra.gmra.mxu0 %v6071_v55  ;;  %v4223_v52 = vld [vmem:[#allocation2 + $0xf0] sm:$0xf0]  ;;  %v4222_v60 = vor.u32 %v5252_v49, %v4221_v48 }
 0x832   :  { %2371 = vmatpush.bf16.msrb.mxu2 %v4542_v61  ;;  %2384 = vmatpush.bf16.msrb.mxu3 %v4546_v62  ;;  %v4226_v61 = vor.u32 %v5244_v50, %v4223_v52  ;;  %v4230_v62 = vor.u32 %v5253_v56, %v4229_v54  ;;  %v1539_v52 = vld [vmem:[#allocation15 + $0x8] sm:$0xff] }
 0x833   :  { %2397 = vmatpush.bf16.msrb.mxu0 %v4550_v63  ;;  %v4157_v63 = vld [vmem:[#allocation2 + $0x30] sm:$0xf]  ;;  %v1552_v54 = vperm.slane %v1539_v52, 2  ;;  %v1553_v56 = vperm.slane %v1539_v52, 3 }
 0x834   :  { %2410 = vmatpush.bf16.msrb.mxu1 %v4554_v3  ;;  %v4159_v3 = vld [vmem:[#allocation2 + $0x70] sm:$0xf0]  ;;  %v4158_v8 = vor.u32 %v5236_v0, %v4157_v63  ;;  %v1551_v63 = vperm.slane %v1539_v52, 1 }
 0x836   :  { %2372 = vmatpush.bf16.msrb.mxu2 %v4478_v9  ;;  %2385 = vmatpush.bf16.msrb.mxu3 %v4482_v10  ;;  %v4162_v9 = vor.u32 %v5228_v1, %v4159_v3  ;;  %v4166_v10 = vor.u32 %v5237_v5, %v4165_v4 }
 0x837   :  { %2398 = vmatpush.bf16.msrb.mxu0 %v4486_v11  ;;  %v4170_v11 = vor.u32 %v5229_v6, %v4167_v7 }
 0x838   :  { %2411 = vmatpush.bf16.msrb.mxu1 %v4490_v15 }
 0x83a   :  { %2373 = vmatpush.bf16.msrb.mxu2 %v4414_v21  ;;  %2386 = vmatpush.bf16.msrb.mxu3 %v4418_v22 }
 0x83b   :  { %2399 = vmatpush.bf16.msrb.mxu0 %v4422_v23 }
 0x83c   :  { %2412 = vmatpush.bf16.msrb.mxu1 %v4426_v53 }
 0x83e   :  { %2374 = vmatpush.bf16.msrb.mxu2 %v4350_v32  ;;  %2387 = vmatpush.bf16.msrb.mxu3 %v4354_v33  ;;  %v1549_v32 = vperm.slane %v1538_v12, 7 }
 0x83f   :  { %2400 = vmatpush.bf16.msrb.mxu0 %v4358_v34 }
 0x840   :  { %2413 = vmatpush.bf16.msrb.mxu1 %v4362_v39  ;;  %v1547_v39 = vperm.slane %v1538_v12, 5  ;;  %v1556_v12 = vperm.slane %v1539_v52, 6 }
 0x842   :  { %2375 = vmatpush.bf16.msrb.mxu2 %v4286_v45  ;;  %2388 = vmatpush.bf16.msrb.mxu3 %v4290_v46 }
 0x843   :  { %2401 = vmatpush.bf16.msrb.mxu0 %v4294_v47 }
 0x844   :  { %2414 = vmatpush.bf16.msrb.mxu1 %v4298_v51 }
 0x846   :  { %2376 = vmatpush.bf16.msrb.mxu2 %v4222_v60  ;;  %2389 = vmatpush.bf16.msrb.mxu3 %v4226_v61  ;;  %v1550_v61 = vperm.slane %v1539_v52, 0 }
 0x847   :  { %2402 = vmatpush.bf16.msrb.mxu0 %v4230_v62 }
 0x848   :  { %2415 = vmatpush.bf16.msrb.mxu1 %v4234_v2 }
 0x84a   :  { %2377 = vmatpush.bf16.msrb.mxu2 %v4158_v8  ;;  %2390 = vmatpush.bf16.msrb.mxu3 %v4162_v9 }
 0x84b   :  { %2403 = vmatpush.bf16.msrb.mxu0 %v4166_v10 }
 0x84c   :  { %2416 = vmatpush.bf16.msrb.mxu1 %v4170_v11 }
 0x84d   :  { %2378 = vmatmul.bf16.vlgmr.msrb.gmra.mxu2 %v6071_v55  ;;  %2391 = vmatmul.bf16.vlgmr.msrb.gmra.mxu3 %v6071_v55 }
 0x84e   :  { %2404 = vmatmul.bf16.vlgmr.msrb.gmra.mxu0 %v6071_v55 }
 0x84f   :  { %2417 = vmatmul.bf16.vlgmr.msrb.gmra.mxu1 %v6071_v55 }
 0x86c   :  { %v2262_v17 = vpop.f32.mrf.mxu1 }
 0x86d   :  { %v2249_v15 = vpop.f32.mrf.mxu0  ;;  %v6091_v19 = vadd.f32 %v2262_v17, %v1545_v14 }
 0x86e   :  { %v6089_v16 = vadd.f32 %v2249_v15, %v1544_v13  ;;  %v1557_v13 = vperm.slane %v1539_v52, 7 }
 0x86f   :  { %v2425_v22 = vmax.f32 %v6091_v19, 0.0 }
 0x870   :  { %v2424_v21 = vmax.f32 %v6089_v16, 0.0  ;;  %v2223_v23 = vpop.f32.mrf.mxu2  ;;  %v2236_v25 = vpop.f32.mrf.mxu3 }
 0x871   :  { %v6095_v24 = vadd.f32 %v2223_v23, %v1542_v18  ;;  %v6097_v55 = vadd.f32 %v2236_v25, %v1543_v20  ;;  %v1554_v20 = vperm.slane %v1539_v52, 4  ;;  %v1555_v25 = vperm.slane %v1539_v52, 5 }
 0x873   :  { %v2422_v26 = vmax.f32 %v6095_v24, 0.0  ;;  %v2423_v27 = vmax.f32 %v6097_v55, 0.0 }
 0x874   :  { %v2264_v28 = vpop.f32.mrf.mxu1 }
 0x875   :  { %v2251_v53 = vpop.f32.mrf.mxu0 }
 0x878   :  { %v2225_v29 = vpop.f32.mrf.mxu2  ;;  %v2238_v30 = vpop.f32.mrf.mxu3 }
 0x88c   :  { %v2314_v35 = vpop.f32.mrf.mxu1 }
 0x88d   :  { %v2301_v33 = vpop.f32.mrf.mxu0  ;;  %v6103_v37 = vadd.f32 %v2314_v35, %v1549_v32 }
 0x88e   :  { %v6101_v34 = vadd.f32 %v2301_v33, %v1548_v31 }
 0x88f   :  { %v2429_v41 = vmax.f32 %v6103_v37, 0.0 }
 0x890   :  { %v2428_v40 = vmax.f32 %v6101_v34, 0.0  ;;  %v2275_v42 = vpop.f32.mrf.mxu2  ;;  %v2288_v43 = vpop.f32.mrf.mxu3 }
 0x891   :  { %v6107_v44 = vadd.f32 %v2275_v42, %v1546_v36  ;;  %v6109_v45 = vadd.f32 %v2288_v43, %v1547_v39 }
 0x893   :  { %v2426_v46 = vmax.f32 %v6107_v44, 0.0  ;;  %v2427_v48 = vmax.f32 %v6109_v45, 0.0 }
 0x894   :  { %v2316_v49 = vpop.f32.mrf.mxu1 }
 0x895   :  { %v2303_v47 = vpop.f32.mrf.mxu0 }
 0x898   :  { %v2277_v50 = vpop.f32.mrf.mxu2  ;;  %v2290_v51 = vpop.f32.mrf.mxu3 }
 0x8ac   :  { %v2366_v60 = vpop.f32.mrf.mxu1 }
 0x8ad   :  { %v2353_v57 = vpop.f32.mrf.mxu0  ;;  %v6115_v62 = vadd.f32 %v2366_v60, %v1553_v56 }
 0x8ae   :  { %v6113_v59 = vadd.f32 %v2353_v57, %v1552_v54 }
 0x8af   :  { %v2433_v1 = vmax.f32 %v6115_v62, 0.0 }
 0x8b0   :  { %v2432_v0 = vmax.f32 %v6113_v59, 0.0  ;;  %v2327_v2 = vpop.f32.mrf.mxu2  ;;  %v2340_v4 = vpop.f32.mrf.mxu3 }
 0x8b1   :  { %v6119_v3 = vadd.f32 %v2327_v2, %v1550_v61  ;;  %v6121_v5 = vadd.f32 %v2340_v4, %v1551_v63 }
 0x8b3   :  { %v2430_v6 = vmax.f32 %v6119_v3, 0.0  ;;  %v2431_v8 = vmax.f32 %v6121_v5, 0.0 }
 0x8b4   :  { %v2368_v9 = vpop.f32.mrf.mxu1 }
 0x8b5   :  { %v2355_v7 = vpop.f32.mrf.mxu0 }
 0x8b8   :  { %v2329_v10 = vpop.f32.mrf.mxu2  ;;  %v2342_v11 = vpop.f32.mrf.mxu3 }
 0x8cb   :  { %v2405_v14 = vpop.f32.mrf.mxu0 }
 0x8cc   :  { %v6125_v15 = vadd.f32 %v2405_v14, %v1556_v12  ;;  %v2418_v17 = vpop.f32.mrf.mxu1 }
 0x8cd   :  { %v6127_v18 = vadd.f32 %v2418_v17, %v1557_v13 }
 0x8ce   :  { %v2436_v23 = vmax.f32 %v6125_v15, 0.0 }
 0x8cf   :  { %v2437_v53 = vmax.f32 %v6127_v18, 0.0 }
 0x8d0   :  { %v2379_v28 = vpop.f32.mrf.mxu2  ;;  %v2392_v30 = vpop.f32.mrf.mxu3 }
 0x8d1   :  { %v6131_v29 = vadd.f32 %v2379_v28, %v1554_v20  ;;  %v6133_v31 = vadd.f32 %v2392_v30, %v1555_v25 }
 0x8d3   :  { %v2434_v32 = vmax.f32 %v6131_v29, 0.0  ;;  %v2407_v33 = vpop.f32.mrf.mxu0  ;;  %v2435_v35 = vmax.f32 %v6133_v31, 0.0 }
 0x8d4   :  { %v2420_v36 = vpop.f32.mrf.mxu1 }
 0x8d8   :  { %v2381_v39 = vpop.f32.mrf.mxu2  ;;  %v2394_v42 = vpop.f32.mrf.mxu3 }
 0x8d9   :  { %5803 = dma.done.wait [#allocation5 + $0x1], 16384 }
 0x8da   :  { %5804 = vsyncadd [#allocation5 + $0x1], 4294950912  ;;  %v5357_v43 = vld [vmem:[#allocation3 + $0x38] sm:$0xff]  ;;  %v5356_v51 = vld [vmem:[#allocation3 + $0x30] sm:$0xff]  ;;  %v2445_v24 = vpack.c.bf16 %v2425_v22, %v2425_v22  ;;  %v2449_v44 = vpack.c.bf16 %v2429_v41, %v2429_v41  ;;  %v2452_v3 = vpack.c.bf16 %v2432_v0, %v2432_v0  ;;  %v2457_v29 = vpack.c.bf16 %v2437_v53, %v2437_v53 }
 0x8db   :  { %v5365_v47 = vld [vmem:[#allocation3 + $0x78] sm:$0xff]  ;;  %3486 = vmatpush.bf16.msra.mxu2 %v5357_v43  ;;  %v5364_v52 = vld [vmem:[#allocation3 + $0x70] sm:$0xff]  ;;  %v5355_v57 = vld [vmem:[#allocation3 + $0x28] sm:$0xff] }
 0x8dc   :  { %v5373_v49 = vld [vmem:[#allocation3 + $0xb8] sm:$0xff]  ;;  %3499 = vmatpush.bf16.msra.mxu3 %v5365_v47  ;;  %v5372_v54 = vld [vmem:[#allocation3 + $0xb0] sm:$0xff]  ;;  %v5363_v60 = vld [vmem:[#allocation3 + $0x68] sm:$0xff] }
 0x8dd   :  { %v5381_v50 = vld [vmem:[#allocation3 + $0xf8] sm:$0xff]  ;;  %3512 = vmatpush.bf16.msra.mxu0 %v5373_v49  ;;  %v5380_v56 = vld [vmem:[#allocation3 + $0xf0] sm:$0xff]  ;;  %v5371_v61 = vld [vmem:[#allocation3 + $0xa8] sm:$0xff] }
 0x8de   :  { %3525 = vmatpush.bf16.msra.mxu1 %v5381_v50  ;;  %v5379_v63 = vld [vmem:[#allocation3 + $0xe8] sm:$0xff]  ;;  %v5354_v2 = vld [vmem:[#allocation3 + $0x20] sm:$0xff]  ;;  %v5353_v10 = vld [vmem:[#allocation3 + $0x18] sm:$0xff] }
 0x8df   :  { %3487 = vmatpush.bf16.msra.mxu2 %v5356_v51  ;;  %v5362_v4 = vld [vmem:[#allocation3 + $0x60] sm:$0xff]  ;;  %v5361_v11 = vld [vmem:[#allocation3 + $0x58] sm:$0xff]  ;;  %v5352_v14 = vld [vmem:[#allocation3 + $0x10] sm:$0xff] }
 0x8e0   :  { %3500 = vmatpush.bf16.msra.mxu3 %v5364_v52  ;;  %v5370_v7 = vld [vmem:[#allocation3 + $0xa0] sm:$0xff]  ;;  %v5369_v12 = vld [vmem:[#allocation3 + $0x98] sm:$0xff]  ;;  %v5360_v17 = vld [vmem:[#allocation3 + $0x50] sm:$0xff] }
 0x8e1   :  { %3513 = vmatpush.bf16.msra.mxu0 %v5372_v54  ;;  %v5378_v9 = vld [vmem:[#allocation3 + $0xe0] sm:$0xff]  ;;  %v5377_v13 = vld [vmem:[#allocation3 + $0xd8] sm:$0xff]  ;;  %v5368_v20 = vld [vmem:[#allocation3 + $0x90] sm:$0xff]  ;;  %v2442_v54 = vpack.c.bf16 %v2422_v26, %v2422_v26 }
 0x8e2   :  { %3526 = vmatpush.bf16.msra.mxu1 %v5380_v56  ;;  %v5376_v25 = vld [vmem:[#allocation3 + $0xd0] sm:$0xff]  ;;  %v5351_v28 = vld [vmem:[#allocation3 + $0x8] sm:$0xff]  ;;  %v5350_v39 = vld [vmem:[#allocation3] sm:$0xff]  ;;  %v2443_v56 = vpack.c.bf16 %v2423_v27, %v2423_v27 }
 0x8e3   :  { %3488 = vmatpush.bf16.msra.mxu2 %v5355_v57  ;;  %v5359_v30 = vld [vmem:[#allocation3 + $0x48] sm:$0xff]  ;;  %v5358_v42 = vld [vmem:[#allocation3 + $0x40] sm:$0xff]  ;;  %v5389_v43 = vld [vmem:[#allocation3 + $0x138] sm:$0xff] }
 0x8e4   :  { %3501 = vmatpush.bf16.msra.mxu3 %v5363_v60  ;;  %v5367_v33 = vld [vmem:[#allocation3 + $0x88] sm:$0xff]  ;;  %v5397_v47 = vld [vmem:[#allocation3 + $0x178] sm:$0xff]  ;;  %v5366_v49 = vld [vmem:[#allocation3 + $0x80] sm:$0xff] }
 0x8e5   :  { %3514 = vmatpush.bf16.msra.mxu0 %v5371_v61  ;;  %v5375_v36 = vld [vmem:[#allocation3 + $0xc8] sm:$0xff]  ;;  %v5374_v50 = vld [vmem:[#allocation3 + $0xc0] sm:$0xff]  ;;  %v5405_v51 = vld [vmem:[#allocation3 + $0x1b8] sm:$0xff]  ;;  %v2444_v61 = vpack.c.bf16 %v2424_v21, %v2424_v21 }
 0x8e6   :  { %3527 = vmatpush.bf16.msra.mxu1 %v5379_v63  ;;  %v5413_v52 = vld [vmem:[#allocation3 + $0x1f8] sm:$0xff]  ;;  %v5388_v57 = vld [vmem:[#allocation3 + $0x130] sm:$0xff]  ;;  %v5387_v27 = vld [vmem:[#allocation3 + $0x128] sm:$0xff] }
 0x8e7   :  { %3489 = vmatpush.bf16.msra.mxu2 %v5354_v2  ;;  %v5396_v60 = vld [vmem:[#allocation3 + $0x170] sm:$0xff]  ;;  %v5395_v63 = vld [vmem:[#allocation3 + $0x168] sm:$0xff]  ;;  %v5386_v19 = vld [vmem:[#allocation3 + $0x120] sm:$0xff] }
 0x8e8   :  { %3502 = vmatpush.bf16.msra.mxu3 %v5362_v4  ;;  %v5404_v26 = vld [vmem:[#allocation3 + $0x1b0] sm:$0xff]  ;;  %v5403_v16 = vld [vmem:[#allocation3 + $0x1a8] sm:$0xff]  ;;  %v5394_v22 = vld [vmem:[#allocation3 + $0x160] sm:$0xff] }
 0x8e9   :  { %3515 = vmatpush.bf16.msra.mxu0 %v5370_v7  ;;  %v5412_v55 = vld [vmem:[#allocation3 + $0x1f0] sm:$0xff]  ;;  %v5411_v21 = vld [vmem:[#allocation3 + $0x1e8] sm:$0xff]  ;;  %v5402_v2 = vld [vmem:[#allocation3 + $0x1a0] sm:$0xff] }
 0x8ea   :  { %3528 = vmatpush.bf16.msra.mxu1 %v5378_v9  ;;  %v5410_v4 = vld [vmem:[#allocation3 + $0x1e0] sm:$0xff]  ;;  %v5385_v7 = vld [vmem:[#allocation3 + $0x118] sm:$0xff]  ;;  %v5444_v45 = vld [vmem:[#allocation3 + $0x2f0] sm:$0xff] }
 0x8eb   :  { %3490 = vmatpush.bf16.msra.mxu2 %v5353_v10  ;;  %v5393_v9 = vld [vmem:[#allocation3 + $0x158] sm:$0xff]  ;;  %v5435_v34 = vld [vmem:[#allocation3 + $0x2a8] sm:$0xff]  ;;  %v5418_v37 = vld [vmem:[#allocation3 + $0x220] sm:$0xff] }
 0x8ec   :  { %3503 = vmatpush.bf16.msra.mxu3 %v5361_v11  ;;  %v5401_v10 = vld [vmem:[#allocation3 + $0x198] sm:$0xff]  ;;  %v5426_v41 = vld [vmem:[#allocation3 + $0x260] sm:$0xff]  ;;  %v5468_v5 = vld [vmem:[#allocation3 + $0x3b0] sm:$0xff] }
 0x8ed   :  { %3516 = vmatpush.bf16.msra.mxu0 %v5369_v12  ;;  %v5409_v11 = vld [vmem:[#allocation3 + $0x1d8] sm:$0xff]  ;;  %v5384_v12 = vld [vmem:[#allocation3 + $0x110] sm:$0xff]  ;;  %v5467_v59 = vld [vmem:[#allocation3 + $0x3a8] sm:$0xff] }
 0x8ee   :  { %3529 = vmatpush.bf16.msra.mxu1 %v5377_v13  ;;  %v5392_v13 = vld [vmem:[#allocation3 + $0x150] sm:$0xff]  ;;  %v5475_v0 = vld [vmem:[#allocation3 + $0x3e8] sm:$0xff]  ;;  %v5450_v62 = vld [vmem:[#allocation3 + $0x320] sm:$0xff] }
 0x8ef   :  { %3491 = vmatpush.bf16.msra.mxu2 %v5352_v14  ;;  %v5400_v14 = vld [vmem:[#allocation3 + $0x190] sm:$0xff] }
 0x8f0   :  { %3504 = vmatpush.bf16.msra.mxu3 %v5360_v17  ;;  %v5408_v17 = vld [vmem:[#allocation3 + $0x1d0] sm:$0xff] }
 0x8f1   :  { %3517 = vmatpush.bf16.msra.mxu0 %v5368_v20  ;;  %v5383_v20 = vld [vmem:[#allocation3 + $0x108] sm:$0xff] }
 0x8f2   :  { %3530 = vmatpush.bf16.msra.mxu1 %v5376_v25  ;;  %v5391_v25 = vld [vmem:[#allocation3 + $0x148] sm:$0xff] }
 0x8f3   :  { %3492 = vmatpush.bf16.msra.mxu2 %v5351_v28  ;;  %v5399_v28 = vld [vmem:[#allocation3 + $0x188] sm:$0xff] }
 0x8f4   :  { %3505 = vmatpush.bf16.msra.mxu3 %v5359_v30  ;;  %v5407_v30 = vld [vmem:[#allocation3 + $0x1c8] sm:$0xff] }
 0x8f5   :  { %3518 = vmatpush.bf16.msra.mxu0 %v5367_v33  ;;  %v5382_v33 = vld [vmem:[#allocation3 + $0x100] sm:$0xff] }
 0x8f6   :  { %3531 = vmatpush.bf16.msra.mxu1 %v5375_v36  ;;  %v5390_v36 = vld [vmem:[#allocation3 + $0x140] sm:$0xff] }
 0x8f7   :  { %3493 = vmatpush.bf16.msra.mxu2 %v5350_v39  ;;  %v5421_v39 = vld [vmem:[#allocation3 + $0x238] sm:$0xff] }
 0x8f8   :  { %3506 = vmatpush.bf16.msra.mxu3 %v5358_v42  ;;  %v5429_v42 = vld [vmem:[#allocation3 + $0x278] sm:$0xff] }
 0x8f9   :  { %3519 = vmatpush.bf16.msra.mxu0 %v5366_v49  ;;  %v5437_v49 = vld [vmem:[#allocation3 + $0x2b8] sm:$0xff] }
 0x8fa   :  { %3532 = vmatpush.bf16.msra.mxu1 %v5374_v50  ;;  %3494 = vmatmul.bf16.vlgmr.msra.gmra.mxu2 %v2442_v54  ;;  %v5445_v50 = vld [vmem:[#allocation3 + $0x2f8] sm:$0xff]  ;;  %v5420_v54 = vld [vmem:[#allocation3 + $0x230] sm:$0xff] }
 0x8fb   :  { %3538 = vmatpush.bf16.msrb.mxu2 %v5389_v43  ;;  %3507 = vmatmul.bf16.vlgmr.msra.gmra.mxu3 %v2443_v56  ;;  %v5398_v43 = vld [vmem:[#allocation3 + $0x180] sm:$0xff]  ;;  %v5428_v56 = vld [vmem:[#allocation3 + $0x270] sm:$0xff] }
 0x8fc   :  { %3551 = vmatpush.bf16.msrb.mxu3 %v5397_v47  ;;  %3520 = vmatmul.bf16.vlgmr.msra.gmra.mxu0 %v2444_v61  ;;  %v5406_v47 = vld [vmem:[#allocation3 + $0x1c0] sm:$0xff] }
 0x8fd   :  { %3564 = vmatpush.bf16.msrb.mxu0 %v5405_v51  ;;  %3533 = vmatmul.bf16.vlgmr.msra.gmra.mxu1 %v2445_v24  ;;  %v2446_v51 = vpack.c.bf16 %v2426_v46, %v2426_v46  ;;  %v5436_v46 = vld [vmem:[#allocation3 + $0x2b0] sm:$0xff]  ;;  %v5434_v61 = vld [vmem:[#allocation3 + $0x2a0] sm:$0xff] }
 0x8fe   :  { %3577 = vmatpush.bf16.msrb.mxu1 %v5413_v52  ;;  %v2447_v52 = vpack.c.bf16 %v2427_v48, %v2427_v48  ;;  %v5419_v48 = vld [vmem:[#allocation3 + $0x228] sm:$0xff]  ;;  %v5442_v24 = vld [vmem:[#allocation3 + $0x2e0] sm:$0xff] }
 0x8ff   :  { %3539 = vmatpush.bf16.msrb.mxu2 %v5388_v57  ;;  %v2448_v57 = vpack.c.bf16 %v2428_v40, %v2428_v40  ;;  %v5443_v40 = vld [vmem:[#allocation3 + $0x2e8] sm:$0xff] }
 0x900   :  { %3552 = vmatpush.bf16.msrb.mxu3 %v5396_v60  ;;  %v5427_v60 = vld [vmem:[#allocation3 + $0x268] sm:$0xff] }
 0x901   :  { %3565 = vmatpush.bf16.msrb.mxu0 %v5404_v26  ;;  %v5417_v26 = vld [vmem:[#allocation3 + $0x218] sm:$0xff] }
 0x902   :  { %3578 = vmatpush.bf16.msrb.mxu1 %v5412_v55  ;;  %v5425_v55 = vld [vmem:[#allocation3 + $0x258] sm:$0xff] }
 0x903   :  { %3540 = vmatpush.bf16.msrb.mxu2 %v5387_v27  ;;  %v5433_v27 = vld [vmem:[#allocation3 + $0x298] sm:$0xff] }
 0x904   :  { %3553 = vmatpush.bf16.msrb.mxu3 %v5395_v63  ;;  %v5441_v63 = vld [vmem:[#allocation3 + $0x2d8] sm:$0xff] }
 0x905   :  { %3566 = vmatpush.bf16.msrb.mxu0 %v5403_v16  ;;  %v5416_v16 = vld [vmem:[#allocation3 + $0x210] sm:$0xff] }
 0x906   :  { %3579 = vmatpush.bf16.msrb.mxu1 %v5411_v21  ;;  %v5424_v21 = vld [vmem:[#allocation3 + $0x250] sm:$0xff] }
 0x907   :  { %3541 = vmatpush.bf16.msrb.mxu2 %v5386_v19  ;;  %v5432_v19 = vld [vmem:[#allocation3 + $0x290] sm:$0xff] }
 0x908   :  { %3554 = vmatpush.bf16.msrb.mxu3 %v5394_v22  ;;  %v5440_v22 = vld [vmem:[#allocation3 + $0x2d0] sm:$0xff] }
 0x909   :  { %3567 = vmatpush.bf16.msrb.mxu0 %v5402_v2  ;;  %v5415_v2 = vld [vmem:[#allocation3 + $0x208] sm:$0xff] }
 0x90a   :  { %3580 = vmatpush.bf16.msrb.mxu1 %v5410_v4  ;;  %v5423_v4 = vld [vmem:[#allocation3 + $0x248] sm:$0xff] }
 0x90b   :  { %3542 = vmatpush.bf16.msrb.mxu2 %v5385_v7  ;;  %v5431_v7 = vld [vmem:[#allocation3 + $0x288] sm:$0xff] }
 0x90c   :  { %3555 = vmatpush.bf16.msrb.mxu3 %v5393_v9  ;;  %v5439_v9 = vld [vmem:[#allocation3 + $0x2c8] sm:$0xff] }
 0x90d   :  { %3568 = vmatpush.bf16.msrb.mxu0 %v5401_v10  ;;  %v5414_v10 = vld [vmem:[#allocation3 + $0x200] sm:$0xff] }
 0x90e   :  { %3581 = vmatpush.bf16.msrb.mxu1 %v5409_v11  ;;  %v5422_v11 = vld [vmem:[#allocation3 + $0x240] sm:$0xff] }
 0x90f   :  { %3543 = vmatpush.bf16.msrb.mxu2 %v5384_v12  ;;  %v5453_v12 = vld [vmem:[#allocation3 + $0x338] sm:$0xff] }
 0x910   :  { %3556 = vmatpush.bf16.msrb.mxu3 %v5392_v13  ;;  %v5461_v13 = vld [vmem:[#allocation3 + $0x378] sm:$0xff] }
 0x911   :  { %3569 = vmatpush.bf16.msrb.mxu0 %v5400_v14  ;;  %v5430_v14 = vld [vmem:[#allocation3 + $0x280] sm:$0xff] }
 0x912   :  { %3582 = vmatpush.bf16.msrb.mxu1 %v5408_v17  ;;  %v5438_v17 = vld [vmem:[#allocation3 + $0x2c0] sm:$0xff] }
 0x913   :  { %3544 = vmatpush.bf16.msrb.mxu2 %v5383_v20  ;;  %v2450_v20 = vpack.c.bf16 %v2430_v6, %v2430_v6  ;;  %v2453_v6 = vpack.c.bf16 %v2433_v1, %v2433_v1  ;;  %v5458_v1 = vld [vmem:[#allocation3 + $0x360] sm:$0xff] }
 0x914   :  { %3557 = vmatpush.bf16.msrb.mxu3 %v5391_v25  ;;  %v5469_v25 = vld [vmem:[#allocation3 + $0x3b8] sm:$0xff] }
 0x915   :  { %3570 = vmatpush.bf16.msrb.mxu0 %v5399_v28  ;;  %v2451_v28 = vpack.c.bf16 %v2431_v8, %v2431_v8  ;;  %v5476_v8 = vld [vmem:[#allocation3 + $0x3f0] sm:$0xff] }
 0x916   :  { %3583 = vmatpush.bf16.msrb.mxu1 %v5407_v30  ;;  %v5477_v30 = vld [vmem:[#allocation3 + $0x3f8] sm:$0xff] }
 0x917   :  { %3545 = vmatpush.bf16.msrb.mxu2 %v5382_v33  ;;  %v5452_v33 = vld [vmem:[#allocation3 + $0x330] sm:$0xff] }
 0x918   :  { %3558 = vmatpush.bf16.msrb.mxu3 %v5390_v36  ;;  %v5460_v36 = vld [vmem:[#allocation3 + $0x370] sm:$0xff] }
 0x919   :  { %3571 = vmatpush.bf16.msrb.mxu0 %v5398_v43  ;;  %v5466_v43 = vld [vmem:[#allocation3 + $0x3a0] sm:$0xff] }
 0x91a   :  { %3584 = vmatpush.bf16.msrb.mxu1 %v5406_v47  ;;  %3546 = vmatmul.bf16.vlgmr.msrb.gmra.mxu2 %v2446_v51  ;;  %v5474_v47 = vld [vmem:[#allocation3 + $0x3e0] sm:$0xff]  ;;  %v5465_v51 = vld [vmem:[#allocation3 + $0x398] sm:$0xff] }
 0x91b   :  { %3590 = vmatpush.bf16.msra.mxu2 %v5421_v39  ;;  %3559 = vmatmul.bf16.vlgmr.msrb.gmra.mxu3 %v2447_v52  ;;  %v5451_v39 = vld [vmem:[#allocation3 + $0x328] sm:$0xff]  ;;  %v5473_v52 = vld [vmem:[#allocation3 + $0x3d8] sm:$0xff] }
 0x91c   :  { %3603 = vmatpush.bf16.msra.mxu3 %v5429_v42  ;;  %3572 = vmatmul.bf16.vlgmr.msrb.gmra.mxu0 %v2448_v57  ;;  %v5459_v42 = vld [vmem:[#allocation3 + $0x368] sm:$0xff]  ;;  %v5464_v57 = vld [vmem:[#allocation3 + $0x390] sm:$0xff] }
 0x91d   :  { %3616 = vmatpush.bf16.msra.mxu0 %v5437_v49  ;;  %3585 = vmatmul.bf16.vlgmr.msrb.gmra.mxu1 %v2449_v44  ;;  %v5449_v49 = vld [vmem:[#allocation3 + $0x318] sm:$0xff]  ;;  %v5472_v44 = vld [vmem:[#allocation3 + $0x3d0] sm:$0xff] }
 0x91e   :  { %3629 = vmatpush.bf16.msra.mxu1 %v5445_v50  ;;  %v5457_v50 = vld [vmem:[#allocation3 + $0x358] sm:$0xff] }
 0x91f   :  { %3591 = vmatpush.bf16.msra.mxu2 %v5420_v54  ;;  %v5448_v54 = vld [vmem:[#allocation3 + $0x310] sm:$0xff] }
 0x920   :  { %3604 = vmatpush.bf16.msra.mxu3 %v5428_v56  ;;  %v5456_v56 = vld [vmem:[#allocation3 + $0x350] sm:$0xff] }
 0x921   :  { %3617 = vmatpush.bf16.msra.mxu0 %v5436_v46  ;;  %v5447_v46 = vld [vmem:[#allocation3 + $0x308] sm:$0xff] }
 0x922   :  { %3630 = vmatpush.bf16.msra.mxu1 %v5444_v45  ;;  %v5455_v45 = vld [vmem:[#allocation3 + $0x348] sm:$0xff] }
 0x923   :  { %3592 = vmatpush.bf16.msra.mxu2 %v5419_v48  ;;  %v5463_v48 = vld [vmem:[#allocation3 + $0x388] sm:$0xff] }
 0x924   :  { %3605 = vmatpush.bf16.msra.mxu3 %v5427_v60  ;;  %v5471_v60 = vld [vmem:[#allocation3 + $0x3c8] sm:$0xff] }
 0x925   :  { %3618 = vmatpush.bf16.msra.mxu0 %v5435_v34  ;;  %v5446_v34 = vld [vmem:[#allocation3 + $0x300] sm:$0xff] }
 0x926   :  { %3631 = vmatpush.bf16.msra.mxu1 %v5443_v40  ;;  %v5454_v40 = vld [vmem:[#allocation3 + $0x340] sm:$0xff] }
 0x927   :  { %3593 = vmatpush.bf16.msra.mxu2 %v5418_v37  ;;  %v5462_v37 = vld [vmem:[#allocation3 + $0x380] sm:$0xff] }
 0x928   :  { %3606 = vmatpush.bf16.msra.mxu3 %v5426_v41  ;;  %v2454_v41 = vpack.c.bf16 %v2434_v32, %v2434_v32 }
 0x929   :  { %3619 = vmatpush.bf16.msra.mxu0 %v5434_v61  ;;  %v2455_v61 = vpack.c.bf16 %v2435_v35, %v2435_v35  ;;  %v5547_v35 = vld [vmem:[%s6215_s12] ss:$0 sm:$0xff] }
 0x92a   :  { %3632 = vmatpush.bf16.msra.mxu1 %v5442_v24  ;;  %v5470_v24 = vld [vmem:[#allocation3 + $0x3c0] sm:$0xff] }
 0x92b   :  { %3594 = vmatpush.bf16.msra.mxu2 %v5417_v26  ;;  %v2456_v26 = vpack.c.bf16 %v2436_v23, %v2436_v23 }
 0x92c   :  { %3607 = vmatpush.bf16.msra.mxu3 %v5425_v55 }
 0x92d   :  { %3620 = vmatpush.bf16.msra.mxu0 %v5433_v27 }
 0x92e   :  { %3633 = vmatpush.bf16.msra.mxu1 %v5441_v63 }
 0x92f   :  { %3595 = vmatpush.bf16.msra.mxu2 %v5416_v16 }
 0x930   :  { %3608 = vmatpush.bf16.msra.mxu3 %v5424_v21 }
 0x931   :  { %3621 = vmatpush.bf16.msra.mxu0 %v5432_v19 }
 0x932   :  { %3634 = vmatpush.bf16.msra.mxu1 %v5440_v22 }
 0x933   :  { %3596 = vmatpush.bf16.msra.mxu2 %v5415_v2 }
 0x934   :  { %3609 = vmatpush.bf16.msra.mxu3 %v5423_v4 }
 0x935   :  { %3622 = vmatpush.bf16.msra.mxu0 %v5431_v7 }
 0x936   :  { %3635 = vmatpush.bf16.msra.mxu1 %v5439_v9 }
 0x937   :  { %3597 = vmatpush.bf16.msra.mxu2 %v5414_v10 }
 0x938   :  { %3610 = vmatpush.bf16.msra.mxu3 %v5422_v11 }
 0x939   :  { %3623 = vmatpush.bf16.msra.mxu0 %v5430_v14 }
 0x93a   :  { %3636 = vmatpush.bf16.msra.mxu1 %v5438_v17  ;;  %3598 = vmatmul.bf16.vlgmr.msra.gmra.mxu2 %v2450_v20 }
 0x93b   :  { %3642 = vmatpush.bf16.msrb.mxu2 %v5453_v12  ;;  %3611 = vmatmul.bf16.vlgmr.msra.gmra.mxu3 %v2451_v28 }
 0x93c   :  { %3655 = vmatpush.bf16.msrb.mxu3 %v5461_v13  ;;  %3624 = vmatmul.bf16.vlgmr.msra.gmra.mxu0 %v2452_v3 }
 0x93d   :  { %3668 = vmatpush.bf16.msrb.mxu0 %v5469_v25  ;;  %3637 = vmatmul.bf16.vlgmr.msra.gmra.mxu1 %v2453_v6 }
 0x93e   :  { %3681 = vmatpush.bf16.msrb.mxu1 %v5477_v30 }
 0x93f   :  { %3643 = vmatpush.bf16.msrb.mxu2 %v5452_v33 }
 0x940   :  { %3656 = vmatpush.bf16.msrb.mxu3 %v5460_v36 }
 0x941   :  { %3669 = vmatpush.bf16.msrb.mxu0 %v5468_v5 }
 0x942   :  { %3682 = vmatpush.bf16.msrb.mxu1 %v5476_v8 }
 0x943   :  { %3644 = vmatpush.bf16.msrb.mxu2 %v5451_v39 }
 0x944   :  { %3657 = vmatpush.bf16.msrb.mxu3 %v5459_v42 }
 0x945   :  { %3670 = vmatpush.bf16.msrb.mxu0 %v5467_v59 }
 0x946   :  { %3683 = vmatpush.bf16.msrb.mxu1 %v5475_v0 }
 0x947   :  { %3645 = vmatpush.bf16.msrb.mxu2 %v5450_v62 }
 0x948   :  { %3658 = vmatpush.bf16.msrb.mxu3 %v5458_v1 }
 0x949   :  { %3671 = vmatpush.bf16.msrb.mxu0 %v5466_v43 }
 0x94a   :  { %3684 = vmatpush.bf16.msrb.mxu1 %v5474_v47 }
 0x94b   :  { %3646 = vmatpush.bf16.msrb.mxu2 %v5449_v49 }
 0x94c   :  { %3659 = vmatpush.bf16.msrb.mxu3 %v5457_v50 }
 0x94d   :  { %3672 = vmatpush.bf16.msrb.mxu0 %v5465_v51 }
 0x94e   :  { %3685 = vmatpush.bf16.msrb.mxu1 %v5473_v52 }
 0x94f   :  { %3647 = vmatpush.bf16.msrb.mxu2 %v5448_v54 }
 0x950   :  { %3660 = vmatpush.bf16.msrb.mxu3 %v5456_v56 }
 0x951   :  { %3673 = vmatpush.bf16.msrb.mxu0 %v5464_v57 }
 0x952   :  { %3686 = vmatpush.bf16.msrb.mxu1 %v5472_v44 }
 0x953   :  { %3648 = vmatpush.bf16.msrb.mxu2 %v5447_v46 }
 0x954   :  { %3661 = vmatpush.bf16.msrb.mxu3 %v5455_v45 }
 0x955   :  { %3674 = vmatpush.bf16.msrb.mxu0 %v5463_v48 }
 0x956   :  { %3687 = vmatpush.bf16.msrb.mxu1 %v5471_v60 }
 0x957   :  { %3649 = vmatpush.bf16.msrb.mxu2 %v5446_v34 }
 0x958   :  { %3662 = vmatpush.bf16.msrb.mxu3 %v5454_v40 }
 0x959   :  { %3675 = vmatpush.bf16.msrb.mxu0 %v5462_v37 }
 0x95a   :  { %3650 = vmatmul.bf16.vlgmr.msrb.gmra.mxu2 %v2454_v41  ;;  %3688 = vmatpush.bf16.msrb.mxu1 %v5470_v24 }
 0x95b   :  { %3663 = vmatmul.bf16.vlgmr.msrb.gmra.mxu3 %v2455_v61 }
 0x95c   :  { %3676 = vmatmul.bf16.vlgmr.msrb.gmra.mxu0 %v2456_v26 }
 0x95d   :  { %3689 = vmatmul.bf16.vlgmr.msrb.gmra.mxu1 %v2457_v29 }
 0x979   :  { %v3521_v31 = vpop.f32.mrf.mxu0 }
 0x97a   :  { %v3534_v32 = vpop.f32.mrf.mxu1 }
 0x97d   :  { %v3495_v55 = vpop.f32.mrf.mxu2 }
 0x97e   :  { %v3508_v15 = vpop.f32.mrf.mxu3  ;;  %v3496_v27 = vadd.f32 %v5547_v35, %v3495_v55 }
 0x980   :  { %v3509_v23 = vadd.f32 %v3508_v15, %v3496_v27 }
 0x981   :  { %v3523_v63 = vpop.f32.mrf.mxu0 }
 0x982   :  { %v3536_v16 = vpop.f32.mrf.mxu1  ;;  %v3522_v21 = vadd.f32 %v3521_v31, %v3509_v23 }
 0x984   :  { %v3535_v19 = vadd.f32 %v3534_v32, %v3522_v21 }
 0x985   :  { %v3497_v18 = vpop.f32.mrf.mxu2 }
 0x986   :  { %v3510_v22 = vpop.f32.mrf.mxu3 }
 0x999   :  { %v3573_v53 = vpop.f32.mrf.mxu0 }
 0x99a   :  { %v3586_v2 = vpop.f32.mrf.mxu1 }
 0x99d   :  { %v3547_v4 = vpop.f32.mrf.mxu2 }
 0x99e   :  { %v3560_v7 = vpop.f32.mrf.mxu3  ;;  %v3548_v25 = vadd.f32 %v3547_v4, %v3535_v19 }
 0x9a0   :  { %v3561_v33 = vadd.f32 %v3560_v7, %v3548_v25 }
 0x9a1   :  { %v3575_v9 = vpop.f32.mrf.mxu0 }
 0x9a2   :  { %v3588_v10 = vpop.f32.mrf.mxu1  ;;  %v3574_v6 = vadd.f32 %v3573_v53, %v3561_v33 }
 0x9a4   :  { %v3587_v5 = vadd.f32 %v3586_v2, %v3574_v6 }
 0x9a5   :  { %v3549_v11 = vpop.f32.mrf.mxu2 }
 0x9a6   :  { %v3562_v12 = vpop.f32.mrf.mxu3 }
 0x9b9   :  { %v3625_v13 = vpop.f32.mrf.mxu0 }
 0x9ba   :  { %v3638_v14 = vpop.f32.mrf.mxu1 }
 0x9bd   :  { %v3599_v17 = vpop.f32.mrf.mxu2 }
 0x9be   :  { %v3612_v20 = vpop.f32.mrf.mxu3  ;;  %v3600_v8 = vadd.f32 %v3599_v17, %v3587_v5 }
 0x9c0   :  { %v3613_v39 = vadd.f32 %v3612_v20, %v3600_v8 }
 0x9c1   :  { %v3627_v28 = vpop.f32.mrf.mxu0 }
 0x9c2   :  { %v3640_v30 = vpop.f32.mrf.mxu1  ;;  %v3626_v42 = vadd.f32 %v3625_v13, %v3613_v39 }
 0x9c4   :  { %v3639_v62 = vadd.f32 %v3638_v14, %v3626_v42 }
 0x9c5   :  { %v3601_v36 = vpop.f32.mrf.mxu2 }
 0x9c6   :  { %v3614_v3 = vpop.f32.mrf.mxu3 }
 0x9d9   :  { %v3677_v59 = vpop.f32.mrf.mxu0 }
 0x9da   :  { %v3690_v0 = vpop.f32.mrf.mxu1 }
 0x9dd   :  { %v3651_v1 = vpop.f32.mrf.mxu2 }
 0x9de   :  { %v3664_v43 = vpop.f32.mrf.mxu3  ;;  %v3652_v47 = vadd.f32 %v3651_v1, %v3639_v62 }
 0x9e0   :  { %v3665_v49 = vadd.f32 %v3664_v43, %v3652_v47 }
 0x9e1   :  { %v3679_v50 = vpop.f32.mrf.mxu0 }
 0x9e2   :  { %v3678_v51 = vadd.f32 %v3677_v59, %v3665_v49  ;;  %v3692_v52 = vpop.f32.mrf.mxu1 }
 0x9e4   :  { %v3691_v54 = vadd.f32 %v3690_v0, %v3678_v51 }
 0x9e5   :  { %v3653_v56 = vpop.f32.mrf.mxu2 }
 0x9e6   :  { %v3666_v57 = vpop.f32.mrf.mxu3  ;;  %v3694_v44 = vadd.f32 %v3691_v54, %v6067_v58  ;;  %v5548_v58 = vld [vmem:[%s6216_s13] ss:$0 sm:$0xff] }
 0x9e8   :  { %3697 = vadd.xlane.f32.xlu0 %v3694_v44 }
 0xa5b   :  { %v3698_v46 = vpop.xlane.xlu0 %3697 }
 0xa5c   :  { %v3699_v45 = vmul.f32 %v3698_v46, %v6048_v38 }
 0xa5e   :  { %v3700_v48 = vsub.f32 %v3694_v44, %v3699_v45 }
 0xa60   :  { %v3701_v60 = vmul.f32 %v3700_v48, %v3700_v48 }
 0xa62   :  { %3702 = vadd.xlane.f32.xlu0 %v3701_v60 }
 0xad5   :  { %v3703_v34 = vpop.xlane.xlu0 %3702 }
 0xad6   :  { %v3704_v40 = vmul.f32 %v3703_v34, %v6048_v38  ;;  %v5549_v38 = vld [vmem:[%s6217_s14] ss:$0 sm:$0xff] }
 0xad8   :  { %v3705_v37 = vadd.f32 1e-05, %v3704_v40 }
 0xada   :  { %5550 = vrsqrt.f32 %v3705_v37  ;;  %vm3712_vm7 = vweird.f32 %v3705_v37 }
 0xae0   :  { %v5551_v41 = vpop.eup %5550 }
 0xae1   :  { %v3707_v61 = vmul.f32 %v5551_v41, %v3705_v37  ;;  %vm3713_vm6 = vweird.f32 %v5551_v41 }
 0xae2   :  { %vm3714_vm8 = vmor %vm3712_vm7, %vm3713_vm6 }
 0xae3   :  { %v3708_v24 = vmul.f32 %v5551_v41, %v3707_v61 }
 0xae5   :  { %v3709_v26 = vmul.f32 0.5, %v3708_v24 }
 0xae7   :  { %v3710_v29 = vsub.f32 1.5, %v3709_v26 }
 0xae9   :  { %v3711_v31 = vmul.f32 %v5551_v41, %v3710_v29 }
 0xaeb   :  { %v3715_v32 = vsel %vm3714_vm8, %v5551_v41, %v3711_v31 }
 0xaec   :  { %v3716_v35 = vmul.f32 %v3715_v32, %v3700_v48 }
 0xaee   :  { %v3720_v55 = vmul.f32 %v5548_v58, %v3716_v35 }
 0xaf0   :  { %v3724_v15 = vadd.f32 %v5549_v38, %v3720_v55 }
 0xaf1   :  { %5805 = dma.done.wait [#allocation5 + $0x2], 1024 }
 0xaf2   :  { %5806 = vsyncadd [#allocation5 + $0x2], 4294966272  ;;  %v5485_v27 = vld [vmem:[#allocation4 + $0x38] sm:$0xff]  ;;  %v5484_v23 = vld [vmem:[#allocation4 + $0x30] sm:$0xff]  ;;  %v3728_v53 = vpack.c.bf16 %v3724_v15, %v3724_v15  ;;  %s6230_s28 = sld [smem:[#allocation36_spill]]  ;;  %s5829_s0 = smov [#allocation17]  }
 0xaf3   :  { %3797 = vmatpush.bf16.msra.mxu2 %v5485_v27  ;;  %v5483_v63 = vld [vmem:[#allocation4 + $0x28] sm:$0xff]  ;;  %v5482_v16 = vld [vmem:[#allocation4 + $0x20] sm:$0xff]  ;;  %v5481_v21 = vld [vmem:[#allocation4 + $0x18] sm:$0xff]  ;;  %s3816_s3 = sshll.u32 %s5829_s0, 4  ;;  %s6231_s27 = sld [smem:[#allocation37_spill]]  ;;  %s3817_s3 = int_to_ptr.vmem [resolvable:$true] %s3816_s3 }
 0xaf4   :  { %v5480_v19 = vld [vmem:[#allocation4 + $0x10] sm:$0xff]  ;;  %v5479_v18 = vld [vmem:[#allocation4 + $0x8] sm:$0xff]  ;;  %v5478_v22 = vld [vmem:[#allocation4] sm:$0xff] }
 0xaf7   :  { %3798 = vmatpush.bf16.msra.mxu2 %v5484_v23 }
 0xaf8   :  { %v5552_v2 = vld [vmem:[%s6230_s28] ss:$0 sm:$0xff] }
 0xaf9   :  { %s3818_s29 = sshll.u32 %s6231_s27, 4  ;;  %s3819_s29 = int_to_ptr.hbm [resolvable:$true] %s3818_s29 }
 0xafb   :  { %3799 = vmatpush.bf16.msra.mxu2 %v5483_v63 }
 0xaff   :  { %3800 = vmatpush.bf16.msra.mxu2 %v5482_v16 }
 0xb03   :  { %3801 = vmatpush.bf16.msra.mxu2 %v5481_v21 }
 0xb07   :  { %3802 = vmatpush.bf16.msra.mxu2 %v5480_v19 }
 0xb0b   :  { %3803 = vmatpush.bf16.msra.mxu2 %v5479_v18 }
 0xb0f   :  { %3804 = vmatpush.bf16.msra.mxu2 %v5478_v22 }
 0xb12   :  { %3805 = vmatmul.bf16.vlgmr.msra.gmra.mxu2 %v3728_v53 }
 0xb95   :  { %v3806_v4 = vpop.f32.mrf.mxu2 }
 0xb96   :  { %v3807_v7 = vadd.f32 %v5552_v2, %v3806_v4 }
 0xb98   :  { %3810 = vst [vmem:[#allocation17] sm:$0xff] %v3807_v7 }
 0xb99   :  { %3821 = dma.vmem_to_hbm [thread:$0]  %s3817_s3, 128, %s3819_s29, [#allocation8]  }
 0xb9d   :  { %v3808_v9 = vpop.f32.mrf.mxu2 }
 0xb9e   :  { %5807 = dma.done.wait [#allocation8], 128  }
 0xb9f   :  { %5808 = vsyncadd [#allocation8], 4294967168 }
 0xba0   :  { %3826 = vsyncpa [#allocation7], 1 }
 0xba1   :  { %3827 = vsyncpa [#allocation10], 1 }
 0xba2   :  { %3828 = vsyncpa [#allocation13], 1 }
 0xba3   :  { %3829 = vsyncpa [#allocation16], 1 }
 0xba4   :  { %3830 = vsyncpa [#allocation8], 1 }
 0xba5   :  { %3831 = vsyncmov [#allocation5] }
 0xba8   :  { %s3832_s20 = vpop.sfrf %3831 }
 0xba9   :  { %p5163_p0 = scmp.ne.s32.totalorder %s3832_s20, 0 }
 0xbab   :  { %3836 = shalt.err (%p5163_p0)  }
 0xbac   :  { %3838 = vsyncmov [#allocation5 + $0x1] }
 0xbaf   :  { %s3839_s18 = vpop.sfrf %3838 }
 0xbb0   :  { %p5164_p1 = scmp.ne.s32.totalorder %s3839_s18, 0 }
 0xbb2   :  { %3843 = shalt.err (%p5164_p1)  }
 0xbb3   :  { %3845 = vsyncmov [#allocation5 + $0x2] }
 0xbb6   :  { %s3846_s21 = vpop.sfrf %3845 }
 0xbb7   :  { %p5165_p2 = scmp.ne.s32.totalorder %s3846_s21, 0 }
 0xbb9   :  { %3850 = shalt.err (%p5165_p2)  }

</bundles_post_ra>
